<compile_context>
chip_gen: v5e
topology: v5e:2x2
jax: 0.10.0
libtpu: 0.0.40
codegen_flags: <defaults>
</compile_context>

<pallas_src>
import functools

import jax
import jax.numpy as jnp
from jax import lax
from jax.experimental import pallas as pl
from jax.experimental.pallas import tpu as pltpu


def _lstm_decode_kernel(seq_len, num_layers, hidden, *refs):
    """Whole autoregressive decode in one kernel invocation (no grid).

    refs = (x0_emb, emb_table_bf16, fc_wT_f32, fc_bias_tiled,
            [w_ih4_l, w_hh4_l, bias4_l] * num_layers,
            logits_out)
    """
    x0_ref, emb_ref, fcw_ref, fcb_ref = refs[0:4]
    layer_refs = refs[4:4 + 3 * num_layers]
    logits_ref = refs[4 + 3 * num_layers]

    B = x0_ref.shape[0]                 # padded batch (multiple of 8 sublanes)
    Vp = fcw_ref.shape[1]               # padded vocab (multiple of 128 lanes)
    H = hidden

    def gate_preact(x_b, h_b, wih_ref, whh_ref, b_ref, g):
        # Two accumulating dots (no lane concat); weights re-read from VMEM at
        # the point of use so they do not stay live across the whole unroll.
        return (jnp.dot(x_b, wih_ref[g], preferred_element_type=jnp.float32)
                + jnp.dot(h_b, whh_ref[g], preferred_element_type=jnp.float32)
                + b_ref[g])

    # Recurrent state.  h only ever feeds MXU matmuls -> keep it in bf16 (one
    # cast per layer-step, reused everywhere).  c stays f32 for the recurrence.
    h = [jnp.zeros((B, H), jnp.bfloat16) for _ in range(num_layers)]
    c = [jnp.zeros((B, H), jnp.float32) for _ in range(num_layers)]
    inp = x0_ref[...]                    # (B, E) bf16, first token's embedding

    top_h_f32 = None
    for step in range(seq_len):          # static unroll: seq_len is tiny
        last_step = step == seq_len - 1
        layer_in = inp
        for l in range(num_layers):
            wih_ref = layer_refs[3 * l + 0]   # (4, in_l, H) bf16  (i/f/o cols pre-scaled by 0.5)
            whh_ref = layer_refs[3 * l + 1]   # (4, H,    H) bf16  (idem)
            b_ref = layer_refs[3 * l + 2]     # (4, B,    H) f32   (pre-tiled, idem)

            # PyTorch gate order: i, f, g, o.  Every gate is a (B, H) value at
            # lane offset 0, already aligned with c/h -> no XLU work here.
            # sigmoid(z) = 0.5*tanh(z/2)+0.5; the /2 is folded into weights, so
            # each gate costs exactly one EUP tanh.
            i_g = 0.5 * jnp.tanh(gate_preact(layer_in, h[l], wih_ref, whh_ref, b_ref, 0)) + 0.5
            f_g = 0.5 * jnp.tanh(gate_preact(layer_in, h[l], wih_ref, whh_ref, b_ref, 1)) + 0.5
            g_g = jnp.tanh(gate_preact(layer_in, h[l], wih_ref, whh_ref, b_ref, 2))
            o_g = 0.5 * jnp.tanh(gate_preact(layer_in, h[l], wih_ref, whh_ref, b_ref, 3)) + 0.5

            c[l] = f_g * c[l] + i_g * g_g
            h_f32 = o_g * jnp.tanh(c[l])
            # Single f32->bf16 cast per layer-step, reused for the hh dot of the
            # next step and the ih dot of the next layer.
            h[l] = h_f32.astype(jnp.bfloat16)
            layer_in = h[l]
            if l == num_layers - 1:
                top_h_f32 = h_f32

        # fc kept fully in f32 (weights + pre-cast h) so the argmax decision
        # tracks an f32 reference as closely as possible.  Pad columns carry a
        # -1e30 bias so they are never selected (assumes no real logit ever
        # reaches -1e30, which is safe for f32 activations here).
        logits = (jnp.dot(top_h_f32, fcw_ref[...],
                          preferred_element_type=jnp.float32) + fcb_ref[...])

        if last_step:
            logits_ref[...] = logits     # single lane-dense store, final step only
        else:
            # argmax(dim=1) with a SINGLE cross-lane reduce: map f32 logits to
            # an order-preserving int32 key, clear the low 7 bits and pack the
            # inverted lane index there.  Exact ties (and near-ties within
            # 128 ulps) resolve to the lowest index, matching torch.argmax.
            vidx = lax.broadcasted_iota(jnp.int32, (B, Vp), 1)
            bits = pltpu.bitcast(logits, jnp.int32)
            key = jnp.where(bits < 0, jnp.int32(-2147483648) - bits, bits)
            key = (key & jnp.int32(-128)) | ((Vp - 1) - vidx)
            best = jnp.max(key, axis=1, keepdims=True)          # one XLU reduce
            pred = (Vp - 1) - (best & jnp.int32(127))            # (B, 1) int32
            one_hot = (vidx == pred).astype(jnp.bfloat16)        # (B, Vp)
            # Re-embed the prediction via one-hot matmul (MXU row gather); the
            # embedding table is only read on non-final steps.
            inp = jnp.dot(one_hot, emb_ref[...],
                          preferred_element_type=jnp.float32).astype(jnp.bfloat16)


def lstm_decode_forward(x, params, num_layers, hidden):
    emb = params["embedding"]                        # (V, E) f32
    B, S = x.shape
    V, E = emb.shape
    H = hidden

    LANE, SUB = 128, 8
    Vp = ((V + LANE - 1) // LANE) * LANE             # vocab padded to lane width
    Bp = ((B + SUB - 1) // SUB) * SUB                # batch padded to sublanes
    NEG = jnp.float32(-1e30)                         # pad-column fc bias sentinel

    # Padded / transposed parameters (feature dims on the lane axis).
    emb_bf16 = jnp.zeros((Vp, E), jnp.float32).at[:V].set(emb).astype(jnp.bfloat16)
    fc_wT = jnp.zeros((H, Vp), jnp.float32).at[:, :V].set(params["fc_w"].T)   # f32
    fc_b = jnp.full((Vp,), NEG, jnp.float32).at[:V].set(params["fc_b"])
    fc_b_tiled = jnp.broadcast_to(fc_b[None, :], (Bp, Vp))                    # (Bp, Vp)

    # First token's embedding, gathered from the SAME bf16 table the kernel uses
    # for re-embedding (consistent precision), batch-padded to 8 sublanes.
    x0 = jnp.take(emb_bf16, x[:, 0], axis=0)         # (B, E) bf16
    x0 = jnp.zeros((Bp, E), jnp.bfloat16).at[:B].set(x0)

    # sigmoid(z) = 0.5*tanh(z/2)+0.5 -> fold the /2 into the i/f/o weight & bias
    # slabs (exact in bf16: power of two).  Gate order i, f, g, o (torch).
    gate_scale = jnp.array([0.5, 0.5, 1.0, 0.5], jnp.float32)

    layer_args = []
    for l in range(num_layers):
        in_l = E if l == 0 else H
        w_ih = params[f"w_ih_{l}"].reshape(4, H, in_l)                     # (4, H, in_l)
        w_hh = params[f"w_hh_{l}"].reshape(4, H, H)                        # (4, H, H)
        b = (params[f"b_ih_{l}"] + params[f"b_hh_{l}"]).reshape(4, H)       # (4, H)
        w_ih4 = (jnp.transpose(w_ih, (0, 2, 1))
                 * gate_scale[:, None, None]).astype(jnp.bfloat16)         # (4, in_l, H)
        w_hh4 = (jnp.transpose(w_hh, (0, 2, 1))
                 * gate_scale[:, None, None]).astype(jnp.bfloat16)         # (4, H, H)
        b4 = jnp.broadcast_to((b * gate_scale[:, None])[:, None, :],
                              (4, Bp, H)).astype(jnp.float32)              # (4, Bp, H)
        layer_args += [w_ih4, w_hh4, b4]

    inputs = [x0, emb_bf16, fc_wT, fc_b_tiled] + layer_args

    kernel = functools.partial(_lstm_decode_kernel, S, num_layers, H)

    logits_pad = pl.pallas_call(
        kernel,
        out_shape=jax.ShapeDtypeStruct((Bp, Vp), jnp.float32),
        in_specs=[pl.BlockSpec(memory_space=pltpu.MemorySpace.VMEM)] * len(inputs),
        out_specs=pl.BlockSpec(memory_space=pltpu.MemorySpace.VMEM),
    )(*inputs)

    return logits_pad[:B, :V]


def init_params(key, vocab_size, embed_size, hidden_size, num_layers):
    """Deterministic synthetic parameters matching nn.Embedding/nn.LSTM/nn.Linear shapes."""
    H = hidden_size // num_layers
    k = 1.0 / jnp.sqrt(jnp.float32(H))
    params = {}
    key, sub = jax.random.split(key)
    params["embedding"] = jax.random.normal(sub, (vocab_size, embed_size), jnp.float32)
    for l in range(num_layers):
        in_size = embed_size if l == 0 else H
        key, k1, k2, k3, k4 = jax.random.split(key, 5)
        params[f"w_ih_{l}"] = jax.random.uniform(k1, (4 * H, in_size), jnp.float32, -k, k)
        params[f"w_hh_{l}"] = jax.random.uniform(k2, (4 * H, H), jnp.float32, -k, k)
        params[f"b_ih_{l}"] = jax.random.uniform(k3, (4 * H,), jnp.float32, -k, k)
        params[f"b_hh_{l}"] = jax.random.uniform(k4, (4 * H,), jnp.float32, -k, k)
    key, k1, k2 = jax.random.split(key, 3)
    params["fc_w"] = jax.random.uniform(k1, (vocab_size, H), jnp.float32, -k, k)
    params["fc_b"] = jax.random.uniform(k2, (vocab_size,), jnp.float32, -k, k)
    return params


if __name__ == "__main__":
    vocab_size, embed_size, hidden_size, num_layers = 64, 32, 64, 2
    H = hidden_size // num_layers                    # 32 (matches the PyTorch module)
    batch, seq_len = 4, 8

    key = jax.random.PRNGKey(0)
    key, pkey, xkey = jax.random.split(key, 3)
    params = init_params(pkey, vocab_size, embed_size, hidden_size, num_layers)
    x = jax.random.randint(xkey, (batch, seq_len), 0, vocab_size, dtype=jnp.int32)

    logits = lstm_decode_forward(x, params, num_layers, H)
    logits = jax.block_until_ready(logits)
    assert logits.shape == (batch, vocab_size)
    assert logits.dtype == jnp.float32
    assert bool(jnp.all(jnp.isfinite(logits)))
    print("KERNEL_OK")
</pallas_src>

<mosaic_0001>
module attributes {stable_mosaic.version = 11 : i64} {
  func.func @_lstm_decode_kernel(%arg0: memref<8x32xbf16, #tpu.memory_space<vmem>>, %arg1: memref<128x32xbf16, #tpu.memory_space<vmem>>, %arg2: memref<32x128xf32, #tpu.memory_space<vmem>>, %arg3: memref<8x128xf32, #tpu.memory_space<vmem>>, %arg4: memref<4x32x32xbf16, #tpu.memory_space<vmem>>, %arg5: memref<4x32x32xbf16, #tpu.memory_space<vmem>>, %arg6: memref<4x8x32xf32, #tpu.memory_space<vmem>>, %arg7: memref<4x32x32xbf16, #tpu.memory_space<vmem>>, %arg8: memref<4x32x32xbf16, #tpu.memory_space<vmem>>, %arg9: memref<4x8x32xf32, #tpu.memory_space<vmem>>, %arg10: memref<8x128xf32, #tpu.memory_space<vmem>>) attributes {dimension_semantics = [], scalar_prefetch = 0 : i64, scratch_operands = 0 : i64, tpu.core_type = #tpu.core_type<tc>} {
    %cst = arith.constant 0.000000e+00 : bf16
    %0 = vector.broadcast %cst : bf16 to vector<8x32xbf16>
    %cst_0 = arith.constant 0.000000e+00 : bf16
    %1 = vector.broadcast %cst_0 : bf16 to vector<8x32xbf16>
    %cst_1 = arith.constant 0.000000e+00 : f32
    %2 = vector.broadcast %cst_1 : f32 to vector<8x32xf32>
    %cst_2 = arith.constant 0.000000e+00 : f32
    %3 = vector.broadcast %cst_2 : f32 to vector<8x32xf32>
    %c0 = arith.constant 0 : index
    %c0_3 = arith.constant 0 : index
    %4 = vector.load %arg0[%c0, %c0_3] : memref<8x32xbf16, #tpu.memory_space<vmem>>, vector<8x32xbf16>
    %c0_4 = arith.constant 0 : index
    %c0_5 = arith.constant 0 : index
    %c0_6 = arith.constant 0 : index
    %5 = vector.load %arg4[%c0_4, %c0_5, %c0_6] : memref<4x32x32xbf16, #tpu.memory_space<vmem>>, vector<1x32x32xbf16>
    %6 = vector.shape_cast %5 : vector<1x32x32xbf16> to vector<32x32xbf16>
    %cst_7 = arith.constant dense<0.000000e+00> : vector<8x32xf32>
    %7 = tpu.matmul %4, %6, %cst_7 {dimension_numbers = #tpu.dot_dimension_numbers<[1], [0], [0], [1], [0, 0, 1, 1], [], []>} : vector<8x32xbf16>, vector<32x32xbf16>, vector<8x32xf32> -> vector<8x32xf32>
    %c0_8 = arith.constant 0 : index
    %c0_9 = arith.constant 0 : index
    %c0_10 = arith.constant 0 : index
    %8 = vector.load %arg5[%c0_8, %c0_9, %c0_10] : memref<4x32x32xbf16, #tpu.memory_space<vmem>>, vector<1x32x32xbf16>
    %9 = vector.shape_cast %8 : vector<1x32x32xbf16> to vector<32x32xbf16>
    %cst_11 = arith.constant dense<0.000000e+00> : vector<8x32xf32>
    %10 = tpu.matmul %0, %9, %cst_11 {dimension_numbers = #tpu.dot_dimension_numbers<[1], [0], [0], [1], [0, 0, 1, 1], [], []>} : vector<8x32xbf16>, vector<32x32xbf16>, vector<8x32xf32> -> vector<8x32xf32>
    %11 = arith.addf %7, %10 : vector<8x32xf32>
    %c0_12 = arith.constant 0 : index
    %c0_13 = arith.constant 0 : index
    %c0_14 = arith.constant 0 : index
    %12 = vector.load %arg6[%c0_12, %c0_13, %c0_14] : memref<4x8x32xf32, #tpu.memory_space<vmem>>, vector<1x8x32xf32>
    %13 = vector.shape_cast %12 : vector<1x8x32xf32> to vector<8x32xf32>
    %14 = arith.addf %11, %13 : vector<8x32xf32>
    %15 = math.tanh %14 : vector<8x32xf32>
    %cst_15 = arith.constant 5.000000e-01 : f32
    %16 = vector.broadcast %cst_15 : f32 to vector<8x32xf32>
    %17 = arith.mulf %16, %15 : vector<8x32xf32>
    %cst_16 = arith.constant 5.000000e-01 : f32
    %18 = vector.broadcast %cst_16 : f32 to vector<8x32xf32>
    %19 = arith.addf %17, %18 : vector<8x32xf32>
    %c1 = arith.constant 1 : index
    %c0_17 = arith.constant 0 : index
    %c0_18 = arith.constant 0 : index
    %20 = vector.load %arg4[%c1, %c0_17, %c0_18] : memref<4x32x32xbf16, #tpu.memory_space<vmem>>, vector<1x32x32xbf16>
    %21 = vector.shape_cast %20 : vector<1x32x32xbf16> to vector<32x32xbf16>
    %cst_19 = arith.constant dense<0.000000e+00> : vector<8x32xf32>
    %22 = tpu.matmul %4, %21, %cst_19 {dimension_numbers = #tpu.dot_dimension_numbers<[1], [0], [0], [1], [0, 0, 1, 1], [], []>} : vector<8x32xbf16>, vector<32x32xbf16>, vector<8x32xf32> -> vector<8x32xf32>
    %c1_20 = arith.constant 1 : index
    %c0_21 = arith.constant 0 : index
    %c0_22 = arith.constant 0 : index
    %23 = vector.load %arg5[%c1_20, %c0_21, %c0_22] : memref<4x32x32xbf16, #tpu.memory_space<vmem>>, vector<1x32x32xbf16>
    %24 = vector.shape_cast %23 : vector<1x32x32xbf16> to vector<32x32xbf16>
    %cst_23 = arith.constant dense<0.000000e+00> : vector<8x32xf32>
    %25 = tpu.matmul %0, %24, %cst_23 {dimension_numbers = #tpu.dot_dimension_numbers<[1], [0], [0], [1], [0, 0, 1, 1], [], []>} : vector<8x32xbf16>, vector<32x32xbf16>, vector<8x32xf32> -> vector<8x32xf32>
    %26 = arith.addf %22, %25 : vector<8x32xf32>
    %c1_24 = arith.constant 1 : index
    %c0_25 = arith.constant 0 : index
    %c0_26 = arith.constant 0 : index
    %27 = vector.load %arg6[%c1_24, %c0_25, %c0_26] : memref<4x8x32xf32, #tpu.memory_space<vmem>>, vector<1x8x32xf32>
    %28 = vector.shape_cast %27 : vector<1x8x32xf32> to vector<8x32xf32>
    %29 = arith.addf %26, %28 : vector<8x32xf32>
    %30 = math.tanh %29 : vector<8x32xf32>
    %cst_27 = arith.constant 5.000000e-01 : f32
    %31 = vector.broadcast %cst_27 : f32 to vector<8x32xf32>
    %32 = arith.mulf %31, %30 : vector<8x32xf32>
    %cst_28 = arith.constant 5.000000e-01 : f32
    %33 = vector.broadcast %cst_28 : f32 to vector<8x32xf32>
    %34 = arith.addf %32, %33 : vector<8x32xf32>
    %c2 = arith.constant 2 : index
    %c0_29 = arith.constant 0 : index
    %c0_30 = arith.constant 0 : index
    %35 = vector.load %arg4[%c2, %c0_29, %c0_30] : memref<4x32x32xbf16, #tpu.memory_space<vmem>>, vector<1x32x32xbf16>
    %36 = vector.shape_cast %35 : vector<1x32x32xbf16> to vector<32x32xbf16>
    %cst_31 = arith.constant dense<0.000000e+00> : vector<8x32xf32>
    %37 = tpu.matmul %4, %36, %cst_31 {dimension_numbers = #tpu.dot_dimension_numbers<[1], [0], [0], [1], [0, 0, 1, 1], [], []>} : vector<8x32xbf16>, vector<32x32xbf16>, vector<8x32xf32> -> vector<8x32xf32>
    %c2_32 = arith.constant 2 : index
    %c0_33 = arith.constant 0 : index
    %c0_34 = arith.constant 0 : index
    %38 = vector.load %arg5[%c2_32, %c0_33, %c0_34] : memref<4x32x32xbf16, #tpu.memory_space<vmem>>, vector<1x32x32xbf16>
    %39 = vector.shape_cast %38 : vector<1x32x32xbf16> to vector<32x32xbf16>
    %cst_35 = arith.constant dense<0.000000e+00> : vector<8x32xf32>
    %40 = tpu.matmul %0, %39, %cst_35 {dimension_numbers = #tpu.dot_dimension_numbers<[1], [0], [0], [1], [0, 0, 1, 1], [], []>} : vector<8x32xbf16>, vector<32x32xbf16>, vector<8x32xf32> -> vector<8x32xf32>
    %41 = arith.addf %37, %40 : vector<8x32xf32>
    %c2_36 = arith.constant 2 : index
    %c0_37 = arith.constant 0 : index
    %c0_38 = arith.constant 0 : index
    %42 = vector.load %arg6[%c2_36, %c0_37, %c0_38] : memref<4x8x32xf32, #tpu.memory_space<vmem>>, vector<1x8x32xf32>
    %43 = vector.shape_cast %42 : vector<1x8x32xf32> to vector<8x32xf32>
    %44 = arith.addf %41, %43 : vector<8x32xf32>
    %45 = math.tanh %44 : vector<8x32xf32>
    %c3 = arith.constant 3 : index
    %c0_39 = arith.constant 0 : index
    %c0_40 = arith.constant 0 : index
    %46 = vector.load %arg4[%c3, %c0_39, %c0_40] : memref<4x32x32xbf16, #tpu.memory_space<vmem>>, vector<1x32x32xbf16>
    %47 = vector.shape_cast %46 : vector<1x32x32xbf16> to vector<32x32xbf16>
    %cst_41 = arith.constant dense<0.000000e+00> : vector<8x32xf32>
    %48 = tpu.matmul %4, %47, %cst_41 {dimension_numbers = #tpu.dot_dimension_numbers<[1], [0], [0], [1], [0, 0, 1, 1], [], []>} : vector<8x32xbf16>, vector<32x32xbf16>, vector<8x32xf32> -> vector<8x32xf32>
    %c3_42 = arith.constant 3 : index
    %c0_43 = arith.constant 0 : index
    %c0_44 = arith.constant 0 : index
    %49 = vector.load %arg5[%c3_42, %c0_43, %c0_44] : memref<4x32x32xbf16, #tpu.memory_space<vmem>>, vector<1x32x32xbf16>
    %50 = vector.shape_cast %49 : vector<1x32x32xbf16> to vector<32x32xbf16>
    %cst_45 = arith.constant dense<0.000000e+00> : vector<8x32xf32>
    %51 = tpu.matmul %0, %50, %cst_45 {dimension_numbers = #tpu.dot_dimension_numbers<[1], [0], [0], [1], [0, 0, 1, 1], [], []>} : vector<8x32xbf16>, vector<32x32xbf16>, vector<8x32xf32> -> vector<8x32xf32>
    %52 = arith.addf %48, %51 : vector<8x32xf32>
    %c3_46 = arith.constant 3 : index
    %c0_47 = arith.constant 0 : index
    %c0_48 = arith.constant 0 : index
    %53 = vector.load %arg6[%c3_46, %c0_47, %c0_48] : memref<4x8x32xf32, #tpu.memory_space<vmem>>, vector<1x8x32xf32>
    %54 = vector.shape_cast %53 : vector<1x8x32xf32> to vector<8x32xf32>
    %55 = arith.addf %52, %54 : vector<8x32xf32>
    %56 = math.tanh %55 : vector<8x32xf32>
    %cst_49 = arith.constant 5.000000e-01 : f32
    %57 = vector.broadcast %cst_49 : f32 to vector<8x32xf32>
    %58 = arith.mulf %57, %56 : vector<8x32xf32>
    %cst_50 = arith.constant 5.000000e-01 : f32
    %59 = vector.broadcast %cst_50 : f32 to vector<8x32xf32>
    %60 = arith.addf %58, %59 : vector<8x32xf32>
    %61 = arith.mulf %34, %2 : vector<8x32xf32>
    %62 = arith.mulf %19, %45 : vector<8x32xf32>
    %63 = arith.addf %61, %62 : vector<8x32xf32>
    %64 = math.tanh %63 : vector<8x32xf32>
    %65 = arith.mulf %60, %64 : vector<8x32xf32>
    %66 = arith.truncf %65 : vector<8x32xf32> to vector<8x32xbf16>
    %c0_51 = arith.constant 0 : index
    %c0_52 = arith.constant 0 : index
    %c0_53 = arith.constant 0 : index
    %67 = vector.load %arg7[%c0_51, %c0_52, %c0_53] : memref<4x32x32xbf16, #tpu.memory_space<vmem>>, vector<1x32x32xbf16>
    %68 = vector.shape_cast %67 : vector<1x32x32xbf16> to vector<32x32xbf16>
    %cst_54 = arith.constant dense<0.000000e+00> : vector<8x32xf32>
    %69 = tpu.matmul %66, %68, %cst_54 {dimension_numbers = #tpu.dot_dimension_numbers<[1], [0], [0], [1], [0, 0, 1, 1], [], []>} : vector<8x32xbf16>, vector<32x32xbf16>, vector<8x32xf32> -> vector<8x32xf32>
    %c0_55 = arith.constant 0 : index
    %c0_56 = arith.constant 0 : index
    %c0_57 = arith.constant 0 : index
    %70 = vector.load %arg8[%c0_55, %c0_56, %c0_57] : memref<4x32x32xbf16, #tpu.memory_space<vmem>>, vector<1x32x32xbf16>
    %71 = vector.shape_cast %70 : vector<1x32x32xbf16> to vector<32x32xbf16>
    %cst_58 = arith.constant dense<0.000000e+00> : vector<8x32xf32>
    %72 = tpu.matmul %1, %71, %cst_58 {dimension_numbers = #tpu.dot_dimension_numbers<[1], [0], [0], [1], [0, 0, 1, 1], [], []>} : vector<8x32xbf16>, vector<32x32xbf16>, vector<8x32xf32> -> vector<8x32xf32>
    %73 = arith.addf %69, %72 : vector<8x32xf32>
    %c0_59 = arith.constant 0 : index
    %c0_60 = arith.constant 0 : index
    %c0_61 = arith.constant 0 : index
    %74 = vector.load %arg9[%c0_59, %c0_60, %c0_61] : memref<4x8x32xf32, #tpu.memory_space<vmem>>, vector<1x8x32xf32>
    %75 = vector.shape_cast %74 : vector<1x8x32xf32> to vector<8x32xf32>
    %76 = arith.addf %73, %75 : vector<8x32xf32>
    %77 = math.tanh %76 : vector<8x32xf32>
    %cst_62 = arith.constant 5.000000e-01 : f32
    %78 = vector.broadcast %cst_62 : f32 to vector<8x32xf32>
    %79 = arith.mulf %78, %77 : vector<8x32xf32>
    %cst_63 = arith.constant 5.000000e-01 : f32
    %80 = vector.broadcast %cst_63 : f32 to vector<8x32xf32>
    %81 = arith.addf %79, %80 : vector<8x32xf32>
    %c1_64 = arith.constant 1 : index
    %c0_65 = arith.constant 0 : index
    %c0_66 = arith.constant 0 : index
    %82 = vector.load %arg7[%c1_64, %c0_65, %c0_66] : memref<4x32x32xbf16, #tpu.memory_space<vmem>>, vector<1x32x32xbf16>
    %83 = vector.shape_cast %82 : vector<1x32x32xbf16> to vector<32x32xbf16>
    %cst_67 = arith.constant dense<0.000000e+00> : vector<8x32xf32>
    %84 = tpu.matmul %66, %83, %cst_67 {dimension_numbers = #tpu.dot_dimension_numbers<[1], [0], [0], [1], [0, 0, 1, 1], [], []>} : vector<8x32xbf16>, vector<32x32xbf16>, vector<8x32xf32> -> vector<8x32xf32>
    %c1_68 = arith.constant 1 : index
    %c0_69 = arith.constant 0 : index
    %c0_70 = arith.constant 0 : index
    %85 = vector.load %arg8[%c1_68, %c0_69, %c0_70] : memref<4x32x32xbf16, #tpu.memory_space<vmem>>, vector<1x32x32xbf16>
    %86 = vector.shape_cast %85 : vector<1x32x32xbf16> to vector<32x32xbf16>
    %cst_71 = arith.constant dense<0.000000e+00> : vector<8x32xf32>
    %87 = tpu.matmul %1, %86, %cst_71 {dimension_numbers = #tpu.dot_dimension_numbers<[1], [0], [0], [1], [0, 0, 1, 1], [], []>} : vector<8x32xbf16>, vector<32x32xbf16>, vector<8x32xf32> -> vector<8x32xf32>
    %88 = arith.addf %84, %87 : vector<8x32xf32>
    %c1_72 = arith.constant 1 : index
    %c0_73 = arith.constant 0 : index
    %c0_74 = arith.constant 0 : index
    %89 = vector.load %arg9[%c1_72, %c0_73, %c0_74] : memref<4x8x32xf32, #tpu.memory_space<vmem>>, vector<1x8x32xf32>
    %90 = vector.shape_cast %89 : vector<1x8x32xf32> to vector<8x32xf32>
    %91 = arith.addf %88, %90 : vector<8x32xf32>
    %92 = math.tanh %91 : vector<8x32xf32>
    %cst_75 = arith.constant 5.000000e-01 : f32
    %93 = vector.broadcast %cst_75 : f32 to vector<8x32xf32>
    %94 = arith.mulf %93, %92 : vector<8x32xf32>
    %cst_76 = arith.constant 5.000000e-01 : f32
    %95 = vector.broadcast %cst_76 : f32 to vector<8x32xf32>
    %96 = arith.addf %94, %95 : vector<8x32xf32>
    %c2_77 = arith.constant 2 : index
    %c0_78 = arith.constant 0 : index
    %c0_79 = arith.constant 0 : index
    %97 = vector.load %arg7[%c2_77, %c0_78, %c0_79] : memref<4x32x32xbf16, #tpu.memory_space<vmem>>, vector<1x32x32xbf16>
    %98 = vector.shape_cast %97 : vector<1x32x32xbf16> to vector<32x32xbf16>
    %cst_80 = arith.constant dense<0.000000e+00> : vector<8x32xf32>
    %99 = tpu.matmul %66, %98, %cst_80 {dimension_numbers = #tpu.dot_dimension_numbers<[1], [0], [0], [1], [0, 0, 1, 1], [], []>} : vector<8x32xbf16>, vector<32x32xbf16>, vector<8x32xf32> -> vector<8x32xf32>
    %c2_81 = arith.constant 2 : index
    %c0_82 = arith.constant 0 : index
    %c0_83 = arith.constant 0 : index
    %100 = vector.load %arg8[%c2_81, %c0_82, %c0_83] : memref<4x32x32xbf16, #tpu.memory_space<vmem>>, vector<1x32x32xbf16>
    %101 = vector.shape_cast %100 : vector<1x32x32xbf16> to vector<32x32xbf16>
    %cst_84 = arith.constant dense<0.000000e+00> : vector<8x32xf32>
    %102 = tpu.matmul %1, %101, %cst_84 {dimension_numbers = #tpu.dot_dimension_numbers<[1], [0], [0], [1], [0, 0, 1, 1], [], []>} : vector<8x32xbf16>, vector<32x32xbf16>, vector<8x32xf32> -> vector<8x32xf32>
    %103 = arith.addf %99, %102 : vector<8x32xf32>
    %c2_85 = arith.constant 2 : index
    %c0_86 = arith.constant 0 : index
    %c0_87 = arith.constant 0 : index
    %104 = vector.load %arg9[%c2_85, %c0_86, %c0_87] : memref<4x8x32xf32, #tpu.memory_space<vmem>>, vector<1x8x32xf32>
    %105 = vector.shape_cast %104 : vector<1x8x32xf32> to vector<8x32xf32>
    %106 = arith.addf %103, %105 : vector<8x32xf32>
    %107 = math.tanh %106 : vector<8x32xf32>
    %c3_88 = arith.constant 3 : index
    %c0_89 = arith.constant 0 : index
    %c0_90 = arith.constant 0 : index
    %108 = vector.load %arg7[%c3_88, %c0_89, %c0_90] : memref<4x32x32xbf16, #tpu.memory_space<vmem>>, vector<1x32x32xbf16>
    %109 = vector.shape_cast %108 : vector<1x32x32xbf16> to vector<32x32xbf16>
    %cst_91 = arith.constant dense<0.000000e+00> : vector<8x32xf32>
    %110 = tpu.matmul %66, %109, %cst_91 {dimension_numbers = #tpu.dot_dimension_numbers<[1], [0], [0], [1], [0, 0, 1, 1], [], []>} : vector<8x32xbf16>, vector<32x32xbf16>, vector<8x32xf32> -> vector<8x32xf32>
    %c3_92 = arith.constant 3 : index
    %c0_93 = arith.constant 0 : index
    %c0_94 = arith.constant 0 : index
    %111 = vector.load %arg8[%c3_92, %c0_93, %c0_94] : memref<4x32x32xbf16, #tpu.memory_space<vmem>>, vector<1x32x32xbf16>
    %112 = vector.shape_cast %111 : vector<1x32x32xbf16> to vector<32x32xbf16>
    %cst_95 = arith.constant dense<0.000000e+00> : vector<8x32xf32>
    %113 = tpu.matmul %1, %112, %cst_95 {dimension_numbers = #tpu.dot_dimension_numbers<[1], [0], [0], [1], [0, 0, 1, 1], [], []>} : vector<8x32xbf16>, vector<32x32xbf16>, vector<8x32xf32> -> vector<8x32xf32>
    %114 = arith.addf %110, %113 : vector<8x32xf32>
    %c3_96 = arith.constant 3 : index
    %c0_97 = arith.constant 0 : index
    %c0_98 = arith.constant 0 : index
    %115 = vector.load %arg9[%c3_96, %c0_97, %c0_98] : memref<4x8x32xf32, #tpu.memory_space<vmem>>, vector<1x8x32xf32>
    %116 = vector.shape_cast %115 : vector<1x8x32xf32> to vector<8x32xf32>
    %117 = arith.addf %114, %116 : vector<8x32xf32>
    %118 = math.tanh %117 : vector<8x32xf32>
    %cst_99 = arith.constant 5.000000e-01 : f32
    %119 = vector.broadcast %cst_99 : f32 to vector<8x32xf32>
    %120 = arith.mulf %119, %118 : vector<8x32xf32>
    %cst_100 = arith.constant 5.000000e-01 : f32
    %121 = vector.broadcast %cst_100 : f32 to vector<8x32xf32>
    %122 = arith.addf %120, %121 : vector<8x32xf32>
    %123 = arith.mulf %96, %3 : vector<8x32xf32>
    %124 = arith.mulf %81, %107 : vector<8x32xf32>
    %125 = arith.addf %123, %124 : vector<8x32xf32>
    %126 = math.tanh %125 : vector<8x32xf32>
    %127 = arith.mulf %122, %126 : vector<8x32xf32>
    %128 = arith.truncf %127 : vector<8x32xf32> to vector<8x32xbf16>
    %c0_101 = arith.constant 0 : index
    %c0_102 = arith.constant 0 : index
    %129 = vector.load %arg2[%c0_101, %c0_102] : memref<32x128xf32, #tpu.memory_space<vmem>>, vector<32x128xf32>
    %cst_103 = arith.constant dense<0.000000e+00> : vector<8x128xf32>
    %130 = tpu.matmul %127, %129, %cst_103 {dimension_numbers = #tpu.dot_dimension_numbers<[1], [0], [0], [1], [0, 0, 1, 1], [], []>} : vector<8x32xf32>, vector<32x128xf32>, vector<8x128xf32> -> vector<8x128xf32>
    %c0_104 = arith.constant 0 : index
    %c0_105 = arith.constant 0 : index
    %131 = vector.load %arg3[%c0_104, %c0_105] : memref<8x128xf32, #tpu.memory_space<vmem>>, vector<8x128xf32>
    %132 = arith.addf %130, %131 : vector<8x128xf32>
    %133 = tpu.iota {dimensions = array<i32: 1>} : vector<8x128xi32>
    %134 = tpu.bitcast %132 : vector<8x128xf32> -> vector<8x128xi32>
    %c0_i32 = arith.constant 0 : i32
    %135 = vector.broadcast %c0_i32 : i32 to vector<8x128xi32>
    %136 = arith.cmpi slt, %134, %135 : vector<8x128xi32>
    %c-2147483648_i32 = arith.constant -2147483648 : i32
    %137 = vector.broadcast %c-2147483648_i32 : i32 to vector<8x128xi32>
    %138 = arith.subi %137, %134 : vector<8x128xi32>
    %139 = arith.select %136, %138, %134 : vector<8x128xi1>, vector<8x128xi32>
    %c-128_i32 = arith.constant -128 : i32
    %140 = vector.broadcast %c-128_i32 : i32 to vector<8x128xi32>
    %141 = arith.andi %139, %140 : vector<8x128xi32>
    %c127_i32 = arith.constant 127 : i32
    %142 = vector.broadcast %c127_i32 : i32 to vector<8x128xi32>
    %143 = arith.subi %142, %133 : vector<8x128xi32>
    %144 = arith.ori %141, %143 : vector<8x128xi32>
    %cst_106 = arith.constant dense<-2147483648> : vector<8xi32>
    %145 = vector.multi_reduction <maxsi>, %144, %cst_106 [1] : vector<8x128xi32> to vector<8xi32>
    %146 = vector.shape_cast %145 : vector<8xi32> to vector<8x1xi32>
    %c127_i32_107 = arith.constant 127 : i32
    %147 = vector.broadcast %c127_i32_107 : i32 to vector<8x1xi32>
    %148 = arith.andi %146, %147 : vector<8x1xi32>
    %c127_i32_108 = arith.constant 127 : i32
    %149 = vector.broadcast %c127_i32_108 : i32 to vector<8x1xi32>
    %150 = arith.subi %149, %148 : vector<8x1xi32>
    %151 = vector.broadcast %150 : vector<8x1xi32> to vector<8x128xi32>
    %152 = arith.cmpi eq, %133, %151 : vector<8x128xi32>
    %153 = arith.extui %152 : vector<8x128xi1> to vector<8x128xi32>
    %154 = arith.sitofp %153 : vector<8x128xi32> to vector<8x128xf32>
    %155 = arith.truncf %154 : vector<8x128xf32> to vector<8x128xbf16>
    %c0_109 = arith.constant 0 : index
    %c0_110 = arith.constant 0 : index
    %156 = vector.load %arg1[%c0_109, %c0_110] : memref<128x32xbf16, #tpu.memory_space<vmem>>, vector<128x32xbf16>
    %cst_111 = arith.constant dense<0.000000e+00> : vector<8x32xf32>
    %157 = tpu.matmul %155, %156, %cst_111 {dimension_numbers = #tpu.dot_dimension_numbers<[1], [0], [0], [1], [0, 0, 1, 1], [], []>} : vector<8x128xbf16>, vector<128x32xbf16>, vector<8x32xf32> -> vector<8x32xf32>
    %158 = arith.truncf %157 : vector<8x32xf32> to vector<8x32xbf16>
    %c0_112 = arith.constant 0 : index
    %c0_113 = arith.constant 0 : index
    %c0_114 = arith.constant 0 : index
    %159 = vector.load %arg4[%c0_112, %c0_113, %c0_114] : memref<4x32x32xbf16, #tpu.memory_space<vmem>>, vector<1x32x32xbf16>
    %160 = vector.shape_cast %159 : vector<1x32x32xbf16> to vector<32x32xbf16>
    %cst_115 = arith.constant dense<0.000000e+00> : vector<8x32xf32>
    %161 = tpu.matmul %158, %160, %cst_115 {dimension_numbers = #tpu.dot_dimension_numbers<[1], [0], [0], [1], [0, 0, 1, 1], [], []>} : vector<8x32xbf16>, vector<32x32xbf16>, vector<8x32xf32> -> vector<8x32xf32>
    %c0_116 = arith.constant 0 : index
    %c0_117 = arith.constant 0 : index
    %c0_118 = arith.constant 0 : index
    %162 = vector.load %arg5[%c0_116, %c0_117, %c0_118] : memref<4x32x32xbf16, #tpu.memory_space<vmem>>, vector<1x32x32xbf16>
    %163 = vector.shape_cast %162 : vector<1x32x32xbf16> to vector<32x32xbf16>
    %cst_119 = arith.constant dense<0.000000e+00> : vector<8x32xf32>
    %164 = tpu.matmul %66, %163, %cst_119 {dimension_numbers = #tpu.dot_dimension_numbers<[1], [0], [0], [1], [0, 0, 1, 1], [], []>} : vector<8x32xbf16>, vector<32x32xbf16>, vector<8x32xf32> -> vector<8x32xf32>
    %165 = arith.addf %161, %164 : vector<8x32xf32>
    %c0_120 = arith.constant 0 : index
    %c0_121 = arith.constant 0 : index
    %c0_122 = arith.constant 0 : index
    %166 = vector.load %arg6[%c0_120, %c0_121, %c0_122] : memref<4x8x32xf32, #tpu.memory_space<vmem>>, vector<1x8x32xf32>
    %167 = vector.shape_cast %166 : vector<1x8x32xf32> to vector<8x32xf32>
    %168 = arith.addf %165, %167 : vector<8x32xf32>
    %169 = math.tanh %168 : vector<8x32xf32>
    %cst_123 = arith.constant 5.000000e-01 : f32
    %170 = vector.broadcast %cst_123 : f32 to vector<8x32xf32>
    %171 = arith.mulf %170, %169 : vector<8x32xf32>
    %cst_124 = arith.constant 5.000000e-01 : f32
    %172 = vector.broadcast %cst_124 : f32 to vector<8x32xf32>
    %173 = arith.addf %171, %172 : vector<8x32xf32>
    %c1_125 = arith.constant 1 : index
    %c0_126 = arith.constant 0 : index
    %c0_127 = arith.constant 0 : index
    %174 = vector.load %arg4[%c1_125, %c0_126, %c0_127] : memref<4x32x32xbf16, #tpu.memory_space<vmem>>, vector<1x32x32xbf16>
    %175 = vector.shape_cast %174 : vector<1x32x32xbf16> to vector<32x32xbf16>
    %cst_128 = arith.constant dense<0.000000e+00> : vector<8x32xf32>
    %176 = tpu.matmul %158, %175, %cst_128 {dimension_numbers = #tpu.dot_dimension_numbers<[1], [0], [0], [1], [0, 0, 1, 1], [], []>} : vector<8x32xbf16>, vector<32x32xbf16>, vector<8x32xf32> -> vector<8x32xf32>
    %c1_129 = arith.constant 1 : index
    %c0_130 = arith.constant 0 : index
    %c0_131 = arith.constant 0 : index
    %177 = vector.load %arg5[%c1_129, %c0_130, %c0_131] : memref<4x32x32xbf16, #tpu.memory_space<vmem>>, vector<1x32x32xbf16>
    %178 = vector.shape_cast %177 : vector<1x32x32xbf16> to vector<32x32xbf16>
    %cst_132 = arith.constant dense<0.000000e+00> : vector<8x32xf32>
    %179 = tpu.matmul %66, %178, %cst_132 {dimension_numbers = #tpu.dot_dimension_numbers<[1], [0], [0], [1], [0, 0, 1, 1], [], []>} : vector<8x32xbf16>, vector<32x32xbf16>, vector<8x32xf32> -> vector<8x32xf32>
    %180 = arith.addf %176, %179 : vector<8x32xf32>
    %c1_133 = arith.constant 1 : index
    %c0_134 = arith.constant 0 : index
    %c0_135 = arith.constant 0 : index
    %181 = vector.load %arg6[%c1_133, %c0_134, %c0_135] : memref<4x8x32xf32, #tpu.memory_space<vmem>>, vector<1x8x32xf32>
    %182 = vector.shape_cast %181 : vector<1x8x32xf32> to vector<8x32xf32>
    %183 = arith.addf %180, %182 : vector<8x32xf32>
    %184 = math.tanh %183 : vector<8x32xf32>
    %cst_136 = arith.constant 5.000000e-01 : f32
    %185 = vector.broadcast %cst_136 : f32 to vector<8x32xf32>
    %186 = arith.mulf %185, %184 : vector<8x32xf32>
    %cst_137 = arith.constant 5.000000e-01 : f32
    %187 = vector.broadcast %cst_137 : f32 to vector<8x32xf32>
    %188 = arith.addf %186, %187 : vector<8x32xf32>
    %c2_138 = arith.constant 2 : index
    %c0_139 = arith.constant 0 : index
    %c0_140 = arith.constant 0 : index
    %189 = vector.load %arg4[%c2_138, %c0_139, %c0_140] : memref<4x32x32xbf16, #tpu.memory_space<vmem>>, vector<1x32x32xbf16>
    %190 = vector.shape_cast %189 : vector<1x32x32xbf16> to vector<32x32xbf16>
    %cst_141 = arith.constant dense<0.000000e+00> : vector<8x32xf32>
    %191 = tpu.matmul %158, %190, %cst_141 {dimension_numbers = #tpu.dot_dimension_numbers<[1], [0], [0], [1], [0, 0, 1, 1], [], []>} : vector<8x32xbf16>, vector<32x32xbf16>, vector<8x32xf32> -> vector<8x32xf32>
    %c2_142 = arith.constant 2 : index
    %c0_143 = arith.constant 0 : index
    %c0_144 = arith.constant 0 : index
    %192 = vector.load %arg5[%c2_142, %c0_143, %c0_144] : memref<4x32x32xbf16, #tpu.memory_space<vmem>>, vector<1x32x32xbf16>
    %193 = vector.shape_cast %192 : vector<1x32x32xbf16> to vector<32x32xbf16>
    %cst_145 = arith.constant dense<0.000000e+00> : vector<8x32xf32>
    %194 = tpu.matmul %66, %193, %cst_145 {dimension_numbers = #tpu.dot_dimension_numbers<[1], [0], [0], [1], [0, 0, 1, 1], [], []>} : vector<8x32xbf16>, vector<32x32xbf16>, vector<8x32xf32> -> vector<8x32xf32>
    %195 = arith.addf %191, %194 : vector<8x32xf32>
    %c2_146 = arith.constant 2 : index
    %c0_147 = arith.constant 0 : index
    %c0_148 = arith.constant 0 : index
    %196 = vector.load %arg6[%c2_146, %c0_147, %c0_148] : memref<4x8x32xf32, #tpu.memory_space<vmem>>, vector<1x8x32xf32>
    %197 = vector.shape_cast %196 : vector<1x8x32xf32> to vector<8x32xf32>
    %198 = arith.addf %195, %197 : vector<8x32xf32>
    %199 = math.tanh %198 : vector<8x32xf32>
    %c3_149 = arith.constant 3 : index
    %c0_150 = arith.constant 0 : index
    %c0_151 = arith.constant 0 : index
    %200 = vector.load %arg4[%c3_149, %c0_150, %c0_151] : memref<4x32x32xbf16, #tpu.memory_space<vmem>>, vector<1x32x32xbf16>
    %201 = vector.shape_cast %200 : vector<1x32x32xbf16> to vector<32x32xbf16>
    %cst_152 = arith.constant dense<0.000000e+00> : vector<8x32xf32>
    %202 = tpu.matmul %158, %201, %cst_152 {dimension_numbers = #tpu.dot_dimension_numbers<[1], [0], [0], [1], [0, 0, 1, 1], [], []>} : vector<8x32xbf16>, vector<32x32xbf16>, vector<8x32xf32> -> vector<8x32xf32>
    %c3_153 = arith.constant 3 : index
    %c0_154 = arith.constant 0 : index
    %c0_155 = arith.constant 0 : index
    %203 = vector.load %arg5[%c3_153, %c0_154, %c0_155] : memref<4x32x32xbf16, #tpu.memory_space<vmem>>, vector<1x32x32xbf16>
    %204 = vector.shape_cast %203 : vector<1x32x32xbf16> to vector<32x32xbf16>
    %cst_156 = arith.constant dense<0.000000e+00> : vector<8x32xf32>
    %205 = tpu.matmul %66, %204, %cst_156 {dimension_numbers = #tpu.dot_dimension_numbers<[1], [0], [0], [1], [0, 0, 1, 1], [], []>} : vector<8x32xbf16>, vector<32x32xbf16>, vector<8x32xf32> -> vector<8x32xf32>
    %206 = arith.addf %202, %205 : vector<8x32xf32>
    %c3_157 = arith.constant 3 : index
    %c0_158 = arith.constant 0 : index
    %c0_159 = arith.constant 0 : index
    %207 = vector.load %arg6[%c3_157, %c0_158, %c0_159] : memref<4x8x32xf32, #tpu.memory_space<vmem>>, vector<1x8x32xf32>
    %208 = vector.shape_cast %207 : vector<1x8x32xf32> to vector<8x32xf32>
    %209 = arith.addf %206, %208 : vector<8x32xf32>
    %210 = math.tanh %209 : vector<8x32xf32>
    %cst_160 = arith.constant 5.000000e-01 : f32
    %211 = vector.broadcast %cst_160 : f32 to vector<8x32xf32>
    %212 = arith.mulf %211, %210 : vector<8x32xf32>
    %cst_161 = arith.constant 5.000000e-01 : f32
    %213 = vector.broadcast %cst_161 : f32 to vector<8x32xf32>
    %214 = arith.addf %212, %213 : vector<8x32xf32>
    %215 = arith.mulf %188, %63 : vector<8x32xf32>
    %216 = arith.mulf %173, %199 : vector<8x32xf32>
    %217 = arith.addf %215, %216 : vector<8x32xf32>
    %218 = math.tanh %217 : vector<8x32xf32>
    %219 = arith.mulf %214, %218 : vector<8x32xf32>
    %220 = arith.truncf %219 : vector<8x32xf32> to vector<8x32xbf16>
    %c0_162 = arith.constant 0 : index
    %c0_163 = arith.constant 0 : index
    %c0_164 = arith.constant 0 : index
    %221 = vector.load %arg7[%c0_162, %c0_163, %c0_164] : memref<4x32x32xbf16, #tpu.memory_space<vmem>>, vector<1x32x32xbf16>
    %222 = vector.shape_cast %221 : vector<1x32x32xbf16> to vector<32x32xbf16>
    %cst_165 = arith.constant dense<0.000000e+00> : vector<8x32xf32>
    %223 = tpu.matmul %220, %222, %cst_165 {dimension_numbers = #tpu.dot_dimension_numbers<[1], [0], [0], [1], [0, 0, 1, 1], [], []>} : vector<8x32xbf16>, vector<32x32xbf16>, vector<8x32xf32> -> vector<8x32xf32>
    %c0_166 = arith.constant 0 : index
    %c0_167 = arith.constant 0 : index
    %c0_168 = arith.constant 0 : index
    %224 = vector.load %arg8[%c0_166, %c0_167, %c0_168] : memref<4x32x32xbf16, #tpu.memory_space<vmem>>, vector<1x32x32xbf16>
    %225 = vector.shape_cast %224 : vector<1x32x32xbf16> to vector<32x32xbf16>
    %cst_169 = arith.constant dense<0.000000e+00> : vector<8x32xf32>
    %226 = tpu.matmul %128, %225, %cst_169 {dimension_numbers = #tpu.dot_dimension_numbers<[1], [0], [0], [1], [0, 0, 1, 1], [], []>} : vector<8x32xbf16>, vector<32x32xbf16>, vector<8x32xf32> -> vector<8x32xf32>
    %227 = arith.addf %223, %226 : vector<8x32xf32>
    %c0_170 = arith.constant 0 : index
    %c0_171 = arith.constant 0 : index
    %c0_172 = arith.constant 0 : index
    %228 = vector.load %arg9[%c0_170, %c0_171, %c0_172] : memref<4x8x32xf32, #tpu.memory_space<vmem>>, vector<1x8x32xf32>
    %229 = vector.shape_cast %228 : vector<1x8x32xf32> to vector<8x32xf32>
    %230 = arith.addf %227, %229 : vector<8x32xf32>
    %231 = math.tanh %230 : vector<8x32xf32>
    %cst_173 = arith.constant 5.000000e-01 : f32
    %232 = vector.broadcast %cst_173 : f32 to vector<8x32xf32>
    %233 = arith.mulf %232, %231 : vector<8x32xf32>
    %cst_174 = arith.constant 5.000000e-01 : f32
    %234 = vector.broadcast %cst_174 : f32 to vector<8x32xf32>
    %235 = arith.addf %233, %234 : vector<8x32xf32>
    %c1_175 = arith.constant 1 : index
    %c0_176 = arith.constant 0 : index
    %c0_177 = arith.constant 0 : index
    %236 = vector.load %arg7[%c1_175, %c0_176, %c0_177] : memref<4x32x32xbf16, #tpu.memory_space<vmem>>, vector<1x32x32xbf16>
    %237 = vector.shape_cast %236 : vector<1x32x32xbf16> to vector<32x32xbf16>
    %cst_178 = arith.constant dense<0.000000e+00> : vector<8x32xf32>
    %238 = tpu.matmul %220, %237, %cst_178 {dimension_numbers = #tpu.dot_dimension_numbers<[1], [0], [0], [1], [0, 0, 1, 1], [], []>} : vector<8x32xbf16>, vector<32x32xbf16>, vector<8x32xf32> -> vector<8x32xf32>
    %c1_179 = arith.constant 1 : index
    %c0_180 = arith.constant 0 : index
    %c0_181 = arith.constant 0 : index
    %239 = vector.load %arg8[%c1_179, %c0_180, %c0_181] : memref<4x32x32xbf16, #tpu.memory_space<vmem>>, vector<1x32x32xbf16>
    %240 = vector.shape_cast %239 : vector<1x32x32xbf16> to vector<32x32xbf16>
    %cst_182 = arith.constant dense<0.000000e+00> : vector<8x32xf32>
    %241 = tpu.matmul %128, %240, %cst_182 {dimension_numbers = #tpu.dot_dimension_numbers<[1], [0], [0], [1], [0, 0, 1, 1], [], []>} : vector<8x32xbf16>, vector<32x32xbf16>, vector<8x32xf32> -> vector<8x32xf32>
    %242 = arith.addf %238, %241 : vector<8x32xf32>
    %c1_183 = arith.constant 1 : index
    %c0_184 = arith.constant 0 : index
    %c0_185 = arith.constant 0 : index
    %243 = vector.load %arg9[%c1_183, %c0_184, %c0_185] : memref<4x8x32xf32, #tpu.memory_space<vmem>>, vector<1x8x32xf32>
    %244 = vector.shape_cast %243 : vector<1x8x32xf32> to vector<8x32xf32>
    %245 = arith.addf %242, %244 : vector<8x32xf32>
    %246 = math.tanh %245 : vector<8x32xf32>
    %cst_186 = arith.constant 5.000000e-01 : f32
    %247 = vector.broadcast %cst_186 : f32 to vector<8x32xf32>
    %248 = arith.mulf %247, %246 : vector<8x32xf32>
    %cst_187 = arith.constant 5.000000e-01 : f32
    %249 = vector.broadcast %cst_187 : f32 to vector<8x32xf32>
    %250 = arith.addf %248, %249 : vector<8x32xf32>
    %c2_188 = arith.constant 2 : index
    %c0_189 = arith.constant 0 : index
    %c0_190 = arith.constant 0 : index
    %251 = vector.load %arg7[%c2_188, %c0_189, %c0_190] : memref<4x32x32xbf16, #tpu.memory_space<vmem>>, vector<1x32x32xbf16>
    %252 = vector.shape_cast %251 : vector<1x32x32xbf16> to vector<32x32xbf16>
    %cst_191 = arith.constant dense<0.000000e+00> : vector<8x32xf32>
    %253 = tpu.matmul %220, %252, %cst_191 {dimension_numbers = #tpu.dot_dimension_numbers<[1], [0], [0], [1], [0, 0, 1, 1], [], []>} : vector<8x32xbf16>, vector<32x32xbf16>, vector<8x32xf32> -> vector<8x32xf32>
    %c2_192 = arith.constant 2 : index
    %c0_193 = arith.constant 0 : index
    %c0_194 = arith.constant 0 : index
    %254 = vector.load %arg8[%c2_192, %c0_193, %c0_194] : memref<4x32x32xbf16, #tpu.memory_space<vmem>>, vector<1x32x32xbf16>
    %255 = vector.shape_cast %254 : vector<1x32x32xbf16> to vector<32x32xbf16>
    %cst_195 = arith.constant dense<0.000000e+00> : vector<8x32xf32>
    %256 = tpu.matmul %128, %255, %cst_195 {dimension_numbers = #tpu.dot_dimension_numbers<[1], [0], [0], [1], [0, 0, 1, 1], [], []>} : vector<8x32xbf16>, vector<32x32xbf16>, vector<8x32xf32> -> vector<8x32xf32>
    %257 = arith.addf %253, %256 : vector<8x32xf32>
    %c2_196 = arith.constant 2 : index
    %c0_197 = arith.constant 0 : index
    %c0_198 = arith.constant 0 : index
    %258 = vector.load %arg9[%c2_196, %c0_197, %c0_198] : memref<4x8x32xf32, #tpu.memory_space<vmem>>, vector<1x8x32xf32>
    %259 = vector.shape_cast %258 : vector<1x8x32xf32> to vector<8x32xf32>
    %260 = arith.addf %257, %259 : vector<8x32xf32>
    %261 = math.tanh %260 : vector<8x32xf32>
    %c3_199 = arith.constant 3 : index
    %c0_200 = arith.constant 0 : index
    %c0_201 = arith.constant 0 : index
    %262 = vector.load %arg7[%c3_199, %c0_200, %c0_201] : memref<4x32x32xbf16, #tpu.memory_space<vmem>>, vector<1x32x32xbf16>
    %263 = vector.shape_cast %262 : vector<1x32x32xbf16> to vector<32x32xbf16>
    %cst_202 = arith.constant dense<0.000000e+00> : vector<8x32xf32>
    %264 = tpu.matmul %220, %263, %cst_202 {dimension_numbers = #tpu.dot_dimension_numbers<[1], [0], [0], [1], [0, 0, 1, 1], [], []>} : vector<8x32xbf16>, vector<32x32xbf16>, vector<8x32xf32> -> vector<8x32xf32>
    %c3_203 = arith.constant 3 : index
    %c0_204 = arith.constant 0 : index
    %c0_205 = arith.constant 0 : index
    %265 = vector.load %arg8[%c3_203, %c0_204, %c0_205] : memref<4x32x32xbf16, #tpu.memory_space<vmem>>, vector<1x32x32xbf16>
    %266 = vector.shape_cast %265 : vector<1x32x32xbf16> to vector<32x32xbf16>
    %cst_206 = arith.constant dense<0.000000e+00> : vector<8x32xf32>
    %267 = tpu.matmul %128, %266, %cst_206 {dimension_numbers = #tpu.dot_dimension_numbers<[1], [0], [0], [1], [0, 0, 1, 1], [], []>} : vector<8x32xbf16>, vector<32x32xbf16>, vector<8x32xf32> -> vector<8x32xf32>
    %268 = arith.addf %264, %267 : vector<8x32xf32>
    %c3_207 = arith.constant 3 : index
    %c0_208 = arith.constant 0 : index
    %c0_209 = arith.constant 0 : index
    %269 = vector.load %arg9[%c3_207, %c0_208, %c0_209] : memref<4x8x32xf32, #tpu.memory_space<vmem>>, vector<1x8x32xf32>
    %270 = vector.shape_cast %269 : vector<1x8x32xf32> to vector<8x32xf32>
    %271 = arith.addf %268, %270 : vector<8x32xf32>
    %272 = math.tanh %271 : vector<8x32xf32>
    %cst_210 = arith.constant 5.000000e-01 : f32
    %273 = vector.broadcast %cst_210 : f32 to vector<8x32xf32>
    %274 = arith.mulf %273, %272 : vector<8x32xf32>
    %cst_211 = arith.constant 5.000000e-01 : f32
    %275 = vector.broadcast %cst_211 : f32 to vector<8x32xf32>
    %276 = arith.addf %274, %275 : vector<8x32xf32>
    %277 = arith.mulf %250, %125 : vector<8x32xf32>
    %278 = arith.mulf %235, %261 : vector<8x32xf32>
    %279 = arith.addf %277, %278 : vector<8x32xf32>
    %280 = math.tanh %279 : vector<8x32xf32>
    %281 = arith.mulf %276, %280 : vector<8x32xf32>
    %282 = arith.truncf %281 : vector<8x32xf32> to vector<8x32xbf16>
    %c0_212 = arith.constant 0 : index
    %c0_213 = arith.constant 0 : index
    %283 = vector.load %arg2[%c0_212, %c0_213] : memref<32x128xf32, #tpu.memory_space<vmem>>, vector<32x128xf32>
    %cst_214 = arith.constant dense<0.000000e+00> : vector<8x128xf32>
    %284 = tpu.matmul %281, %283, %cst_214 {dimension_numbers = #tpu.dot_dimension_numbers<[1], [0], [0], [1], [0, 0, 1, 1], [], []>} : vector<8x32xf32>, vector<32x128xf32>, vector<8x128xf32> -> vector<8x128xf32>
    %c0_215 = arith.constant 0 : index
    %c0_216 = arith.constant 0 : index
    %285 = vector.load %arg3[%c0_215, %c0_216] : memref<8x128xf32, #tpu.memory_space<vmem>>, vector<8x128xf32>
    %286 = arith.addf %284, %285 : vector<8x128xf32>
    %287 = tpu.iota {dimensions = array<i32: 1>} : vector<8x128xi32>
    %288 = tpu.bitcast %286 : vector<8x128xf32> -> vector<8x128xi32>
    %c0_i32_217 = arith.constant 0 : i32
    %289 = vector.broadcast %c0_i32_217 : i32 to vector<8x128xi32>
    %290 = arith.cmpi slt, %288, %289 : vector<8x128xi32>
    %c-2147483648_i32_218 = arith.constant -2147483648 : i32
    %291 = vector.broadcast %c-2147483648_i32_218 : i32 to vector<8x128xi32>
    %292 = arith.subi %291, %288 : vector<8x128xi32>
    %293 = arith.select %290, %292, %288 : vector<8x128xi1>, vector<8x128xi32>
    %c-128_i32_219 = arith.constant -128 : i32
    %294 = vector.broadcast %c-128_i32_219 : i32 to vector<8x128xi32>
    %295 = arith.andi %293, %294 : vector<8x128xi32>
    %c127_i32_220 = arith.constant 127 : i32
    %296 = vector.broadcast %c127_i32_220 : i32 to vector<8x128xi32>
    %297 = arith.subi %296, %287 : vector<8x128xi32>
    %298 = arith.ori %295, %297 : vector<8x128xi32>
    %cst_221 = arith.constant dense<-2147483648> : vector<8xi32>
    %299 = vector.multi_reduction <maxsi>, %298, %cst_221 [1] : vector<8x128xi32> to vector<8xi32>
    %300 = vector.shape_cast %299 : vector<8xi32> to vector<8x1xi32>
    %c127_i32_222 = arith.constant 127 : i32
    %301 = vector.broadcast %c127_i32_222 : i32 to vector<8x1xi32>
    %302 = arith.andi %300, %301 : vector<8x1xi32>
    %c127_i32_223 = arith.constant 127 : i32
    %303 = vector.broadcast %c127_i32_223 : i32 to vector<8x1xi32>
    %304 = arith.subi %303, %302 : vector<8x1xi32>
    %305 = vector.broadcast %304 : vector<8x1xi32> to vector<8x128xi32>
    %306 = arith.cmpi eq, %287, %305 : vector<8x128xi32>
    %307 = arith.extui %306 : vector<8x128xi1> to vector<8x128xi32>
    %308 = arith.sitofp %307 : vector<8x128xi32> to vector<8x128xf32>
    %309 = arith.truncf %308 : vector<8x128xf32> to vector<8x128xbf16>
    %c0_224 = arith.constant 0 : index
    %c0_225 = arith.constant 0 : index
    %310 = vector.load %arg1[%c0_224, %c0_225] : memref<128x32xbf16, #tpu.memory_space<vmem>>, vector<128x32xbf16>
    %cst_226 = arith.constant dense<0.000000e+00> : vector<8x32xf32>
    %311 = tpu.matmul %309, %310, %cst_226 {dimension_numbers = #tpu.dot_dimension_numbers<[1], [0], [0], [1], [0, 0, 1, 1], [], []>} : vector<8x128xbf16>, vector<128x32xbf16>, vector<8x32xf32> -> vector<8x32xf32>
    %312 = arith.truncf %311 : vector<8x32xf32> to vector<8x32xbf16>
    %c0_227 = arith.constant 0 : index
    %c0_228 = arith.constant 0 : index
    %c0_229 = arith.constant 0 : index
    %313 = vector.load %arg4[%c0_227, %c0_228, %c0_229] : memref<4x32x32xbf16, #tpu.memory_space<vmem>>, vector<1x32x32xbf16>
    %314 = vector.shape_cast %313 : vector<1x32x32xbf16> to vector<32x32xbf16>
    %cst_230 = arith.constant dense<0.000000e+00> : vector<8x32xf32>
    %315 = tpu.matmul %312, %314, %cst_230 {dimension_numbers = #tpu.dot_dimension_numbers<[1], [0], [0], [1], [0, 0, 1, 1], [], []>} : vector<8x32xbf16>, vector<32x32xbf16>, vector<8x32xf32> -> vector<8x32xf32>
    %c0_231 = arith.constant 0 : index
    %c0_232 = arith.constant 0 : index
    %c0_233 = arith.constant 0 : index
    %316 = vector.load %arg5[%c0_231, %c0_232, %c0_233] : memref<4x32x32xbf16, #tpu.memory_space<vmem>>, vector<1x32x32xbf16>
    %317 = vector.shape_cast %316 : vector<1x32x32xbf16> to vector<32x32xbf16>
    %cst_234 = arith.constant dense<0.000000e+00> : vector<8x32xf32>
    %318 = tpu.matmul %220, %317, %cst_234 {dimension_numbers = #tpu.dot_dimension_numbers<[1], [0], [0], [1], [0, 0, 1, 1], [], []>} : vector<8x32xbf16>, vector<32x32xbf16>, vector<8x32xf32> -> vector<8x32xf32>
    %319 = arith.addf %315, %318 : vector<8x32xf32>
    %c0_235 = arith.constant 0 : index
    %c0_236 = arith.constant 0 : index
    %c0_237 = arith.constant 0 : index
    %320 = vector.load %arg6[%c0_235, %c0_236, %c0_237] : memref<4x8x32xf32, #tpu.memory_space<vmem>>, vector<1x8x32xf32>
    %321 = vector.shape_cast %320 : vector<1x8x32xf32> to vector<8x32xf32>
    %322 = arith.addf %319, %321 : vector<8x32xf32>
    %323 = math.tanh %322 : vector<8x32xf32>
    %cst_238 = arith.constant 5.000000e-01 : f32
    %324 = vector.broadcast %cst_238 : f32 to vector<8x32xf32>
    %325 = arith.mulf %324, %323 : vector<8x32xf32>
    %cst_239 = arith.constant 5.000000e-01 : f32
    %326 = vector.broadcast %cst_239 : f32 to vector<8x32xf32>
    %327 = arith.addf %325, %326 : vector<8x32xf32>
    %c1_240 = arith.constant 1 : index
    %c0_241 = arith.constant 0 : index
    %c0_242 = arith.constant 0 : index
    %328 = vector.load %arg4[%c1_240, %c0_241, %c0_242] : memref<4x32x32xbf16, #tpu.memory_space<vmem>>, vector<1x32x32xbf16>
    %329 = vector.shape_cast %328 : vector<1x32x32xbf16> to vector<32x32xbf16>
    %cst_243 = arith.constant dense<0.000000e+00> : vector<8x32xf32>
    %330 = tpu.matmul %312, %329, %cst_243 {dimension_numbers = #tpu.dot_dimension_numbers<[1], [0], [0], [1], [0, 0, 1, 1], [], []>} : vector<8x32xbf16>, vector<32x32xbf16>, vector<8x32xf32> -> vector<8x32xf32>
    %c1_244 = arith.constant 1 : index
    %c0_245 = arith.constant 0 : index
    %c0_246 = arith.constant 0 : index
    %331 = vector.load %arg5[%c1_244, %c0_245, %c0_246] : memref<4x32x32xbf16, #tpu.memory_space<vmem>>, vector<1x32x32xbf16>
    %332 = vector.shape_cast %331 : vector<1x32x32xbf16> to vector<32x32xbf16>
    %cst_247 = arith.constant dense<0.000000e+00> : vector<8x32xf32>
    %333 = tpu.matmul %220, %332, %cst_247 {dimension_numbers = #tpu.dot_dimension_numbers<[1], [0], [0], [1], [0, 0, 1, 1], [], []>} : vector<8x32xbf16>, vector<32x32xbf16>, vector<8x32xf32> -> vector<8x32xf32>
    %334 = arith.addf %330, %333 : vector<8x32xf32>
    %c1_248 = arith.constant 1 : index
    %c0_249 = arith.constant 0 : index
    %c0_250 = arith.constant 0 : index
    %335 = vector.load %arg6[%c1_248, %c0_249, %c0_250] : memref<4x8x32xf32, #tpu.memory_space<vmem>>, vector<1x8x32xf32>
    %336 = vector.shape_cast %335 : vector<1x8x32xf32> to vector<8x32xf32>
    %337 = arith.addf %334, %336 : vector<8x32xf32>
    %338 = math.tanh %337 : vector<8x32xf32>
    %cst_251 = arith.constant 5.000000e-01 : f32
    %339 = vector.broadcast %cst_251 : f32 to vector<8x32xf32>
    %340 = arith.mulf %339, %338 : vector<8x32xf32>
    %cst_252 = arith.constant 5.000000e-01 : f32
    %341 = vector.broadcast %cst_252 : f32 to vector<8x32xf32>
    %342 = arith.addf %340, %341 : vector<8x32xf32>
    %c2_253 = arith.constant 2 : index
    %c0_254 = arith.constant 0 : index
    %c0_255 = arith.constant 0 : index
    %343 = vector.load %arg4[%c2_253, %c0_254, %c0_255] : memref<4x32x32xbf16, #tpu.memory_space<vmem>>, vector<1x32x32xbf16>
    %344 = vector.shape_cast %343 : vector<1x32x32xbf16> to vector<32x32xbf16>
    %cst_256 = arith.constant dense<0.000000e+00> : vector<8x32xf32>
    %345 = tpu.matmul %312, %344, %cst_256 {dimension_numbers = #tpu.dot_dimension_numbers<[1], [0], [0], [1], [0, 0, 1, 1], [], []>} : vector<8x32xbf16>, vector<32x32xbf16>, vector<8x32xf32> -> vector<8x32xf32>
    %c2_257 = arith.constant 2 : index
    %c0_258 = arith.constant 0 : index
    %c0_259 = arith.constant 0 : index
    %346 = vector.load %arg5[%c2_257, %c0_258, %c0_259] : memref<4x32x32xbf16, #tpu.memory_space<vmem>>, vector<1x32x32xbf16>
    %347 = vector.shape_cast %346 : vector<1x32x32xbf16> to vector<32x32xbf16>
    %cst_260 = arith.constant dense<0.000000e+00> : vector<8x32xf32>
    %348 = tpu.matmul %220, %347, %cst_260 {dimension_numbers = #tpu.dot_dimension_numbers<[1], [0], [0], [1], [0, 0, 1, 1], [], []>} : vector<8x32xbf16>, vector<32x32xbf16>, vector<8x32xf32> -> vector<8x32xf32>
    %349 = arith.addf %345, %348 : vector<8x32xf32>
    %c2_261 = arith.constant 2 : index
    %c0_262 = arith.constant 0 : index
    %c0_263 = arith.constant 0 : index
    %350 = vector.load %arg6[%c2_261, %c0_262, %c0_263] : memref<4x8x32xf32, #tpu.memory_space<vmem>>, vector<1x8x32xf32>
    %351 = vector.shape_cast %350 : vector<1x8x32xf32> to vector<8x32xf32>
    %352 = arith.addf %349, %351 : vector<8x32xf32>
    %353 = math.tanh %352 : vector<8x32xf32>
    %c3_264 = arith.constant 3 : index
    %c0_265 = arith.constant 0 : index
    %c0_266 = arith.constant 0 : index
    %354 = vector.load %arg4[%c3_264, %c0_265, %c0_266] : memref<4x32x32xbf16, #tpu.memory_space<vmem>>, vector<1x32x32xbf16>
    %355 = vector.shape_cast %354 : vector<1x32x32xbf16> to vector<32x32xbf16>
    %cst_267 = arith.constant dense<0.000000e+00> : vector<8x32xf32>
    %356 = tpu.matmul %312, %355, %cst_267 {dimension_numbers = #tpu.dot_dimension_numbers<[1], [0], [0], [1], [0, 0, 1, 1], [], []>} : vector<8x32xbf16>, vector<32x32xbf16>, vector<8x32xf32> -> vector<8x32xf32>
    %c3_268 = arith.constant 3 : index
    %c0_269 = arith.constant 0 : index
    %c0_270 = arith.constant 0 : index
    %357 = vector.load %arg5[%c3_268, %c0_269, %c0_270] : memref<4x32x32xbf16, #tpu.memory_space<vmem>>, vector<1x32x32xbf16>
    %358 = vector.shape_cast %357 : vector<1x32x32xbf16> to vector<32x32xbf16>
    %cst_271 = arith.constant dense<0.000000e+00> : vector<8x32xf32>
    %359 = tpu.matmul %220, %358, %cst_271 {dimension_numbers = #tpu.dot_dimension_numbers<[1], [0], [0], [1], [0, 0, 1, 1], [], []>} : vector<8x32xbf16>, vector<32x32xbf16>, vector<8x32xf32> -> vector<8x32xf32>
    %360 = arith.addf %356, %359 : vector<8x32xf32>
    %c3_272 = arith.constant 3 : index
    %c0_273 = arith.constant 0 : index
    %c0_274 = arith.constant 0 : index
    %361 = vector.load %arg6[%c3_272, %c0_273, %c0_274] : memref<4x8x32xf32, #tpu.memory_space<vmem>>, vector<1x8x32xf32>
    %362 = vector.shape_cast %361 : vector<1x8x32xf32> to vector<8x32xf32>
    %363 = arith.addf %360, %362 : vector<8x32xf32>
    %364 = math.tanh %363 : vector<8x32xf32>
    %cst_275 = arith.constant 5.000000e-01 : f32
    %365 = vector.broadcast %cst_275 : f32 to vector<8x32xf32>
    %366 = arith.mulf %365, %364 : vector<8x32xf32>
    %cst_276 = arith.constant 5.000000e-01 : f32
    %367 = vector.broadcast %cst_276 : f32 to vector<8x32xf32>
    %368 = arith.addf %366, %367 : vector<8x32xf32>
    %369 = arith.mulf %342, %217 : vector<8x32xf32>
    %370 = arith.mulf %327, %353 : vector<8x32xf32>
    %371 = arith.addf %369, %370 : vector<8x32xf32>
    %372 = math.tanh %371 : vector<8x32xf32>
    %373 = arith.mulf %368, %372 : vector<8x32xf32>
    %374 = arith.truncf %373 : vector<8x32xf32> to vector<8x32xbf16>
    %c0_277 = arith.constant 0 : index
    %c0_278 = arith.constant 0 : index
    %c0_279 = arith.constant 0 : index
    %375 = vector.load %arg7[%c0_277, %c0_278, %c0_279] : memref<4x32x32xbf16, #tpu.memory_space<vmem>>, vector<1x32x32xbf16>
    %376 = vector.shape_cast %375 : vector<1x32x32xbf16> to vector<32x32xbf16>
    %cst_280 = arith.constant dense<0.000000e+00> : vector<8x32xf32>
    %377 = tpu.matmul %374, %376, %cst_280 {dimension_numbers = #tpu.dot_dimension_numbers<[1], [0], [0], [1], [0, 0, 1, 1], [], []>} : vector<8x32xbf16>, vector<32x32xbf16>, vector<8x32xf32> -> vector<8x32xf32>
    %c0_281 = arith.constant 0 : index
    %c0_282 = arith.constant 0 : index
    %c0_283 = arith.constant 0 : index
    %378 = vector.load %arg8[%c0_281, %c0_282, %c0_283] : memref<4x32x32xbf16, #tpu.memory_space<vmem>>, vector<1x32x32xbf16>
    %379 = vector.shape_cast %378 : vector<1x32x32xbf16> to vector<32x32xbf16>
    %cst_284 = arith.constant dense<0.000000e+00> : vector<8x32xf32>
    %380 = tpu.matmul %282, %379, %cst_284 {dimension_numbers = #tpu.dot_dimension_numbers<[1], [0], [0], [1], [0, 0, 1, 1], [], []>} : vector<8x32xbf16>, vector<32x32xbf16>, vector<8x32xf32> -> vector<8x32xf32>
    %381 = arith.addf %377, %380 : vector<8x32xf32>
    %c0_285 = arith.constant 0 : index
    %c0_286 = arith.constant 0 : index
    %c0_287 = arith.constant 0 : index
    %382 = vector.load %arg9[%c0_285, %c0_286, %c0_287] : memref<4x8x32xf32, #tpu.memory_space<vmem>>, vector<1x8x32xf32>
    %383 = vector.shape_cast %382 : vector<1x8x32xf32> to vector<8x32xf32>
    %384 = arith.addf %381, %383 : vector<8x32xf32>
    %385 = math.tanh %384 : vector<8x32xf32>
    %cst_288 = arith.constant 5.000000e-01 : f32
    %386 = vector.broadcast %cst_288 : f32 to vector<8x32xf32>
    %387 = arith.mulf %386, %385 : vector<8x32xf32>
    %cst_289 = arith.constant 5.000000e-01 : f32
    %388 = vector.broadcast %cst_289 : f32 to vector<8x32xf32>
    %389 = arith.addf %387, %388 : vector<8x32xf32>
    %c1_290 = arith.constant 1 : index
    %c0_291 = arith.constant 0 : index
    %c0_292 = arith.constant 0 : index
    %390 = vector.load %arg7[%c1_290, %c0_291, %c0_292] : memref<4x32x32xbf16, #tpu.memory_space<vmem>>, vector<1x32x32xbf16>
    %391 = vector.shape_cast %390 : vector<1x32x32xbf16> to vector<32x32xbf16>
    %cst_293 = arith.constant dense<0.000000e+00> : vector<8x32xf32>
    %392 = tpu.matmul %374, %391, %cst_293 {dimension_numbers = #tpu.dot_dimension_numbers<[1], [0], [0], [1], [0, 0, 1, 1], [], []>} : vector<8x32xbf16>, vector<32x32xbf16>, vector<8x32xf32> -> vector<8x32xf32>
    %c1_294 = arith.constant 1 : index
    %c0_295 = arith.constant 0 : index
    %c0_296 = arith.constant 0 : index
    %393 = vector.load %arg8[%c1_294, %c0_295, %c0_296] : memref<4x32x32xbf16, #tpu.memory_space<vmem>>, vector<1x32x32xbf16>
    %394 = vector.shape_cast %393 : vector<1x32x32xbf16> to vector<32x32xbf16>
    %cst_297 = arith.constant dense<0.000000e+00> : vector<8x32xf32>
    %395 = tpu.matmul %282, %394, %cst_297 {dimension_numbers = #tpu.dot_dimension_numbers<[1], [0], [0], [1], [0, 0, 1, 1], [], []>} : vector<8x32xbf16>, vector<32x32xbf16>, vector<8x32xf32> -> vector<8x32xf32>
    %396 = arith.addf %392, %395 : vector<8x32xf32>
    %c1_298 = arith.constant 1 : index
    %c0_299 = arith.constant 0 : index
    %c0_300 = arith.constant 0 : index
    %397 = vector.load %arg9[%c1_298, %c0_299, %c0_300] : memref<4x8x32xf32, #tpu.memory_space<vmem>>, vector<1x8x32xf32>
    %398 = vector.shape_cast %397 : vector<1x8x32xf32> to vector<8x32xf32>
    %399 = arith.addf %396, %398 : vector<8x32xf32>
    %400 = math.tanh %399 : vector<8x32xf32>
    %cst_301 = arith.constant 5.000000e-01 : f32
    %401 = vector.broadcast %cst_301 : f32 to vector<8x32xf32>
    %402 = arith.mulf %401, %400 : vector<8x32xf32>
    %cst_302 = arith.constant 5.000000e-01 : f32
    %403 = vector.broadcast %cst_302 : f32 to vector<8x32xf32>
    %404 = arith.addf %402, %403 : vector<8x32xf32>
    %c2_303 = arith.constant 2 : index
    %c0_304 = arith.constant 0 : index
    %c0_305 = arith.constant 0 : index
    %405 = vector.load %arg7[%c2_303, %c0_304, %c0_305] : memref<4x32x32xbf16, #tpu.memory_space<vmem>>, vector<1x32x32xbf16>
    %406 = vector.shape_cast %405 : vector<1x32x32xbf16> to vector<32x32xbf16>
    %cst_306 = arith.constant dense<0.000000e+00> : vector<8x32xf32>
    %407 = tpu.matmul %374, %406, %cst_306 {dimension_numbers = #tpu.dot_dimension_numbers<[1], [0], [0], [1], [0, 0, 1, 1], [], []>} : vector<8x32xbf16>, vector<32x32xbf16>, vector<8x32xf32> -> vector<8x32xf32>
    %c2_307 = arith.constant 2 : index
    %c0_308 = arith.constant 0 : index
    %c0_309 = arith.constant 0 : index
    %408 = vector.load %arg8[%c2_307, %c0_308, %c0_309] : memref<4x32x32xbf16, #tpu.memory_space<vmem>>, vector<1x32x32xbf16>
    %409 = vector.shape_cast %408 : vector<1x32x32xbf16> to vector<32x32xbf16>
    %cst_310 = arith.constant dense<0.000000e+00> : vector<8x32xf32>
    %410 = tpu.matmul %282, %409, %cst_310 {dimension_numbers = #tpu.dot_dimension_numbers<[1], [0], [0], [1], [0, 0, 1, 1], [], []>} : vector<8x32xbf16>, vector<32x32xbf16>, vector<8x32xf32> -> vector<8x32xf32>
    %411 = arith.addf %407, %410 : vector<8x32xf32>
    %c2_311 = arith.constant 2 : index
    %c0_312 = arith.constant 0 : index
    %c0_313 = arith.constant 0 : index
    %412 = vector.load %arg9[%c2_311, %c0_312, %c0_313] : memref<4x8x32xf32, #tpu.memory_space<vmem>>, vector<1x8x32xf32>
    %413 = vector.shape_cast %412 : vector<1x8x32xf32> to vector<8x32xf32>
    %414 = arith.addf %411, %413 : vector<8x32xf32>
    %415 = math.tanh %414 : vector<8x32xf32>
    %c3_314 = arith.constant 3 : index
    %c0_315 = arith.constant 0 : index
    %c0_316 = arith.constant 0 : index
    %416 = vector.load %arg7[%c3_314, %c0_315, %c0_316] : memref<4x32x32xbf16, #tpu.memory_space<vmem>>, vector<1x32x32xbf16>
    %417 = vector.shape_cast %416 : vector<1x32x32xbf16> to vector<32x32xbf16>
    %cst_317 = arith.constant dense<0.000000e+00> : vector<8x32xf32>
    %418 = tpu.matmul %374, %417, %cst_317 {dimension_numbers = #tpu.dot_dimension_numbers<[1], [0], [0], [1], [0, 0, 1, 1], [], []>} : vector<8x32xbf16>, vector<32x32xbf16>, vector<8x32xf32> -> vector<8x32xf32>
    %c3_318 = arith.constant 3 : index
    %c0_319 = arith.constant 0 : index
    %c0_320 = arith.constant 0 : index
    %419 = vector.load %arg8[%c3_318, %c0_319, %c0_320] : memref<4x32x32xbf16, #tpu.memory_space<vmem>>, vector<1x32x32xbf16>
    %420 = vector.shape_cast %419 : vector<1x32x32xbf16> to vector<32x32xbf16>
    %cst_321 = arith.constant dense<0.000000e+00> : vector<8x32xf32>
    %421 = tpu.matmul %282, %420, %cst_321 {dimension_numbers = #tpu.dot_dimension_numbers<[1], [0], [0], [1], [0, 0, 1, 1], [], []>} : vector<8x32xbf16>, vector<32x32xbf16>, vector<8x32xf32> -> vector<8x32xf32>
    %422 = arith.addf %418, %421 : vector<8x32xf32>
    %c3_322 = arith.constant 3 : index
    %c0_323 = arith.constant 0 : index
    %c0_324 = arith.constant 0 : index
    %423 = vector.load %arg9[%c3_322, %c0_323, %c0_324] : memref<4x8x32xf32, #tpu.memory_space<vmem>>, vector<1x8x32xf32>
    %424 = vector.shape_cast %423 : vector<1x8x32xf32> to vector<8x32xf32>
    %425 = arith.addf %422, %424 : vector<8x32xf32>
    %426 = math.tanh %425 : vector<8x32xf32>
    %cst_325 = arith.constant 5.000000e-01 : f32
    %427 = vector.broadcast %cst_325 : f32 to vector<8x32xf32>
    %428 = arith.mulf %427, %426 : vector<8x32xf32>
    %cst_326 = arith.constant 5.000000e-01 : f32
    %429 = vector.broadcast %cst_326 : f32 to vector<8x32xf32>
    %430 = arith.addf %428, %429 : vector<8x32xf32>
    %431 = arith.mulf %404, %279 : vector<8x32xf32>
    %432 = arith.mulf %389, %415 : vector<8x32xf32>
    %433 = arith.addf %431, %432 : vector<8x32xf32>
    %434 = math.tanh %433 : vector<8x32xf32>
    %435 = arith.mulf %430, %434 : vector<8x32xf32>
    %436 = arith.truncf %435 : vector<8x32xf32> to vector<8x32xbf16>
    %c0_327 = arith.constant 0 : index
    %c0_328 = arith.constant 0 : index
    %437 = vector.load %arg2[%c0_327, %c0_328] : memref<32x128xf32, #tpu.memory_space<vmem>>, vector<32x128xf32>
    %cst_329 = arith.constant dense<0.000000e+00> : vector<8x128xf32>
    %438 = tpu.matmul %435, %437, %cst_329 {dimension_numbers = #tpu.dot_dimension_numbers<[1], [0], [0], [1], [0, 0, 1, 1], [], []>} : vector<8x32xf32>, vector<32x128xf32>, vector<8x128xf32> -> vector<8x128xf32>
    %c0_330 = arith.constant 0 : index
    %c0_331 = arith.constant 0 : index
    %439 = vector.load %arg3[%c0_330, %c0_331] : memref<8x128xf32, #tpu.memory_space<vmem>>, vector<8x128xf32>
    %440 = arith.addf %438, %439 : vector<8x128xf32>
    %441 = tpu.iota {dimensions = array<i32: 1>} : vector<8x128xi32>
    %442 = tpu.bitcast %440 : vector<8x128xf32> -> vector<8x128xi32>
    %c0_i32_332 = arith.constant 0 : i32
    %443 = vector.broadcast %c0_i32_332 : i32 to vector<8x128xi32>
    %444 = arith.cmpi slt, %442, %443 : vector<8x128xi32>
    %c-2147483648_i32_333 = arith.constant -2147483648 : i32
    %445 = vector.broadcast %c-2147483648_i32_333 : i32 to vector<8x128xi32>
    %446 = arith.subi %445, %442 : vector<8x128xi32>
    %447 = arith.select %444, %446, %442 : vector<8x128xi1>, vector<8x128xi32>
    %c-128_i32_334 = arith.constant -128 : i32
    %448 = vector.broadcast %c-128_i32_334 : i32 to vector<8x128xi32>
    %449 = arith.andi %447, %448 : vector<8x128xi32>
    %c127_i32_335 = arith.constant 127 : i32
    %450 = vector.broadcast %c127_i32_335 : i32 to vector<8x128xi32>
    %451 = arith.subi %450, %441 : vector<8x128xi32>
    %452 = arith.ori %449, %451 : vector<8x128xi32>
    %cst_336 = arith.constant dense<-2147483648> : vector<8xi32>
    %453 = vector.multi_reduction <maxsi>, %452, %cst_336 [1] : vector<8x128xi32> to vector<8xi32>
    %454 = vector.shape_cast %453 : vector<8xi32> to vector<8x1xi32>
    %c127_i32_337 = arith.constant 127 : i32
    %455 = vector.broadcast %c127_i32_337 : i32 to vector<8x1xi32>
    %456 = arith.andi %454, %455 : vector<8x1xi32>
    %c127_i32_338 = arith.constant 127 : i32
    %457 = vector.broadcast %c127_i32_338 : i32 to vector<8x1xi32>
    %458 = arith.subi %457, %456 : vector<8x1xi32>
    %459 = vector.broadcast %458 : vector<8x1xi32> to vector<8x128xi32>
    %460 = arith.cmpi eq, %441, %459 : vector<8x128xi32>
    %461 = arith.extui %460 : vector<8x128xi1> to vector<8x128xi32>
    %462 = arith.sitofp %461 : vector<8x128xi32> to vector<8x128xf32>
    %463 = arith.truncf %462 : vector<8x128xf32> to vector<8x128xbf16>
    %c0_339 = arith.constant 0 : index
    %c0_340 = arith.constant 0 : index
    %464 = vector.load %arg1[%c0_339, %c0_340] : memref<128x32xbf16, #tpu.memory_space<vmem>>, vector<128x32xbf16>
    %cst_341 = arith.constant dense<0.000000e+00> : vector<8x32xf32>
    %465 = tpu.matmul %463, %464, %cst_341 {dimension_numbers = #tpu.dot_dimension_numbers<[1], [0], [0], [1], [0, 0, 1, 1], [], []>} : vector<8x128xbf16>, vector<128x32xbf16>, vector<8x32xf32> -> vector<8x32xf32>
    %466 = arith.truncf %465 : vector<8x32xf32> to vector<8x32xbf16>
    %c0_342 = arith.constant 0 : index
    %c0_343 = arith.constant 0 : index
    %c0_344 = arith.constant 0 : index
    %467 = vector.load %arg4[%c0_342, %c0_343, %c0_344] : memref<4x32x32xbf16, #tpu.memory_space<vmem>>, vector<1x32x32xbf16>
    %468 = vector.shape_cast %467 : vector<1x32x32xbf16> to vector<32x32xbf16>
    %cst_345 = arith.constant dense<0.000000e+00> : vector<8x32xf32>
    %469 = tpu.matmul %466, %468, %cst_345 {dimension_numbers = #tpu.dot_dimension_numbers<[1], [0], [0], [1], [0, 0, 1, 1], [], []>} : vector<8x32xbf16>, vector<32x32xbf16>, vector<8x32xf32> -> vector<8x32xf32>
    %c0_346 = arith.constant 0 : index
    %c0_347 = arith.constant 0 : index
    %c0_348 = arith.constant 0 : index
    %470 = vector.load %arg5[%c0_346, %c0_347, %c0_348] : memref<4x32x32xbf16, #tpu.memory_space<vmem>>, vector<1x32x32xbf16>
    %471 = vector.shape_cast %470 : vector<1x32x32xbf16> to vector<32x32xbf16>
    %cst_349 = arith.constant dense<0.000000e+00> : vector<8x32xf32>
    %472 = tpu.matmul %374, %471, %cst_349 {dimension_numbers = #tpu.dot_dimension_numbers<[1], [0], [0], [1], [0, 0, 1, 1], [], []>} : vector<8x32xbf16>, vector<32x32xbf16>, vector<8x32xf32> -> vector<8x32xf32>
    %473 = arith.addf %469, %472 : vector<8x32xf32>
    %c0_350 = arith.constant 0 : index
    %c0_351 = arith.constant 0 : index
    %c0_352 = arith.constant 0 : index
    %474 = vector.load %arg6[%c0_350, %c0_351, %c0_352] : memref<4x8x32xf32, #tpu.memory_space<vmem>>, vector<1x8x32xf32>
    %475 = vector.shape_cast %474 : vector<1x8x32xf32> to vector<8x32xf32>
    %476 = arith.addf %473, %475 : vector<8x32xf32>
    %477 = math.tanh %476 : vector<8x32xf32>
    %cst_353 = arith.constant 5.000000e-01 : f32
    %478 = vector.broadcast %cst_353 : f32 to vector<8x32xf32>
    %479 = arith.mulf %478, %477 : vector<8x32xf32>
    %cst_354 = arith.constant 5.000000e-01 : f32
    %480 = vector.broadcast %cst_354 : f32 to vector<8x32xf32>
    %481 = arith.addf %479, %480 : vector<8x32xf32>
    %c1_355 = arith.constant 1 : index
    %c0_356 = arith.constant 0 : index
    %c0_357 = arith.constant 0 : index
    %482 = vector.load %arg4[%c1_355, %c0_356, %c0_357] : memref<4x32x32xbf16, #tpu.memory_space<vmem>>, vector<1x32x32xbf16>
    %483 = vector.shape_cast %482 : vector<1x32x32xbf16> to vector<32x32xbf16>
    %cst_358 = arith.constant dense<0.000000e+00> : vector<8x32xf32>
    %484 = tpu.matmul %466, %483, %cst_358 {dimension_numbers = #tpu.dot_dimension_numbers<[1], [0], [0], [1], [0, 0, 1, 1], [], []>} : vector<8x32xbf16>, vector<32x32xbf16>, vector<8x32xf32> -> vector<8x32xf32>
    %c1_359 = arith.constant 1 : index
    %c0_360 = arith.constant 0 : index
    %c0_361 = arith.constant 0 : index
    %485 = vector.load %arg5[%c1_359, %c0_360, %c0_361] : memref<4x32x32xbf16, #tpu.memory_space<vmem>>, vector<1x32x32xbf16>
    %486 = vector.shape_cast %485 : vector<1x32x32xbf16> to vector<32x32xbf16>
    %cst_362 = arith.constant dense<0.000000e+00> : vector<8x32xf32>
    %487 = tpu.matmul %374, %486, %cst_362 {dimension_numbers = #tpu.dot_dimension_numbers<[1], [0], [0], [1], [0, 0, 1, 1], [], []>} : vector<8x32xbf16>, vector<32x32xbf16>, vector<8x32xf32> -> vector<8x32xf32>
    %488 = arith.addf %484, %487 : vector<8x32xf32>
    %c1_363 = arith.constant 1 : index
    %c0_364 = arith.constant 0 : index
    %c0_365 = arith.constant 0 : index
    %489 = vector.load %arg6[%c1_363, %c0_364, %c0_365] : memref<4x8x32xf32, #tpu.memory_space<vmem>>, vector<1x8x32xf32>
    %490 = vector.shape_cast %489 : vector<1x8x32xf32> to vector<8x32xf32>
    %491 = arith.addf %488, %490 : vector<8x32xf32>
    %492 = math.tanh %491 : vector<8x32xf32>
    %cst_366 = arith.constant 5.000000e-01 : f32
    %493 = vector.broadcast %cst_366 : f32 to vector<8x32xf32>
    %494 = arith.mulf %493, %492 : vector<8x32xf32>
    %cst_367 = arith.constant 5.000000e-01 : f32
    %495 = vector.broadcast %cst_367 : f32 to vector<8x32xf32>
    %496 = arith.addf %494, %495 : vector<8x32xf32>
    %c2_368 = arith.constant 2 : index
    %c0_369 = arith.constant 0 : index
    %c0_370 = arith.constant 0 : index
    %497 = vector.load %arg4[%c2_368, %c0_369, %c0_370] : memref<4x32x32xbf16, #tpu.memory_space<vmem>>, vector<1x32x32xbf16>
    %498 = vector.shape_cast %497 : vector<1x32x32xbf16> to vector<32x32xbf16>
    %cst_371 = arith.constant dense<0.000000e+00> : vector<8x32xf32>
    %499 = tpu.matmul %466, %498, %cst_371 {dimension_numbers = #tpu.dot_dimension_numbers<[1], [0], [0], [1], [0, 0, 1, 1], [], []>} : vector<8x32xbf16>, vector<32x32xbf16>, vector<8x32xf32> -> vector<8x32xf32>
    %c2_372 = arith.constant 2 : index
    %c0_373 = arith.constant 0 : index
    %c0_374 = arith.constant 0 : index
    %500 = vector.load %arg5[%c2_372, %c0_373, %c0_374] : memref<4x32x32xbf16, #tpu.memory_space<vmem>>, vector<1x32x32xbf16>
    %501 = vector.shape_cast %500 : vector<1x32x32xbf16> to vector<32x32xbf16>
    %cst_375 = arith.constant dense<0.000000e+00> : vector<8x32xf32>
    %502 = tpu.matmul %374, %501, %cst_375 {dimension_numbers = #tpu.dot_dimension_numbers<[1], [0], [0], [1], [0, 0, 1, 1], [], []>} : vector<8x32xbf16>, vector<32x32xbf16>, vector<8x32xf32> -> vector<8x32xf32>
    %503 = arith.addf %499, %502 : vector<8x32xf32>
    %c2_376 = arith.constant 2 : index
    %c0_377 = arith.constant 0 : index
    %c0_378 = arith.constant 0 : index
    %504 = vector.load %arg6[%c2_376, %c0_377, %c0_378] : memref<4x8x32xf32, #tpu.memory_space<vmem>>, vector<1x8x32xf32>
    %505 = vector.shape_cast %504 : vector<1x8x32xf32> to vector<8x32xf32>
    %506 = arith.addf %503, %505 : vector<8x32xf32>
    %507 = math.tanh %506 : vector<8x32xf32>
    %c3_379 = arith.constant 3 : index
    %c0_380 = arith.constant 0 : index
    %c0_381 = arith.constant 0 : index
    %508 = vector.load %arg4[%c3_379, %c0_380, %c0_381] : memref<4x32x32xbf16, #tpu.memory_space<vmem>>, vector<1x32x32xbf16>
    %509 = vector.shape_cast %508 : vector<1x32x32xbf16> to vector<32x32xbf16>
    %cst_382 = arith.constant dense<0.000000e+00> : vector<8x32xf32>
    %510 = tpu.matmul %466, %509, %cst_382 {dimension_numbers = #tpu.dot_dimension_numbers<[1], [0], [0], [1], [0, 0, 1, 1], [], []>} : vector<8x32xbf16>, vector<32x32xbf16>, vector<8x32xf32> -> vector<8x32xf32>
    %c3_383 = arith.constant 3 : index
    %c0_384 = arith.constant 0 : index
    %c0_385 = arith.constant 0 : index
    %511 = vector.load %arg5[%c3_383, %c0_384, %c0_385] : memref<4x32x32xbf16, #tpu.memory_space<vmem>>, vector<1x32x32xbf16>
    %512 = vector.shape_cast %511 : vector<1x32x32xbf16> to vector<32x32xbf16>
    %cst_386 = arith.constant dense<0.000000e+00> : vector<8x32xf32>
    %513 = tpu.matmul %374, %512, %cst_386 {dimension_numbers = #tpu.dot_dimension_numbers<[1], [0], [0], [1], [0, 0, 1, 1], [], []>} : vector<8x32xbf16>, vector<32x32xbf16>, vector<8x32xf32> -> vector<8x32xf32>
    %514 = arith.addf %510, %513 : vector<8x32xf32>
    %c3_387 = arith.constant 3 : index
    %c0_388 = arith.constant 0 : index
    %c0_389 = arith.constant 0 : index
    %515 = vector.load %arg6[%c3_387, %c0_388, %c0_389] : memref<4x8x32xf32, #tpu.memory_space<vmem>>, vector<1x8x32xf32>
    %516 = vector.shape_cast %515 : vector<1x8x32xf32> to vector<8x32xf32>
    %517 = arith.addf %514, %516 : vector<8x32xf32>
    %518 = math.tanh %517 : vector<8x32xf32>
    %cst_390 = arith.constant 5.000000e-01 : f32
    %519 = vector.broadcast %cst_390 : f32 to vector<8x32xf32>
    %520 = arith.mulf %519, %518 : vector<8x32xf32>
    %cst_391 = arith.constant 5.000000e-01 : f32
    %521 = vector.broadcast %cst_391 : f32 to vector<8x32xf32>
    %522 = arith.addf %520, %521 : vector<8x32xf32>
    %523 = arith.mulf %496, %371 : vector<8x32xf32>
    %524 = arith.mulf %481, %507 : vector<8x32xf32>
    %525 = arith.addf %523, %524 : vector<8x32xf32>
    %526 = math.tanh %525 : vector<8x32xf32>
    %527 = arith.mulf %522, %526 : vector<8x32xf32>
    %528 = arith.truncf %527 : vector<8x32xf32> to vector<8x32xbf16>
    %c0_392 = arith.constant 0 : index
    %c0_393 = arith.constant 0 : index
    %c0_394 = arith.constant 0 : index
    %529 = vector.load %arg7[%c0_392, %c0_393, %c0_394] : memref<4x32x32xbf16, #tpu.memory_space<vmem>>, vector<1x32x32xbf16>
    %530 = vector.shape_cast %529 : vector<1x32x32xbf16> to vector<32x32xbf16>
    %cst_395 = arith.constant dense<0.000000e+00> : vector<8x32xf32>
    %531 = tpu.matmul %528, %530, %cst_395 {dimension_numbers = #tpu.dot_dimension_numbers<[1], [0], [0], [1], [0, 0, 1, 1], [], []>} : vector<8x32xbf16>, vector<32x32xbf16>, vector<8x32xf32> -> vector<8x32xf32>
    %c0_396 = arith.constant 0 : index
    %c0_397 = arith.constant 0 : index
    %c0_398 = arith.constant 0 : index
    %532 = vector.load %arg8[%c0_396, %c0_397, %c0_398] : memref<4x32x32xbf16, #tpu.memory_space<vmem>>, vector<1x32x32xbf16>
    %533 = vector.shape_cast %532 : vector<1x32x32xbf16> to vector<32x32xbf16>
    %cst_399 = arith.constant dense<0.000000e+00> : vector<8x32xf32>
    %534 = tpu.matmul %436, %533, %cst_399 {dimension_numbers = #tpu.dot_dimension_numbers<[1], [0], [0], [1], [0, 0, 1, 1], [], []>} : vector<8x32xbf16>, vector<32x32xbf16>, vector<8x32xf32> -> vector<8x32xf32>
    %535 = arith.addf %531, %534 : vector<8x32xf32>
    %c0_400 = arith.constant 0 : index
    %c0_401 = arith.constant 0 : index
    %c0_402 = arith.constant 0 : index
    %536 = vector.load %arg9[%c0_400, %c0_401, %c0_402] : memref<4x8x32xf32, #tpu.memory_space<vmem>>, vector<1x8x32xf32>
    %537 = vector.shape_cast %536 : vector<1x8x32xf32> to vector<8x32xf32>
    %538 = arith.addf %535, %537 : vector<8x32xf32>
    %539 = math.tanh %538 : vector<8x32xf32>
    %cst_403 = arith.constant 5.000000e-01 : f32
    %540 = vector.broadcast %cst_403 : f32 to vector<8x32xf32>
    %541 = arith.mulf %540, %539 : vector<8x32xf32>
    %cst_404 = arith.constant 5.000000e-01 : f32
    %542 = vector.broadcast %cst_404 : f32 to vector<8x32xf32>
    %543 = arith.addf %541, %542 : vector<8x32xf32>
    %c1_405 = arith.constant 1 : index
    %c0_406 = arith.constant 0 : index
    %c0_407 = arith.constant 0 : index
    %544 = vector.load %arg7[%c1_405, %c0_406, %c0_407] : memref<4x32x32xbf16, #tpu.memory_space<vmem>>, vector<1x32x32xbf16>
    %545 = vector.shape_cast %544 : vector<1x32x32xbf16> to vector<32x32xbf16>
    %cst_408 = arith.constant dense<0.000000e+00> : vector<8x32xf32>
    %546 = tpu.matmul %528, %545, %cst_408 {dimension_numbers = #tpu.dot_dimension_numbers<[1], [0], [0], [1], [0, 0, 1, 1], [], []>} : vector<8x32xbf16>, vector<32x32xbf16>, vector<8x32xf32> -> vector<8x32xf32>
    %c1_409 = arith.constant 1 : index
    %c0_410 = arith.constant 0 : index
    %c0_411 = arith.constant 0 : index
    %547 = vector.load %arg8[%c1_409, %c0_410, %c0_411] : memref<4x32x32xbf16, #tpu.memory_space<vmem>>, vector<1x32x32xbf16>
    %548 = vector.shape_cast %547 : vector<1x32x32xbf16> to vector<32x32xbf16>
    %cst_412 = arith.constant dense<0.000000e+00> : vector<8x32xf32>
    %549 = tpu.matmul %436, %548, %cst_412 {dimension_numbers = #tpu.dot_dimension_numbers<[1], [0], [0], [1], [0, 0, 1, 1], [], []>} : vector<8x32xbf16>, vector<32x32xbf16>, vector<8x32xf32> -> vector<8x32xf32>
    %550 = arith.addf %546, %549 : vector<8x32xf32>
    %c1_413 = arith.constant 1 : index
    %c0_414 = arith.constant 0 : index
    %c0_415 = arith.constant 0 : index
    %551 = vector.load %arg9[%c1_413, %c0_414, %c0_415] : memref<4x8x32xf32, #tpu.memory_space<vmem>>, vector<1x8x32xf32>
    %552 = vector.shape_cast %551 : vector<1x8x32xf32> to vector<8x32xf32>
    %553 = arith.addf %550, %552 : vector<8x32xf32>
    %554 = math.tanh %553 : vector<8x32xf32>
    %cst_416 = arith.constant 5.000000e-01 : f32
    %555 = vector.broadcast %cst_416 : f32 to vector<8x32xf32>
    %556 = arith.mulf %555, %554 : vector<8x32xf32>
    %cst_417 = arith.constant 5.000000e-01 : f32
    %557 = vector.broadcast %cst_417 : f32 to vector<8x32xf32>
    %558 = arith.addf %556, %557 : vector<8x32xf32>
    %c2_418 = arith.constant 2 : index
    %c0_419 = arith.constant 0 : index
    %c0_420 = arith.constant 0 : index
    %559 = vector.load %arg7[%c2_418, %c0_419, %c0_420] : memref<4x32x32xbf16, #tpu.memory_space<vmem>>, vector<1x32x32xbf16>
    %560 = vector.shape_cast %559 : vector<1x32x32xbf16> to vector<32x32xbf16>
    %cst_421 = arith.constant dense<0.000000e+00> : vector<8x32xf32>
    %561 = tpu.matmul %528, %560, %cst_421 {dimension_numbers = #tpu.dot_dimension_numbers<[1], [0], [0], [1], [0, 0, 1, 1], [], []>} : vector<8x32xbf16>, vector<32x32xbf16>, vector<8x32xf32> -> vector<8x32xf32>
    %c2_422 = arith.constant 2 : index
    %c0_423 = arith.constant 0 : index
    %c0_424 = arith.constant 0 : index
    %562 = vector.load %arg8[%c2_422, %c0_423, %c0_424] : memref<4x32x32xbf16, #tpu.memory_space<vmem>>, vector<1x32x32xbf16>
    %563 = vector.shape_cast %562 : vector<1x32x32xbf16> to vector<32x32xbf16>
    %cst_425 = arith.constant dense<0.000000e+00> : vector<8x32xf32>
    %564 = tpu.matmul %436, %563, %cst_425 {dimension_numbers = #tpu.dot_dimension_numbers<[1], [0], [0], [1], [0, 0, 1, 1], [], []>} : vector<8x32xbf16>, vector<32x32xbf16>, vector<8x32xf32> -> vector<8x32xf32>
    %565 = arith.addf %561, %564 : vector<8x32xf32>
    %c2_426 = arith.constant 2 : index
    %c0_427 = arith.constant 0 : index
    %c0_428 = arith.constant 0 : index
    %566 = vector.load %arg9[%c2_426, %c0_427, %c0_428] : memref<4x8x32xf32, #tpu.memory_space<vmem>>, vector<1x8x32xf32>
    %567 = vector.shape_cast %566 : vector<1x8x32xf32> to vector<8x32xf32>
    %568 = arith.addf %565, %567 : vector<8x32xf32>
    %569 = math.tanh %568 : vector<8x32xf32>
    %c3_429 = arith.constant 3 : index
    %c0_430 = arith.constant 0 : index
    %c0_431 = arith.constant 0 : index
    %570 = vector.load %arg7[%c3_429, %c0_430, %c0_431] : memref<4x32x32xbf16, #tpu.memory_space<vmem>>, vector<1x32x32xbf16>
    %571 = vector.shape_cast %570 : vector<1x32x32xbf16> to vector<32x32xbf16>
    %cst_432 = arith.constant dense<0.000000e+00> : vector<8x32xf32>
    %572 = tpu.matmul %528, %571, %cst_432 {dimension_numbers = #tpu.dot_dimension_numbers<[1], [0], [0], [1], [0, 0, 1, 1], [], []>} : vector<8x32xbf16>, vector<32x32xbf16>, vector<8x32xf32> -> vector<8x32xf32>
    %c3_433 = arith.constant 3 : index
    %c0_434 = arith.constant 0 : index
    %c0_435 = arith.constant 0 : index
    %573 = vector.load %arg8[%c3_433, %c0_434, %c0_435] : memref<4x32x32xbf16, #tpu.memory_space<vmem>>, vector<1x32x32xbf16>
    %574 = vector.shape_cast %573 : vector<1x32x32xbf16> to vector<32x32xbf16>
    %cst_436 = arith.constant dense<0.000000e+00> : vector<8x32xf32>
    %575 = tpu.matmul %436, %574, %cst_436 {dimension_numbers = #tpu.dot_dimension_numbers<[1], [0], [0], [1], [0, 0, 1, 1], [], []>} : vector<8x32xbf16>, vector<32x32xbf16>, vector<8x32xf32> -> vector<8x32xf32>
    %576 = arith.addf %572, %575 : vector<8x32xf32>
    %c3_437 = arith.constant 3 : index
    %c0_438 = arith.constant 0 : index
    %c0_439 = arith.constant 0 : index
    %577 = vector.load %arg9[%c3_437, %c0_438, %c0_439] : memref<4x8x32xf32, #tpu.memory_space<vmem>>, vector<1x8x32xf32>
    %578 = vector.shape_cast %577 : vector<1x8x32xf32> to vector<8x32xf32>
    %579 = arith.addf %576, %578 : vector<8x32xf32>
    %580 = math.tanh %579 : vector<8x32xf32>
    %cst_440 = arith.constant 5.000000e-01 : f32
    %581 = vector.broadcast %cst_440 : f32 to vector<8x32xf32>
    %582 = arith.mulf %581, %580 : vector<8x32xf32>
    %cst_441 = arith.constant 5.000000e-01 : f32
    %583 = vector.broadcast %cst_441 : f32 to vector<8x32xf32>
    %584 = arith.addf %582, %583 : vector<8x32xf32>
    %585 = arith.mulf %558, %433 : vector<8x32xf32>
    %586 = arith.mulf %543, %569 : vector<8x32xf32>
    %587 = arith.addf %585, %586 : vector<8x32xf32>
    %588 = math.tanh %587 : vector<8x32xf32>
    %589 = arith.mulf %584, %588 : vector<8x32xf32>
    %590 = arith.truncf %589 : vector<8x32xf32> to vector<8x32xbf16>
    %c0_442 = arith.constant 0 : index
    %c0_443 = arith.constant 0 : index
    %591 = vector.load %arg2[%c0_442, %c0_443] : memref<32x128xf32, #tpu.memory_space<vmem>>, vector<32x128xf32>
    %cst_444 = arith.constant dense<0.000000e+00> : vector<8x128xf32>
    %592 = tpu.matmul %589, %591, %cst_444 {dimension_numbers = #tpu.dot_dimension_numbers<[1], [0], [0], [1], [0, 0, 1, 1], [], []>} : vector<8x32xf32>, vector<32x128xf32>, vector<8x128xf32> -> vector<8x128xf32>
    %c0_445 = arith.constant 0 : index
    %c0_446 = arith.constant 0 : index
    %593 = vector.load %arg3[%c0_445, %c0_446] : memref<8x128xf32, #tpu.memory_space<vmem>>, vector<8x128xf32>
    %594 = arith.addf %592, %593 : vector<8x128xf32>
    %595 = tpu.iota {dimensions = array<i32: 1>} : vector<8x128xi32>
    %596 = tpu.bitcast %594 : vector<8x128xf32> -> vector<8x128xi32>
    %c0_i32_447 = arith.constant 0 : i32
    %597 = vector.broadcast %c0_i32_447 : i32 to vector<8x128xi32>
    %598 = arith.cmpi slt, %596, %597 : vector<8x128xi32>
    %c-2147483648_i32_448 = arith.constant -2147483648 : i32
    %599 = vector.broadcast %c-2147483648_i32_448 : i32 to vector<8x128xi32>
    %600 = arith.subi %599, %596 : vector<8x128xi32>
    %601 = arith.select %598, %600, %596 : vector<8x128xi1>, vector<8x128xi32>
    %c-128_i32_449 = arith.constant -128 : i32
    %602 = vector.broadcast %c-128_i32_449 : i32 to vector<8x128xi32>
    %603 = arith.andi %601, %602 : vector<8x128xi32>
    %c127_i32_450 = arith.constant 127 : i32
    %604 = vector.broadcast %c127_i32_450 : i32 to vector<8x128xi32>
    %605 = arith.subi %604, %595 : vector<8x128xi32>
    %606 = arith.ori %603, %605 : vector<8x128xi32>
    %cst_451 = arith.constant dense<-2147483648> : vector<8xi32>
    %607 = vector.multi_reduction <maxsi>, %606, %cst_451 [1] : vector<8x128xi32> to vector<8xi32>
    %608 = vector.shape_cast %607 : vector<8xi32> to vector<8x1xi32>
    %c127_i32_452 = arith.constant 127 : i32
    %609 = vector.broadcast %c127_i32_452 : i32 to vector<8x1xi32>
    %610 = arith.andi %608, %609 : vector<8x1xi32>
    %c127_i32_453 = arith.constant 127 : i32
    %611 = vector.broadcast %c127_i32_453 : i32 to vector<8x1xi32>
    %612 = arith.subi %611, %610 : vector<8x1xi32>
    %613 = vector.broadcast %612 : vector<8x1xi32> to vector<8x128xi32>
    %614 = arith.cmpi eq, %595, %613 : vector<8x128xi32>
    %615 = arith.extui %614 : vector<8x128xi1> to vector<8x128xi32>
    %616 = arith.sitofp %615 : vector<8x128xi32> to vector<8x128xf32>
    %617 = arith.truncf %616 : vector<8x128xf32> to vector<8x128xbf16>
    %c0_454 = arith.constant 0 : index
    %c0_455 = arith.constant 0 : index
    %618 = vector.load %arg1[%c0_454, %c0_455] : memref<128x32xbf16, #tpu.memory_space<vmem>>, vector<128x32xbf16>
    %cst_456 = arith.constant dense<0.000000e+00> : vector<8x32xf32>
    %619 = tpu.matmul %617, %618, %cst_456 {dimension_numbers = #tpu.dot_dimension_numbers<[1], [0], [0], [1], [0, 0, 1, 1], [], []>} : vector<8x128xbf16>, vector<128x32xbf16>, vector<8x32xf32> -> vector<8x32xf32>
    %620 = arith.truncf %619 : vector<8x32xf32> to vector<8x32xbf16>
    %c0_457 = arith.constant 0 : index
    %c0_458 = arith.constant 0 : index
    %c0_459 = arith.constant 0 : index
    %621 = vector.load %arg4[%c0_457, %c0_458, %c0_459] : memref<4x32x32xbf16, #tpu.memory_space<vmem>>, vector<1x32x32xbf16>
    %622 = vector.shape_cast %621 : vector<1x32x32xbf16> to vector<32x32xbf16>
    %cst_460 = arith.constant dense<0.000000e+00> : vector<8x32xf32>
    %623 = tpu.matmul %620, %622, %cst_460 {dimension_numbers = #tpu.dot_dimension_numbers<[1], [0], [0], [1], [0, 0, 1, 1], [], []>} : vector<8x32xbf16>, vector<32x32xbf16>, vector<8x32xf32> -> vector<8x32xf32>
    %c0_461 = arith.constant 0 : index
    %c0_462 = arith.constant 0 : index
    %c0_463 = arith.constant 0 : index
    %624 = vector.load %arg5[%c0_461, %c0_462, %c0_463] : memref<4x32x32xbf16, #tpu.memory_space<vmem>>, vector<1x32x32xbf16>
    %625 = vector.shape_cast %624 : vector<1x32x32xbf16> to vector<32x32xbf16>
    %cst_464 = arith.constant dense<0.000000e+00> : vector<8x32xf32>
    %626 = tpu.matmul %528, %625, %cst_464 {dimension_numbers = #tpu.dot_dimension_numbers<[1], [0], [0], [1], [0, 0, 1, 1], [], []>} : vector<8x32xbf16>, vector<32x32xbf16>, vector<8x32xf32> -> vector<8x32xf32>
    %627 = arith.addf %623, %626 : vector<8x32xf32>
    %c0_465 = arith.constant 0 : index
    %c0_466 = arith.constant 0 : index
    %c0_467 = arith.constant 0 : index
    %628 = vector.load %arg6[%c0_465, %c0_466, %c0_467] : memref<4x8x32xf32, #tpu.memory_space<vmem>>, vector<1x8x32xf32>
    %629 = vector.shape_cast %628 : vector<1x8x32xf32> to vector<8x32xf32>
    %630 = arith.addf %627, %629 : vector<8x32xf32>
    %631 = math.tanh %630 : vector<8x32xf32>
    %cst_468 = arith.constant 5.000000e-01 : f32
    %632 = vector.broadcast %cst_468 : f32 to vector<8x32xf32>
    %633 = arith.mulf %632, %631 : vector<8x32xf32>
    %cst_469 = arith.constant 5.000000e-01 : f32
    %634 = vector.broadcast %cst_469 : f32 to vector<8x32xf32>
    %635 = arith.addf %633, %634 : vector<8x32xf32>
    %c1_470 = arith.constant 1 : index
    %c0_471 = arith.constant 0 : index
    %c0_472 = arith.constant 0 : index
    %636 = vector.load %arg4[%c1_470, %c0_471, %c0_472] : memref<4x32x32xbf16, #tpu.memory_space<vmem>>, vector<1x32x32xbf16>
    %637 = vector.shape_cast %636 : vector<1x32x32xbf16> to vector<32x32xbf16>
    %cst_473 = arith.constant dense<0.000000e+00> : vector<8x32xf32>
    %638 = tpu.matmul %620, %637, %cst_473 {dimension_numbers = #tpu.dot_dimension_numbers<[1], [0], [0], [1], [0, 0, 1, 1], [], []>} : vector<8x32xbf16>, vector<32x32xbf16>, vector<8x32xf32> -> vector<8x32xf32>
    %c1_474 = arith.constant 1 : index
    %c0_475 = arith.constant 0 : index
    %c0_476 = arith.constant 0 : index
    %639 = vector.load %arg5[%c1_474, %c0_475, %c0_476] : memref<4x32x32xbf16, #tpu.memory_space<vmem>>, vector<1x32x32xbf16>
    %640 = vector.shape_cast %639 : vector<1x32x32xbf16> to vector<32x32xbf16>
    %cst_477 = arith.constant dense<0.000000e+00> : vector<8x32xf32>
    %641 = tpu.matmul %528, %640, %cst_477 {dimension_numbers = #tpu.dot_dimension_numbers<[1], [0], [0], [1], [0, 0, 1, 1], [], []>} : vector<8x32xbf16>, vector<32x32xbf16>, vector<8x32xf32> -> vector<8x32xf32>
    %642 = arith.addf %638, %641 : vector<8x32xf32>
    %c1_478 = arith.constant 1 : index
    %c0_479 = arith.constant 0 : index
    %c0_480 = arith.constant 0 : index
    %643 = vector.load %arg6[%c1_478, %c0_479, %c0_480] : memref<4x8x32xf32, #tpu.memory_space<vmem>>, vector<1x8x32xf32>
    %644 = vector.shape_cast %643 : vector<1x8x32xf32> to vector<8x32xf32>
    %645 = arith.addf %642, %644 : vector<8x32xf32>
    %646 = math.tanh %645 : vector<8x32xf32>
    %cst_481 = arith.constant 5.000000e-01 : f32
    %647 = vector.broadcast %cst_481 : f32 to vector<8x32xf32>
    %648 = arith.mulf %647, %646 : vector<8x32xf32>
    %cst_482 = arith.constant 5.000000e-01 : f32
    %649 = vector.broadcast %cst_482 : f32 to vector<8x32xf32>
    %650 = arith.addf %648, %649 : vector<8x32xf32>
    %c2_483 = arith.constant 2 : index
    %c0_484 = arith.constant 0 : index
    %c0_485 = arith.constant 0 : index
    %651 = vector.load %arg4[%c2_483, %c0_484, %c0_485] : memref<4x32x32xbf16, #tpu.memory_space<vmem>>, vector<1x32x32xbf16>
    %652 = vector.shape_cast %651 : vector<1x32x32xbf16> to vector<32x32xbf16>
    %cst_486 = arith.constant dense<0.000000e+00> : vector<8x32xf32>
    %653 = tpu.matmul %620, %652, %cst_486 {dimension_numbers = #tpu.dot_dimension_numbers<[1], [0], [0], [1], [0, 0, 1, 1], [], []>} : vector<8x32xbf16>, vector<32x32xbf16>, vector<8x32xf32> -> vector<8x32xf32>
    %c2_487 = arith.constant 2 : index
    %c0_488 = arith.constant 0 : index
    %c0_489 = arith.constant 0 : index
    %654 = vector.load %arg5[%c2_487, %c0_488, %c0_489] : memref<4x32x32xbf16, #tpu.memory_space<vmem>>, vector<1x32x32xbf16>
    %655 = vector.shape_cast %654 : vector<1x32x32xbf16> to vector<32x32xbf16>
    %cst_490 = arith.constant dense<0.000000e+00> : vector<8x32xf32>
    %656 = tpu.matmul %528, %655, %cst_490 {dimension_numbers = #tpu.dot_dimension_numbers<[1], [0], [0], [1], [0, 0, 1, 1], [], []>} : vector<8x32xbf16>, vector<32x32xbf16>, vector<8x32xf32> -> vector<8x32xf32>
    %657 = arith.addf %653, %656 : vector<8x32xf32>
    %c2_491 = arith.constant 2 : index
    %c0_492 = arith.constant 0 : index
    %c0_493 = arith.constant 0 : index
    %658 = vector.load %arg6[%c2_491, %c0_492, %c0_493] : memref<4x8x32xf32, #tpu.memory_space<vmem>>, vector<1x8x32xf32>
    %659 = vector.shape_cast %658 : vector<1x8x32xf32> to vector<8x32xf32>
    %660 = arith.addf %657, %659 : vector<8x32xf32>
    %661 = math.tanh %660 : vector<8x32xf32>
    %c3_494 = arith.constant 3 : index
    %c0_495 = arith.constant 0 : index
    %c0_496 = arith.constant 0 : index
    %662 = vector.load %arg4[%c3_494, %c0_495, %c0_496] : memref<4x32x32xbf16, #tpu.memory_space<vmem>>, vector<1x32x32xbf16>
    %663 = vector.shape_cast %662 : vector<1x32x32xbf16> to vector<32x32xbf16>
    %cst_497 = arith.constant dense<0.000000e+00> : vector<8x32xf32>
    %664 = tpu.matmul %620, %663, %cst_497 {dimension_numbers = #tpu.dot_dimension_numbers<[1], [0], [0], [1], [0, 0, 1, 1], [], []>} : vector<8x32xbf16>, vector<32x32xbf16>, vector<8x32xf32> -> vector<8x32xf32>
    %c3_498 = arith.constant 3 : index
    %c0_499 = arith.constant 0 : index
    %c0_500 = arith.constant 0 : index
    %665 = vector.load %arg5[%c3_498, %c0_499, %c0_500] : memref<4x32x32xbf16, #tpu.memory_space<vmem>>, vector<1x32x32xbf16>
    %666 = vector.shape_cast %665 : vector<1x32x32xbf16> to vector<32x32xbf16>
    %cst_501 = arith.constant dense<0.000000e+00> : vector<8x32xf32>
    %667 = tpu.matmul %528, %666, %cst_501 {dimension_numbers = #tpu.dot_dimension_numbers<[1], [0], [0], [1], [0, 0, 1, 1], [], []>} : vector<8x32xbf16>, vector<32x32xbf16>, vector<8x32xf32> -> vector<8x32xf32>
    %668 = arith.addf %664, %667 : vector<8x32xf32>
    %c3_502 = arith.constant 3 : index
    %c0_503 = arith.constant 0 : index
    %c0_504 = arith.constant 0 : index
    %669 = vector.load %arg6[%c3_502, %c0_503, %c0_504] : memref<4x8x32xf32, #tpu.memory_space<vmem>>, vector<1x8x32xf32>
    %670 = vector.shape_cast %669 : vector<1x8x32xf32> to vector<8x32xf32>
    %671 = arith.addf %668, %670 : vector<8x32xf32>
    %672 = math.tanh %671 : vector<8x32xf32>
    %cst_505 = arith.constant 5.000000e-01 : f32
    %673 = vector.broadcast %cst_505 : f32 to vector<8x32xf32>
    %674 = arith.mulf %673, %672 : vector<8x32xf32>
    %cst_506 = arith.constant 5.000000e-01 : f32
    %675 = vector.broadcast %cst_506 : f32 to vector<8x32xf32>
    %676 = arith.addf %674, %675 : vector<8x32xf32>
    %677 = arith.mulf %650, %525 : vector<8x32xf32>
    %678 = arith.mulf %635, %661 : vector<8x32xf32>
    %679 = arith.addf %677, %678 : vector<8x32xf32>
    %680 = math.tanh %679 : vector<8x32xf32>
    %681 = arith.mulf %676, %680 : vector<8x32xf32>
    %682 = arith.truncf %681 : vector<8x32xf32> to vector<8x32xbf16>
    %c0_507 = arith.constant 0 : index
    %c0_508 = arith.constant 0 : index
    %c0_509 = arith.constant 0 : index
    %683 = vector.load %arg7[%c0_507, %c0_508, %c0_509] : memref<4x32x32xbf16, #tpu.memory_space<vmem>>, vector<1x32x32xbf16>
    %684 = vector.shape_cast %683 : vector<1x32x32xbf16> to vector<32x32xbf16>
    %cst_510 = arith.constant dense<0.000000e+00> : vector<8x32xf32>
    %685 = tpu.matmul %682, %684, %cst_510 {dimension_numbers = #tpu.dot_dimension_numbers<[1], [0], [0], [1], [0, 0, 1, 1], [], []>} : vector<8x32xbf16>, vector<32x32xbf16>, vector<8x32xf32> -> vector<8x32xf32>
    %c0_511 = arith.constant 0 : index
    %c0_512 = arith.constant 0 : index
    %c0_513 = arith.constant 0 : index
    %686 = vector.load %arg8[%c0_511, %c0_512, %c0_513] : memref<4x32x32xbf16, #tpu.memory_space<vmem>>, vector<1x32x32xbf16>
    %687 = vector.shape_cast %686 : vector<1x32x32xbf16> to vector<32x32xbf16>
    %cst_514 = arith.constant dense<0.000000e+00> : vector<8x32xf32>
    %688 = tpu.matmul %590, %687, %cst_514 {dimension_numbers = #tpu.dot_dimension_numbers<[1], [0], [0], [1], [0, 0, 1, 1], [], []>} : vector<8x32xbf16>, vector<32x32xbf16>, vector<8x32xf32> -> vector<8x32xf32>
    %689 = arith.addf %685, %688 : vector<8x32xf32>
    %c0_515 = arith.constant 0 : index
    %c0_516 = arith.constant 0 : index
    %c0_517 = arith.constant 0 : index
    %690 = vector.load %arg9[%c0_515, %c0_516, %c0_517] : memref<4x8x32xf32, #tpu.memory_space<vmem>>, vector<1x8x32xf32>
    %691 = vector.shape_cast %690 : vector<1x8x32xf32> to vector<8x32xf32>
    %692 = arith.addf %689, %691 : vector<8x32xf32>
    %693 = math.tanh %692 : vector<8x32xf32>
    %cst_518 = arith.constant 5.000000e-01 : f32
    %694 = vector.broadcast %cst_518 : f32 to vector<8x32xf32>
    %695 = arith.mulf %694, %693 : vector<8x32xf32>
    %cst_519 = arith.constant 5.000000e-01 : f32
    %696 = vector.broadcast %cst_519 : f32 to vector<8x32xf32>
    %697 = arith.addf %695, %696 : vector<8x32xf32>
    %c1_520 = arith.constant 1 : index
    %c0_521 = arith.constant 0 : index
    %c0_522 = arith.constant 0 : index
    %698 = vector.load %arg7[%c1_520, %c0_521, %c0_522] : memref<4x32x32xbf16, #tpu.memory_space<vmem>>, vector<1x32x32xbf16>
    %699 = vector.shape_cast %698 : vector<1x32x32xbf16> to vector<32x32xbf16>
    %cst_523 = arith.constant dense<0.000000e+00> : vector<8x32xf32>
    %700 = tpu.matmul %682, %699, %cst_523 {dimension_numbers = #tpu.dot_dimension_numbers<[1], [0], [0], [1], [0, 0, 1, 1], [], []>} : vector<8x32xbf16>, vector<32x32xbf16>, vector<8x32xf32> -> vector<8x32xf32>
    %c1_524 = arith.constant 1 : index
    %c0_525 = arith.constant 0 : index
    %c0_526 = arith.constant 0 : index
    %701 = vector.load %arg8[%c1_524, %c0_525, %c0_526] : memref<4x32x32xbf16, #tpu.memory_space<vmem>>, vector<1x32x32xbf16>
    %702 = vector.shape_cast %701 : vector<1x32x32xbf16> to vector<32x32xbf16>
    %cst_527 = arith.constant dense<0.000000e+00> : vector<8x32xf32>
    %703 = tpu.matmul %590, %702, %cst_527 {dimension_numbers = #tpu.dot_dimension_numbers<[1], [0], [0], [1], [0, 0, 1, 1], [], []>} : vector<8x32xbf16>, vector<32x32xbf16>, vector<8x32xf32> -> vector<8x32xf32>
    %704 = arith.addf %700, %703 : vector<8x32xf32>
    %c1_528 = arith.constant 1 : index
    %c0_529 = arith.constant 0 : index
    %c0_530 = arith.constant 0 : index
    %705 = vector.load %arg9[%c1_528, %c0_529, %c0_530] : memref<4x8x32xf32, #tpu.memory_space<vmem>>, vector<1x8x32xf32>
    %706 = vector.shape_cast %705 : vector<1x8x32xf32> to vector<8x32xf32>
    %707 = arith.addf %704, %706 : vector<8x32xf32>
    %708 = math.tanh %707 : vector<8x32xf32>
    %cst_531 = arith.constant 5.000000e-01 : f32
    %709 = vector.broadcast %cst_531 : f32 to vector<8x32xf32>
    %710 = arith.mulf %709, %708 : vector<8x32xf32>
    %cst_532 = arith.constant 5.000000e-01 : f32
    %711 = vector.broadcast %cst_532 : f32 to vector<8x32xf32>
    %712 = arith.addf %710, %711 : vector<8x32xf32>
    %c2_533 = arith.constant 2 : index
    %c0_534 = arith.constant 0 : index
    %c0_535 = arith.constant 0 : index
    %713 = vector.load %arg7[%c2_533, %c0_534, %c0_535] : memref<4x32x32xbf16, #tpu.memory_space<vmem>>, vector<1x32x32xbf16>
    %714 = vector.shape_cast %713 : vector<1x32x32xbf16> to vector<32x32xbf16>
    %cst_536 = arith.constant dense<0.000000e+00> : vector<8x32xf32>
    %715 = tpu.matmul %682, %714, %cst_536 {dimension_numbers = #tpu.dot_dimension_numbers<[1], [0], [0], [1], [0, 0, 1, 1], [], []>} : vector<8x32xbf16>, vector<32x32xbf16>, vector<8x32xf32> -> vector<8x32xf32>
    %c2_537 = arith.constant 2 : index
    %c0_538 = arith.constant 0 : index
    %c0_539 = arith.constant 0 : index
    %716 = vector.load %arg8[%c2_537, %c0_538, %c0_539] : memref<4x32x32xbf16, #tpu.memory_space<vmem>>, vector<1x32x32xbf16>
    %717 = vector.shape_cast %716 : vector<1x32x32xbf16> to vector<32x32xbf16>
    %cst_540 = arith.constant dense<0.000000e+00> : vector<8x32xf32>
    %718 = tpu.matmul %590, %717, %cst_540 {dimension_numbers = #tpu.dot_dimension_numbers<[1], [0], [0], [1], [0, 0, 1, 1], [], []>} : vector<8x32xbf16>, vector<32x32xbf16>, vector<8x32xf32> -> vector<8x32xf32>
    %719 = arith.addf %715, %718 : vector<8x32xf32>
    %c2_541 = arith.constant 2 : index
    %c0_542 = arith.constant 0 : index
    %c0_543 = arith.constant 0 : index
    %720 = vector.load %arg9[%c2_541, %c0_542, %c0_543] : memref<4x8x32xf32, #tpu.memory_space<vmem>>, vector<1x8x32xf32>
    %721 = vector.shape_cast %720 : vector<1x8x32xf32> to vector<8x32xf32>
    %722 = arith.addf %719, %721 : vector<8x32xf32>
    %723 = math.tanh %722 : vector<8x32xf32>
    %c3_544 = arith.constant 3 : index
    %c0_545 = arith.constant 0 : index
    %c0_546 = arith.constant 0 : index
    %724 = vector.load %arg7[%c3_544, %c0_545, %c0_546] : memref<4x32x32xbf16, #tpu.memory_space<vmem>>, vector<1x32x32xbf16>
    %725 = vector.shape_cast %724 : vector<1x32x32xbf16> to vector<32x32xbf16>
    %cst_547 = arith.constant dense<0.000000e+00> : vector<8x32xf32>
    %726 = tpu.matmul %682, %725, %cst_547 {dimension_numbers = #tpu.dot_dimension_numbers<[1], [0], [0], [1], [0, 0, 1, 1], [], []>} : vector<8x32xbf16>, vector<32x32xbf16>, vector<8x32xf32> -> vector<8x32xf32>
    %c3_548 = arith.constant 3 : index
    %c0_549 = arith.constant 0 : index
    %c0_550 = arith.constant 0 : index
    %727 = vector.load %arg8[%c3_548, %c0_549, %c0_550] : memref<4x32x32xbf16, #tpu.memory_space<vmem>>, vector<1x32x32xbf16>
    %728 = vector.shape_cast %727 : vector<1x32x32xbf16> to vector<32x32xbf16>
    %cst_551 = arith.constant dense<0.000000e+00> : vector<8x32xf32>
    %729 = tpu.matmul %590, %728, %cst_551 {dimension_numbers = #tpu.dot_dimension_numbers<[1], [0], [0], [1], [0, 0, 1, 1], [], []>} : vector<8x32xbf16>, vector<32x32xbf16>, vector<8x32xf32> -> vector<8x32xf32>
    %730 = arith.addf %726, %729 : vector<8x32xf32>
    %c3_552 = arith.constant 3 : index
    %c0_553 = arith.constant 0 : index
    %c0_554 = arith.constant 0 : index
    %731 = vector.load %arg9[%c3_552, %c0_553, %c0_554] : memref<4x8x32xf32, #tpu.memory_space<vmem>>, vector<1x8x32xf32>
    %732 = vector.shape_cast %731 : vector<1x8x32xf32> to vector<8x32xf32>
    %733 = arith.addf %730, %732 : vector<8x32xf32>
    %734 = math.tanh %733 : vector<8x32xf32>
    %cst_555 = arith.constant 5.000000e-01 : f32
    %735 = vector.broadcast %cst_555 : f32 to vector<8x32xf32>
    %736 = arith.mulf %735, %734 : vector<8x32xf32>
    %cst_556 = arith.constant 5.000000e-01 : f32
    %737 = vector.broadcast %cst_556 : f32 to vector<8x32xf32>
    %738 = arith.addf %736, %737 : vector<8x32xf32>
    %739 = arith.mulf %712, %587 : vector<8x32xf32>
    %740 = arith.mulf %697, %723 : vector<8x32xf32>
    %741 = arith.addf %739, %740 : vector<8x32xf32>
    %742 = math.tanh %741 : vector<8x32xf32>
    %743 = arith.mulf %738, %742 : vector<8x32xf32>
    %744 = arith.truncf %743 : vector<8x32xf32> to vector<8x32xbf16>
    %c0_557 = arith.constant 0 : index
    %c0_558 = arith.constant 0 : index
    %745 = vector.load %arg2[%c0_557, %c0_558] : memref<32x128xf32, #tpu.memory_space<vmem>>, vector<32x128xf32>
    %cst_559 = arith.constant dense<0.000000e+00> : vector<8x128xf32>
    %746 = tpu.matmul %743, %745, %cst_559 {dimension_numbers = #tpu.dot_dimension_numbers<[1], [0], [0], [1], [0, 0, 1, 1], [], []>} : vector<8x32xf32>, vector<32x128xf32>, vector<8x128xf32> -> vector<8x128xf32>
    %c0_560 = arith.constant 0 : index
    %c0_561 = arith.constant 0 : index
    %747 = vector.load %arg3[%c0_560, %c0_561] : memref<8x128xf32, #tpu.memory_space<vmem>>, vector<8x128xf32>
    %748 = arith.addf %746, %747 : vector<8x128xf32>
    %749 = tpu.iota {dimensions = array<i32: 1>} : vector<8x128xi32>
    %750 = tpu.bitcast %748 : vector<8x128xf32> -> vector<8x128xi32>
    %c0_i32_562 = arith.constant 0 : i32
    %751 = vector.broadcast %c0_i32_562 : i32 to vector<8x128xi32>
    %752 = arith.cmpi slt, %750, %751 : vector<8x128xi32>
    %c-2147483648_i32_563 = arith.constant -2147483648 : i32
    %753 = vector.broadcast %c-2147483648_i32_563 : i32 to vector<8x128xi32>
    %754 = arith.subi %753, %750 : vector<8x128xi32>
    %755 = arith.select %752, %754, %750 : vector<8x128xi1>, vector<8x128xi32>
    %c-128_i32_564 = arith.constant -128 : i32
    %756 = vector.broadcast %c-128_i32_564 : i32 to vector<8x128xi32>
    %757 = arith.andi %755, %756 : vector<8x128xi32>
    %c127_i32_565 = arith.constant 127 : i32
    %758 = vector.broadcast %c127_i32_565 : i32 to vector<8x128xi32>
    %759 = arith.subi %758, %749 : vector<8x128xi32>
    %760 = arith.ori %757, %759 : vector<8x128xi32>
    %cst_566 = arith.constant dense<-2147483648> : vector<8xi32>
    %761 = vector.multi_reduction <maxsi>, %760, %cst_566 [1] : vector<8x128xi32> to vector<8xi32>
    %762 = vector.shape_cast %761 : vector<8xi32> to vector<8x1xi32>
    %c127_i32_567 = arith.constant 127 : i32
    %763 = vector.broadcast %c127_i32_567 : i32 to vector<8x1xi32>
    %764 = arith.andi %762, %763 : vector<8x1xi32>
    %c127_i32_568 = arith.constant 127 : i32
    %765 = vector.broadcast %c127_i32_568 : i32 to vector<8x1xi32>
    %766 = arith.subi %765, %764 : vector<8x1xi32>
    %767 = vector.broadcast %766 : vector<8x1xi32> to vector<8x128xi32>
    %768 = arith.cmpi eq, %749, %767 : vector<8x128xi32>
    %769 = arith.extui %768 : vector<8x128xi1> to vector<8x128xi32>
    %770 = arith.sitofp %769 : vector<8x128xi32> to vector<8x128xf32>
    %771 = arith.truncf %770 : vector<8x128xf32> to vector<8x128xbf16>
    %c0_569 = arith.constant 0 : index
    %c0_570 = arith.constant 0 : index
    %772 = vector.load %arg1[%c0_569, %c0_570] : memref<128x32xbf16, #tpu.memory_space<vmem>>, vector<128x32xbf16>
    %cst_571 = arith.constant dense<0.000000e+00> : vector<8x32xf32>
    %773 = tpu.matmul %771, %772, %cst_571 {dimension_numbers = #tpu.dot_dimension_numbers<[1], [0], [0], [1], [0, 0, 1, 1], [], []>} : vector<8x128xbf16>, vector<128x32xbf16>, vector<8x32xf32> -> vector<8x32xf32>
    %774 = arith.truncf %773 : vector<8x32xf32> to vector<8x32xbf16>
    %c0_572 = arith.constant 0 : index
    %c0_573 = arith.constant 0 : index
    %c0_574 = arith.constant 0 : index
    %775 = vector.load %arg4[%c0_572, %c0_573, %c0_574] : memref<4x32x32xbf16, #tpu.memory_space<vmem>>, vector<1x32x32xbf16>
    %776 = vector.shape_cast %775 : vector<1x32x32xbf16> to vector<32x32xbf16>
    %cst_575 = arith.constant dense<0.000000e+00> : vector<8x32xf32>
    %777 = tpu.matmul %774, %776, %cst_575 {dimension_numbers = #tpu.dot_dimension_numbers<[1], [0], [0], [1], [0, 0, 1, 1], [], []>} : vector<8x32xbf16>, vector<32x32xbf16>, vector<8x32xf32> -> vector<8x32xf32>
    %c0_576 = arith.constant 0 : index
    %c0_577 = arith.constant 0 : index
    %c0_578 = arith.constant 0 : index
    %778 = vector.load %arg5[%c0_576, %c0_577, %c0_578] : memref<4x32x32xbf16, #tpu.memory_space<vmem>>, vector<1x32x32xbf16>
    %779 = vector.shape_cast %778 : vector<1x32x32xbf16> to vector<32x32xbf16>
    %cst_579 = arith.constant dense<0.000000e+00> : vector<8x32xf32>
    %780 = tpu.matmul %682, %779, %cst_579 {dimension_numbers = #tpu.dot_dimension_numbers<[1], [0], [0], [1], [0, 0, 1, 1], [], []>} : vector<8x32xbf16>, vector<32x32xbf16>, vector<8x32xf32> -> vector<8x32xf32>
    %781 = arith.addf %777, %780 : vector<8x32xf32>
    %c0_580 = arith.constant 0 : index
    %c0_581 = arith.constant 0 : index
    %c0_582 = arith.constant 0 : index
    %782 = vector.load %arg6[%c0_580, %c0_581, %c0_582] : memref<4x8x32xf32, #tpu.memory_space<vmem>>, vector<1x8x32xf32>
    %783 = vector.shape_cast %782 : vector<1x8x32xf32> to vector<8x32xf32>
    %784 = arith.addf %781, %783 : vector<8x32xf32>
    %785 = math.tanh %784 : vector<8x32xf32>
    %cst_583 = arith.constant 5.000000e-01 : f32
    %786 = vector.broadcast %cst_583 : f32 to vector<8x32xf32>
    %787 = arith.mulf %786, %785 : vector<8x32xf32>
    %cst_584 = arith.constant 5.000000e-01 : f32
    %788 = vector.broadcast %cst_584 : f32 to vector<8x32xf32>
    %789 = arith.addf %787, %788 : vector<8x32xf32>
    %c1_585 = arith.constant 1 : index
    %c0_586 = arith.constant 0 : index
    %c0_587 = arith.constant 0 : index
    %790 = vector.load %arg4[%c1_585, %c0_586, %c0_587] : memref<4x32x32xbf16, #tpu.memory_space<vmem>>, vector<1x32x32xbf16>
    %791 = vector.shape_cast %790 : vector<1x32x32xbf16> to vector<32x32xbf16>
    %cst_588 = arith.constant dense<0.000000e+00> : vector<8x32xf32>
    %792 = tpu.matmul %774, %791, %cst_588 {dimension_numbers = #tpu.dot_dimension_numbers<[1], [0], [0], [1], [0, 0, 1, 1], [], []>} : vector<8x32xbf16>, vector<32x32xbf16>, vector<8x32xf32> -> vector<8x32xf32>
    %c1_589 = arith.constant 1 : index
    %c0_590 = arith.constant 0 : index
    %c0_591 = arith.constant 0 : index
    %793 = vector.load %arg5[%c1_589, %c0_590, %c0_591] : memref<4x32x32xbf16, #tpu.memory_space<vmem>>, vector<1x32x32xbf16>
    %794 = vector.shape_cast %793 : vector<1x32x32xbf16> to vector<32x32xbf16>
    %cst_592 = arith.constant dense<0.000000e+00> : vector<8x32xf32>
    %795 = tpu.matmul %682, %794, %cst_592 {dimension_numbers = #tpu.dot_dimension_numbers<[1], [0], [0], [1], [0, 0, 1, 1], [], []>} : vector<8x32xbf16>, vector<32x32xbf16>, vector<8x32xf32> -> vector<8x32xf32>
    %796 = arith.addf %792, %795 : vector<8x32xf32>
    %c1_593 = arith.constant 1 : index
    %c0_594 = arith.constant 0 : index
    %c0_595 = arith.constant 0 : index
    %797 = vector.load %arg6[%c1_593, %c0_594, %c0_595] : memref<4x8x32xf32, #tpu.memory_space<vmem>>, vector<1x8x32xf32>
    %798 = vector.shape_cast %797 : vector<1x8x32xf32> to vector<8x32xf32>
    %799 = arith.addf %796, %798 : vector<8x32xf32>
    %800 = math.tanh %799 : vector<8x32xf32>
    %cst_596 = arith.constant 5.000000e-01 : f32
    %801 = vector.broadcast %cst_596 : f32 to vector<8x32xf32>
    %802 = arith.mulf %801, %800 : vector<8x32xf32>
    %cst_597 = arith.constant 5.000000e-01 : f32
    %803 = vector.broadcast %cst_597 : f32 to vector<8x32xf32>
    %804 = arith.addf %802, %803 : vector<8x32xf32>
    %c2_598 = arith.constant 2 : index
    %c0_599 = arith.constant 0 : index
    %c0_600 = arith.constant 0 : index
    %805 = vector.load %arg4[%c2_598, %c0_599, %c0_600] : memref<4x32x32xbf16, #tpu.memory_space<vmem>>, vector<1x32x32xbf16>
    %806 = vector.shape_cast %805 : vector<1x32x32xbf16> to vector<32x32xbf16>
    %cst_601 = arith.constant dense<0.000000e+00> : vector<8x32xf32>
    %807 = tpu.matmul %774, %806, %cst_601 {dimension_numbers = #tpu.dot_dimension_numbers<[1], [0], [0], [1], [0, 0, 1, 1], [], []>} : vector<8x32xbf16>, vector<32x32xbf16>, vector<8x32xf32> -> vector<8x32xf32>
    %c2_602 = arith.constant 2 : index
    %c0_603 = arith.constant 0 : index
    %c0_604 = arith.constant 0 : index
    %808 = vector.load %arg5[%c2_602, %c0_603, %c0_604] : memref<4x32x32xbf16, #tpu.memory_space<vmem>>, vector<1x32x32xbf16>
    %809 = vector.shape_cast %808 : vector<1x32x32xbf16> to vector<32x32xbf16>
    %cst_605 = arith.constant dense<0.000000e+00> : vector<8x32xf32>
    %810 = tpu.matmul %682, %809, %cst_605 {dimension_numbers = #tpu.dot_dimension_numbers<[1], [0], [0], [1], [0, 0, 1, 1], [], []>} : vector<8x32xbf16>, vector<32x32xbf16>, vector<8x32xf32> -> vector<8x32xf32>
    %811 = arith.addf %807, %810 : vector<8x32xf32>
    %c2_606 = arith.constant 2 : index
    %c0_607 = arith.constant 0 : index
    %c0_608 = arith.constant 0 : index
    %812 = vector.load %arg6[%c2_606, %c0_607, %c0_608] : memref<4x8x32xf32, #tpu.memory_space<vmem>>, vector<1x8x32xf32>
    %813 = vector.shape_cast %812 : vector<1x8x32xf32> to vector<8x32xf32>
    %814 = arith.addf %811, %813 : vector<8x32xf32>
    %815 = math.tanh %814 : vector<8x32xf32>
    %c3_609 = arith.constant 3 : index
    %c0_610 = arith.constant 0 : index
    %c0_611 = arith.constant 0 : index
    %816 = vector.load %arg4[%c3_609, %c0_610, %c0_611] : memref<4x32x32xbf16, #tpu.memory_space<vmem>>, vector<1x32x32xbf16>
    %817 = vector.shape_cast %816 : vector<1x32x32xbf16> to vector<32x32xbf16>
    %cst_612 = arith.constant dense<0.000000e+00> : vector<8x32xf32>
    %818 = tpu.matmul %774, %817, %cst_612 {dimension_numbers = #tpu.dot_dimension_numbers<[1], [0], [0], [1], [0, 0, 1, 1], [], []>} : vector<8x32xbf16>, vector<32x32xbf16>, vector<8x32xf32> -> vector<8x32xf32>
    %c3_613 = arith.constant 3 : index
    %c0_614 = arith.constant 0 : index
    %c0_615 = arith.constant 0 : index
    %819 = vector.load %arg5[%c3_613, %c0_614, %c0_615] : memref<4x32x32xbf16, #tpu.memory_space<vmem>>, vector<1x32x32xbf16>
    %820 = vector.shape_cast %819 : vector<1x32x32xbf16> to vector<32x32xbf16>
    %cst_616 = arith.constant dense<0.000000e+00> : vector<8x32xf32>
    %821 = tpu.matmul %682, %820, %cst_616 {dimension_numbers = #tpu.dot_dimension_numbers<[1], [0], [0], [1], [0, 0, 1, 1], [], []>} : vector<8x32xbf16>, vector<32x32xbf16>, vector<8x32xf32> -> vector<8x32xf32>
    %822 = arith.addf %818, %821 : vector<8x32xf32>
    %c3_617 = arith.constant 3 : index
    %c0_618 = arith.constant 0 : index
    %c0_619 = arith.constant 0 : index
    %823 = vector.load %arg6[%c3_617, %c0_618, %c0_619] : memref<4x8x32xf32, #tpu.memory_space<vmem>>, vector<1x8x32xf32>
    %824 = vector.shape_cast %823 : vector<1x8x32xf32> to vector<8x32xf32>
    %825 = arith.addf %822, %824 : vector<8x32xf32>
    %826 = math.tanh %825 : vector<8x32xf32>
    %cst_620 = arith.constant 5.000000e-01 : f32
    %827 = vector.broadcast %cst_620 : f32 to vector<8x32xf32>
    %828 = arith.mulf %827, %826 : vector<8x32xf32>
    %cst_621 = arith.constant 5.000000e-01 : f32
    %829 = vector.broadcast %cst_621 : f32 to vector<8x32xf32>
    %830 = arith.addf %828, %829 : vector<8x32xf32>
    %831 = arith.mulf %804, %679 : vector<8x32xf32>
    %832 = arith.mulf %789, %815 : vector<8x32xf32>
    %833 = arith.addf %831, %832 : vector<8x32xf32>
    %834 = math.tanh %833 : vector<8x32xf32>
    %835 = arith.mulf %830, %834 : vector<8x32xf32>
    %836 = arith.truncf %835 : vector<8x32xf32> to vector<8x32xbf16>
    %c0_622 = arith.constant 0 : index
    %c0_623 = arith.constant 0 : index
    %c0_624 = arith.constant 0 : index
    %837 = vector.load %arg7[%c0_622, %c0_623, %c0_624] : memref<4x32x32xbf16, #tpu.memory_space<vmem>>, vector<1x32x32xbf16>
    %838 = vector.shape_cast %837 : vector<1x32x32xbf16> to vector<32x32xbf16>
    %cst_625 = arith.constant dense<0.000000e+00> : vector<8x32xf32>
    %839 = tpu.matmul %836, %838, %cst_625 {dimension_numbers = #tpu.dot_dimension_numbers<[1], [0], [0], [1], [0, 0, 1, 1], [], []>} : vector<8x32xbf16>, vector<32x32xbf16>, vector<8x32xf32> -> vector<8x32xf32>
    %c0_626 = arith.constant 0 : index
    %c0_627 = arith.constant 0 : index
    %c0_628 = arith.constant 0 : index
    %840 = vector.load %arg8[%c0_626, %c0_627, %c0_628] : memref<4x32x32xbf16, #tpu.memory_space<vmem>>, vector<1x32x32xbf16>
    %841 = vector.shape_cast %840 : vector<1x32x32xbf16> to vector<32x32xbf16>
    %cst_629 = arith.constant dense<0.000000e+00> : vector<8x32xf32>
    %842 = tpu.matmul %744, %841, %cst_629 {dimension_numbers = #tpu.dot_dimension_numbers<[1], [0], [0], [1], [0, 0, 1, 1], [], []>} : vector<8x32xbf16>, vector<32x32xbf16>, vector<8x32xf32> -> vector<8x32xf32>
    %843 = arith.addf %839, %842 : vector<8x32xf32>
    %c0_630 = arith.constant 0 : index
    %c0_631 = arith.constant 0 : index
    %c0_632 = arith.constant 0 : index
    %844 = vector.load %arg9[%c0_630, %c0_631, %c0_632] : memref<4x8x32xf32, #tpu.memory_space<vmem>>, vector<1x8x32xf32>
    %845 = vector.shape_cast %844 : vector<1x8x32xf32> to vector<8x32xf32>
    %846 = arith.addf %843, %845 : vector<8x32xf32>
    %847 = math.tanh %846 : vector<8x32xf32>
    %cst_633 = arith.constant 5.000000e-01 : f32
    %848 = vector.broadcast %cst_633 : f32 to vector<8x32xf32>
    %849 = arith.mulf %848, %847 : vector<8x32xf32>
    %cst_634 = arith.constant 5.000000e-01 : f32
    %850 = vector.broadcast %cst_634 : f32 to vector<8x32xf32>
    %851 = arith.addf %849, %850 : vector<8x32xf32>
    %c1_635 = arith.constant 1 : index
    %c0_636 = arith.constant 0 : index
    %c0_637 = arith.constant 0 : index
    %852 = vector.load %arg7[%c1_635, %c0_636, %c0_637] : memref<4x32x32xbf16, #tpu.memory_space<vmem>>, vector<1x32x32xbf16>
    %853 = vector.shape_cast %852 : vector<1x32x32xbf16> to vector<32x32xbf16>
    %cst_638 = arith.constant dense<0.000000e+00> : vector<8x32xf32>
    %854 = tpu.matmul %836, %853, %cst_638 {dimension_numbers = #tpu.dot_dimension_numbers<[1], [0], [0], [1], [0, 0, 1, 1], [], []>} : vector<8x32xbf16>, vector<32x32xbf16>, vector<8x32xf32> -> vector<8x32xf32>
    %c1_639 = arith.constant 1 : index
    %c0_640 = arith.constant 0 : index
    %c0_641 = arith.constant 0 : index
    %855 = vector.load %arg8[%c1_639, %c0_640, %c0_641] : memref<4x32x32xbf16, #tpu.memory_space<vmem>>, vector<1x32x32xbf16>
    %856 = vector.shape_cast %855 : vector<1x32x32xbf16> to vector<32x32xbf16>
    %cst_642 = arith.constant dense<0.000000e+00> : vector<8x32xf32>
    %857 = tpu.matmul %744, %856, %cst_642 {dimension_numbers = #tpu.dot_dimension_numbers<[1], [0], [0], [1], [0, 0, 1, 1], [], []>} : vector<8x32xbf16>, vector<32x32xbf16>, vector<8x32xf32> -> vector<8x32xf32>
    %858 = arith.addf %854, %857 : vector<8x32xf32>
    %c1_643 = arith.constant 1 : index
    %c0_644 = arith.constant 0 : index
    %c0_645 = arith.constant 0 : index
    %859 = vector.load %arg9[%c1_643, %c0_644, %c0_645] : memref<4x8x32xf32, #tpu.memory_space<vmem>>, vector<1x8x32xf32>
    %860 = vector.shape_cast %859 : vector<1x8x32xf32> to vector<8x32xf32>
    %861 = arith.addf %858, %860 : vector<8x32xf32>
    %862 = math.tanh %861 : vector<8x32xf32>
    %cst_646 = arith.constant 5.000000e-01 : f32
    %863 = vector.broadcast %cst_646 : f32 to vector<8x32xf32>
    %864 = arith.mulf %863, %862 : vector<8x32xf32>
    %cst_647 = arith.constant 5.000000e-01 : f32
    %865 = vector.broadcast %cst_647 : f32 to vector<8x32xf32>
    %866 = arith.addf %864, %865 : vector<8x32xf32>
    %c2_648 = arith.constant 2 : index
    %c0_649 = arith.constant 0 : index
    %c0_650 = arith.constant 0 : index
    %867 = vector.load %arg7[%c2_648, %c0_649, %c0_650] : memref<4x32x32xbf16, #tpu.memory_space<vmem>>, vector<1x32x32xbf16>
    %868 = vector.shape_cast %867 : vector<1x32x32xbf16> to vector<32x32xbf16>
    %cst_651 = arith.constant dense<0.000000e+00> : vector<8x32xf32>
    %869 = tpu.matmul %836, %868, %cst_651 {dimension_numbers = #tpu.dot_dimension_numbers<[1], [0], [0], [1], [0, 0, 1, 1], [], []>} : vector<8x32xbf16>, vector<32x32xbf16>, vector<8x32xf32> -> vector<8x32xf32>
    %c2_652 = arith.constant 2 : index
    %c0_653 = arith.constant 0 : index
    %c0_654 = arith.constant 0 : index
    %870 = vector.load %arg8[%c2_652, %c0_653, %c0_654] : memref<4x32x32xbf16, #tpu.memory_space<vmem>>, vector<1x32x32xbf16>
    %871 = vector.shape_cast %870 : vector<1x32x32xbf16> to vector<32x32xbf16>
    %cst_655 = arith.constant dense<0.000000e+00> : vector<8x32xf32>
    %872 = tpu.matmul %744, %871, %cst_655 {dimension_numbers = #tpu.dot_dimension_numbers<[1], [0], [0], [1], [0, 0, 1, 1], [], []>} : vector<8x32xbf16>, vector<32x32xbf16>, vector<8x32xf32> -> vector<8x32xf32>
    %873 = arith.addf %869, %872 : vector<8x32xf32>
    %c2_656 = arith.constant 2 : index
    %c0_657 = arith.constant 0 : index
    %c0_658 = arith.constant 0 : index
    %874 = vector.load %arg9[%c2_656, %c0_657, %c0_658] : memref<4x8x32xf32, #tpu.memory_space<vmem>>, vector<1x8x32xf32>
    %875 = vector.shape_cast %874 : vector<1x8x32xf32> to vector<8x32xf32>
    %876 = arith.addf %873, %875 : vector<8x32xf32>
    %877 = math.tanh %876 : vector<8x32xf32>
    %c3_659 = arith.constant 3 : index
    %c0_660 = arith.constant 0 : index
    %c0_661 = arith.constant 0 : index
    %878 = vector.load %arg7[%c3_659, %c0_660, %c0_661] : memref<4x32x32xbf16, #tpu.memory_space<vmem>>, vector<1x32x32xbf16>
    %879 = vector.shape_cast %878 : vector<1x32x32xbf16> to vector<32x32xbf16>
    %cst_662 = arith.constant dense<0.000000e+00> : vector<8x32xf32>
    %880 = tpu.matmul %836, %879, %cst_662 {dimension_numbers = #tpu.dot_dimension_numbers<[1], [0], [0], [1], [0, 0, 1, 1], [], []>} : vector<8x32xbf16>, vector<32x32xbf16>, vector<8x32xf32> -> vector<8x32xf32>
    %c3_663 = arith.constant 3 : index
    %c0_664 = arith.constant 0 : index
    %c0_665 = arith.constant 0 : index
    %881 = vector.load %arg8[%c3_663, %c0_664, %c0_665] : memref<4x32x32xbf16, #tpu.memory_space<vmem>>, vector<1x32x32xbf16>
    %882 = vector.shape_cast %881 : vector<1x32x32xbf16> to vector<32x32xbf16>
    %cst_666 = arith.constant dense<0.000000e+00> : vector<8x32xf32>
    %883 = tpu.matmul %744, %882, %cst_666 {dimension_numbers = #tpu.dot_dimension_numbers<[1], [0], [0], [1], [0, 0, 1, 1], [], []>} : vector<8x32xbf16>, vector<32x32xbf16>, vector<8x32xf32> -> vector<8x32xf32>
    %884 = arith.addf %880, %883 : vector<8x32xf32>
    %c3_667 = arith.constant 3 : index
    %c0_668 = arith.constant 0 : index
    %c0_669 = arith.constant 0 : index
    %885 = vector.load %arg9[%c3_667, %c0_668, %c0_669] : memref<4x8x32xf32, #tpu.memory_space<vmem>>, vector<1x8x32xf32>
    %886 = vector.shape_cast %885 : vector<1x8x32xf32> to vector<8x32xf32>
    %887 = arith.addf %884, %886 : vector<8x32xf32>
    %888 = math.tanh %887 : vector<8x32xf32>
    %cst_670 = arith.constant 5.000000e-01 : f32
    %889 = vector.broadcast %cst_670 : f32 to vector<8x32xf32>
    %890 = arith.mulf %889, %888 : vector<8x32xf32>
    %cst_671 = arith.constant 5.000000e-01 : f32
    %891 = vector.broadcast %cst_671 : f32 to vector<8x32xf32>
    %892 = arith.addf %890, %891 : vector<8x32xf32>
    %893 = arith.mulf %866, %741 : vector<8x32xf32>
    %894 = arith.mulf %851, %877 : vector<8x32xf32>
    %895 = arith.addf %893, %894 : vector<8x32xf32>
    %896 = math.tanh %895 : vector<8x32xf32>
    %897 = arith.mulf %892, %896 : vector<8x32xf32>
    %898 = arith.truncf %897 : vector<8x32xf32> to vector<8x32xbf16>
    %c0_672 = arith.constant 0 : index
    %c0_673 = arith.constant 0 : index
    %899 = vector.load %arg2[%c0_672, %c0_673] : memref<32x128xf32, #tpu.memory_space<vmem>>, vector<32x128xf32>
    %cst_674 = arith.constant dense<0.000000e+00> : vector<8x128xf32>
    %900 = tpu.matmul %897, %899, %cst_674 {dimension_numbers = #tpu.dot_dimension_numbers<[1], [0], [0], [1], [0, 0, 1, 1], [], []>} : vector<8x32xf32>, vector<32x128xf32>, vector<8x128xf32> -> vector<8x128xf32>
    %c0_675 = arith.constant 0 : index
    %c0_676 = arith.constant 0 : index
    %901 = vector.load %arg3[%c0_675, %c0_676] : memref<8x128xf32, #tpu.memory_space<vmem>>, vector<8x128xf32>
    %902 = arith.addf %900, %901 : vector<8x128xf32>
    %903 = tpu.iota {dimensions = array<i32: 1>} : vector<8x128xi32>
    %904 = tpu.bitcast %902 : vector<8x128xf32> -> vector<8x128xi32>
    %c0_i32_677 = arith.constant 0 : i32
    %905 = vector.broadcast %c0_i32_677 : i32 to vector<8x128xi32>
    %906 = arith.cmpi slt, %904, %905 : vector<8x128xi32>
    %c-2147483648_i32_678 = arith.constant -2147483648 : i32
    %907 = vector.broadcast %c-2147483648_i32_678 : i32 to vector<8x128xi32>
    %908 = arith.subi %907, %904 : vector<8x128xi32>
    %909 = arith.select %906, %908, %904 : vector<8x128xi1>, vector<8x128xi32>
    %c-128_i32_679 = arith.constant -128 : i32
    %910 = vector.broadcast %c-128_i32_679 : i32 to vector<8x128xi32>
    %911 = arith.andi %909, %910 : vector<8x128xi32>
    %c127_i32_680 = arith.constant 127 : i32
    %912 = vector.broadcast %c127_i32_680 : i32 to vector<8x128xi32>
    %913 = arith.subi %912, %903 : vector<8x128xi32>
    %914 = arith.ori %911, %913 : vector<8x128xi32>
    %cst_681 = arith.constant dense<-2147483648> : vector<8xi32>
    %915 = vector.multi_reduction <maxsi>, %914, %cst_681 [1] : vector<8x128xi32> to vector<8xi32>
    %916 = vector.shape_cast %915 : vector<8xi32> to vector<8x1xi32>
    %c127_i32_682 = arith.constant 127 : i32
    %917 = vector.broadcast %c127_i32_682 : i32 to vector<8x1xi32>
    %918 = arith.andi %916, %917 : vector<8x1xi32>
    %c127_i32_683 = arith.constant 127 : i32
    %919 = vector.broadcast %c127_i32_683 : i32 to vector<8x1xi32>
    %920 = arith.subi %919, %918 : vector<8x1xi32>
    %921 = vector.broadcast %920 : vector<8x1xi32> to vector<8x128xi32>
    %922 = arith.cmpi eq, %903, %921 : vector<8x128xi32>
    %923 = arith.extui %922 : vector<8x128xi1> to vector<8x128xi32>
    %924 = arith.sitofp %923 : vector<8x128xi32> to vector<8x128xf32>
    %925 = arith.truncf %924 : vector<8x128xf32> to vector<8x128xbf16>
    %c0_684 = arith.constant 0 : index
    %c0_685 = arith.constant 0 : index
    %926 = vector.load %arg1[%c0_684, %c0_685] : memref<128x32xbf16, #tpu.memory_space<vmem>>, vector<128x32xbf16>
    %cst_686 = arith.constant dense<0.000000e+00> : vector<8x32xf32>
    %927 = tpu.matmul %925, %926, %cst_686 {dimension_numbers = #tpu.dot_dimension_numbers<[1], [0], [0], [1], [0, 0, 1, 1], [], []>} : vector<8x128xbf16>, vector<128x32xbf16>, vector<8x32xf32> -> vector<8x32xf32>
    %928 = arith.truncf %927 : vector<8x32xf32> to vector<8x32xbf16>
    %c0_687 = arith.constant 0 : index
    %c0_688 = arith.constant 0 : index
    %c0_689 = arith.constant 0 : index
    %929 = vector.load %arg4[%c0_687, %c0_688, %c0_689] : memref<4x32x32xbf16, #tpu.memory_space<vmem>>, vector<1x32x32xbf16>
    %930 = vector.shape_cast %929 : vector<1x32x32xbf16> to vector<32x32xbf16>
    %cst_690 = arith.constant dense<0.000000e+00> : vector<8x32xf32>
    %931 = tpu.matmul %928, %930, %cst_690 {dimension_numbers = #tpu.dot_dimension_numbers<[1], [0], [0], [1], [0, 0, 1, 1], [], []>} : vector<8x32xbf16>, vector<32x32xbf16>, vector<8x32xf32> -> vector<8x32xf32>
    %c0_691 = arith.constant 0 : index
    %c0_692 = arith.constant 0 : index
    %c0_693 = arith.constant 0 : index
    %932 = vector.load %arg5[%c0_691, %c0_692, %c0_693] : memref<4x32x32xbf16, #tpu.memory_space<vmem>>, vector<1x32x32xbf16>
    %933 = vector.shape_cast %932 : vector<1x32x32xbf16> to vector<32x32xbf16>
    %cst_694 = arith.constant dense<0.000000e+00> : vector<8x32xf32>
    %934 = tpu.matmul %836, %933, %cst_694 {dimension_numbers = #tpu.dot_dimension_numbers<[1], [0], [0], [1], [0, 0, 1, 1], [], []>} : vector<8x32xbf16>, vector<32x32xbf16>, vector<8x32xf32> -> vector<8x32xf32>
    %935 = arith.addf %931, %934 : vector<8x32xf32>
    %c0_695 = arith.constant 0 : index
    %c0_696 = arith.constant 0 : index
    %c0_697 = arith.constant 0 : index
    %936 = vector.load %arg6[%c0_695, %c0_696, %c0_697] : memref<4x8x32xf32, #tpu.memory_space<vmem>>, vector<1x8x32xf32>
    %937 = vector.shape_cast %936 : vector<1x8x32xf32> to vector<8x32xf32>
    %938 = arith.addf %935, %937 : vector<8x32xf32>
    %939 = math.tanh %938 : vector<8x32xf32>
    %cst_698 = arith.constant 5.000000e-01 : f32
    %940 = vector.broadcast %cst_698 : f32 to vector<8x32xf32>
    %941 = arith.mulf %940, %939 : vector<8x32xf32>
    %cst_699 = arith.constant 5.000000e-01 : f32
    %942 = vector.broadcast %cst_699 : f32 to vector<8x32xf32>
    %943 = arith.addf %941, %942 : vector<8x32xf32>
    %c1_700 = arith.constant 1 : index
    %c0_701 = arith.constant 0 : index
    %c0_702 = arith.constant 0 : index
    %944 = vector.load %arg4[%c1_700, %c0_701, %c0_702] : memref<4x32x32xbf16, #tpu.memory_space<vmem>>, vector<1x32x32xbf16>
    %945 = vector.shape_cast %944 : vector<1x32x32xbf16> to vector<32x32xbf16>
    %cst_703 = arith.constant dense<0.000000e+00> : vector<8x32xf32>
    %946 = tpu.matmul %928, %945, %cst_703 {dimension_numbers = #tpu.dot_dimension_numbers<[1], [0], [0], [1], [0, 0, 1, 1], [], []>} : vector<8x32xbf16>, vector<32x32xbf16>, vector<8x32xf32> -> vector<8x32xf32>
    %c1_704 = arith.constant 1 : index
    %c0_705 = arith.constant 0 : index
    %c0_706 = arith.constant 0 : index
    %947 = vector.load %arg5[%c1_704, %c0_705, %c0_706] : memref<4x32x32xbf16, #tpu.memory_space<vmem>>, vector<1x32x32xbf16>
    %948 = vector.shape_cast %947 : vector<1x32x32xbf16> to vector<32x32xbf16>
    %cst_707 = arith.constant dense<0.000000e+00> : vector<8x32xf32>
    %949 = tpu.matmul %836, %948, %cst_707 {dimension_numbers = #tpu.dot_dimension_numbers<[1], [0], [0], [1], [0, 0, 1, 1], [], []>} : vector<8x32xbf16>, vector<32x32xbf16>, vector<8x32xf32> -> vector<8x32xf32>
    %950 = arith.addf %946, %949 : vector<8x32xf32>
    %c1_708 = arith.constant 1 : index
    %c0_709 = arith.constant 0 : index
    %c0_710 = arith.constant 0 : index
    %951 = vector.load %arg6[%c1_708, %c0_709, %c0_710] : memref<4x8x32xf32, #tpu.memory_space<vmem>>, vector<1x8x32xf32>
    %952 = vector.shape_cast %951 : vector<1x8x32xf32> to vector<8x32xf32>
    %953 = arith.addf %950, %952 : vector<8x32xf32>
    %954 = math.tanh %953 : vector<8x32xf32>
    %cst_711 = arith.constant 5.000000e-01 : f32
    %955 = vector.broadcast %cst_711 : f32 to vector<8x32xf32>
    %956 = arith.mulf %955, %954 : vector<8x32xf32>
    %cst_712 = arith.constant 5.000000e-01 : f32
    %957 = vector.broadcast %cst_712 : f32 to vector<8x32xf32>
    %958 = arith.addf %956, %957 : vector<8x32xf32>
    %c2_713 = arith.constant 2 : index
    %c0_714 = arith.constant 0 : index
    %c0_715 = arith.constant 0 : index
    %959 = vector.load %arg4[%c2_713, %c0_714, %c0_715] : memref<4x32x32xbf16, #tpu.memory_space<vmem>>, vector<1x32x32xbf16>
    %960 = vector.shape_cast %959 : vector<1x32x32xbf16> to vector<32x32xbf16>
    %cst_716 = arith.constant dense<0.000000e+00> : vector<8x32xf32>
    %961 = tpu.matmul %928, %960, %cst_716 {dimension_numbers = #tpu.dot_dimension_numbers<[1], [0], [0], [1], [0, 0, 1, 1], [], []>} : vector<8x32xbf16>, vector<32x32xbf16>, vector<8x32xf32> -> vector<8x32xf32>
    %c2_717 = arith.constant 2 : index
    %c0_718 = arith.constant 0 : index
    %c0_719 = arith.constant 0 : index
    %962 = vector.load %arg5[%c2_717, %c0_718, %c0_719] : memref<4x32x32xbf16, #tpu.memory_space<vmem>>, vector<1x32x32xbf16>
    %963 = vector.shape_cast %962 : vector<1x32x32xbf16> to vector<32x32xbf16>
    %cst_720 = arith.constant dense<0.000000e+00> : vector<8x32xf32>
    %964 = tpu.matmul %836, %963, %cst_720 {dimension_numbers = #tpu.dot_dimension_numbers<[1], [0], [0], [1], [0, 0, 1, 1], [], []>} : vector<8x32xbf16>, vector<32x32xbf16>, vector<8x32xf32> -> vector<8x32xf32>
    %965 = arith.addf %961, %964 : vector<8x32xf32>
    %c2_721 = arith.constant 2 : index
    %c0_722 = arith.constant 0 : index
    %c0_723 = arith.constant 0 : index
    %966 = vector.load %arg6[%c2_721, %c0_722, %c0_723] : memref<4x8x32xf32, #tpu.memory_space<vmem>>, vector<1x8x32xf32>
    %967 = vector.shape_cast %966 : vector<1x8x32xf32> to vector<8x32xf32>
    %968 = arith.addf %965, %967 : vector<8x32xf32>
    %969 = math.tanh %968 : vector<8x32xf32>
    %c3_724 = arith.constant 3 : index
    %c0_725 = arith.constant 0 : index
    %c0_726 = arith.constant 0 : index
    %970 = vector.load %arg4[%c3_724, %c0_725, %c0_726] : memref<4x32x32xbf16, #tpu.memory_space<vmem>>, vector<1x32x32xbf16>
    %971 = vector.shape_cast %970 : vector<1x32x32xbf16> to vector<32x32xbf16>
    %cst_727 = arith.constant dense<0.000000e+00> : vector<8x32xf32>
    %972 = tpu.matmul %928, %971, %cst_727 {dimension_numbers = #tpu.dot_dimension_numbers<[1], [0], [0], [1], [0, 0, 1, 1], [], []>} : vector<8x32xbf16>, vector<32x32xbf16>, vector<8x32xf32> -> vector<8x32xf32>
    %c3_728 = arith.constant 3 : index
    %c0_729 = arith.constant 0 : index
    %c0_730 = arith.constant 0 : index
    %973 = vector.load %arg5[%c3_728, %c0_729, %c0_730] : memref<4x32x32xbf16, #tpu.memory_space<vmem>>, vector<1x32x32xbf16>
    %974 = vector.shape_cast %973 : vector<1x32x32xbf16> to vector<32x32xbf16>
    %cst_731 = arith.constant dense<0.000000e+00> : vector<8x32xf32>
    %975 = tpu.matmul %836, %974, %cst_731 {dimension_numbers = #tpu.dot_dimension_numbers<[1], [0], [0], [1], [0, 0, 1, 1], [], []>} : vector<8x32xbf16>, vector<32x32xbf16>, vector<8x32xf32> -> vector<8x32xf32>
    %976 = arith.addf %972, %975 : vector<8x32xf32>
    %c3_732 = arith.constant 3 : index
    %c0_733 = arith.constant 0 : index
    %c0_734 = arith.constant 0 : index
    %977 = vector.load %arg6[%c3_732, %c0_733, %c0_734] : memref<4x8x32xf32, #tpu.memory_space<vmem>>, vector<1x8x32xf32>
    %978 = vector.shape_cast %977 : vector<1x8x32xf32> to vector<8x32xf32>
    %979 = arith.addf %976, %978 : vector<8x32xf32>
    %980 = math.tanh %979 : vector<8x32xf32>
    %cst_735 = arith.constant 5.000000e-01 : f32
    %981 = vector.broadcast %cst_735 : f32 to vector<8x32xf32>
    %982 = arith.mulf %981, %980 : vector<8x32xf32>
    %cst_736 = arith.constant 5.000000e-01 : f32
    %983 = vector.broadcast %cst_736 : f32 to vector<8x32xf32>
    %984 = arith.addf %982, %983 : vector<8x32xf32>
    %985 = arith.mulf %958, %833 : vector<8x32xf32>
    %986 = arith.mulf %943, %969 : vector<8x32xf32>
    %987 = arith.addf %985, %986 : vector<8x32xf32>
    %988 = math.tanh %987 : vector<8x32xf32>
    %989 = arith.mulf %984, %988 : vector<8x32xf32>
    %990 = arith.truncf %989 : vector<8x32xf32> to vector<8x32xbf16>
    %c0_737 = arith.constant 0 : index
    %c0_738 = arith.constant 0 : index
    %c0_739 = arith.constant 0 : index
    %991 = vector.load %arg7[%c0_737, %c0_738, %c0_739] : memref<4x32x32xbf16, #tpu.memory_space<vmem>>, vector<1x32x32xbf16>
    %992 = vector.shape_cast %991 : vector<1x32x32xbf16> to vector<32x32xbf16>
    %cst_740 = arith.constant dense<0.000000e+00> : vector<8x32xf32>
    %993 = tpu.matmul %990, %992, %cst_740 {dimension_numbers = #tpu.dot_dimension_numbers<[1], [0], [0], [1], [0, 0, 1, 1], [], []>} : vector<8x32xbf16>, vector<32x32xbf16>, vector<8x32xf32> -> vector<8x32xf32>
    %c0_741 = arith.constant 0 : index
    %c0_742 = arith.constant 0 : index
    %c0_743 = arith.constant 0 : index
    %994 = vector.load %arg8[%c0_741, %c0_742, %c0_743] : memref<4x32x32xbf16, #tpu.memory_space<vmem>>, vector<1x32x32xbf16>
    %995 = vector.shape_cast %994 : vector<1x32x32xbf16> to vector<32x32xbf16>
    %cst_744 = arith.constant dense<0.000000e+00> : vector<8x32xf32>
    %996 = tpu.matmul %898, %995, %cst_744 {dimension_numbers = #tpu.dot_dimension_numbers<[1], [0], [0], [1], [0, 0, 1, 1], [], []>} : vector<8x32xbf16>, vector<32x32xbf16>, vector<8x32xf32> -> vector<8x32xf32>
    %997 = arith.addf %993, %996 : vector<8x32xf32>
    %c0_745 = arith.constant 0 : index
    %c0_746 = arith.constant 0 : index
    %c0_747 = arith.constant 0 : index
    %998 = vector.load %arg9[%c0_745, %c0_746, %c0_747] : memref<4x8x32xf32, #tpu.memory_space<vmem>>, vector<1x8x32xf32>
    %999 = vector.shape_cast %998 : vector<1x8x32xf32> to vector<8x32xf32>
    %1000 = arith.addf %997, %999 : vector<8x32xf32>
    %1001 = math.tanh %1000 : vector<8x32xf32>
    %cst_748 = arith.constant 5.000000e-01 : f32
    %1002 = vector.broadcast %cst_748 : f32 to vector<8x32xf32>
    %1003 = arith.mulf %1002, %1001 : vector<8x32xf32>
    %cst_749 = arith.constant 5.000000e-01 : f32
    %1004 = vector.broadcast %cst_749 : f32 to vector<8x32xf32>
    %1005 = arith.addf %1003, %1004 : vector<8x32xf32>
    %c1_750 = arith.constant 1 : index
    %c0_751 = arith.constant 0 : index
    %c0_752 = arith.constant 0 : index
    %1006 = vector.load %arg7[%c1_750, %c0_751, %c0_752] : memref<4x32x32xbf16, #tpu.memory_space<vmem>>, vector<1x32x32xbf16>
    %1007 = vector.shape_cast %1006 : vector<1x32x32xbf16> to vector<32x32xbf16>
    %cst_753 = arith.constant dense<0.000000e+00> : vector<8x32xf32>
    %1008 = tpu.matmul %990, %1007, %cst_753 {dimension_numbers = #tpu.dot_dimension_numbers<[1], [0], [0], [1], [0, 0, 1, 1], [], []>} : vector<8x32xbf16>, vector<32x32xbf16>, vector<8x32xf32> -> vector<8x32xf32>
    %c1_754 = arith.constant 1 : index
    %c0_755 = arith.constant 0 : index
    %c0_756 = arith.constant 0 : index
    %1009 = vector.load %arg8[%c1_754, %c0_755, %c0_756] : memref<4x32x32xbf16, #tpu.memory_space<vmem>>, vector<1x32x32xbf16>
    %1010 = vector.shape_cast %1009 : vector<1x32x32xbf16> to vector<32x32xbf16>
    %cst_757 = arith.constant dense<0.000000e+00> : vector<8x32xf32>
    %1011 = tpu.matmul %898, %1010, %cst_757 {dimension_numbers = #tpu.dot_dimension_numbers<[1], [0], [0], [1], [0, 0, 1, 1], [], []>} : vector<8x32xbf16>, vector<32x32xbf16>, vector<8x32xf32> -> vector<8x32xf32>
    %1012 = arith.addf %1008, %1011 : vector<8x32xf32>
    %c1_758 = arith.constant 1 : index
    %c0_759 = arith.constant 0 : index
    %c0_760 = arith.constant 0 : index
    %1013 = vector.load %arg9[%c1_758, %c0_759, %c0_760] : memref<4x8x32xf32, #tpu.memory_space<vmem>>, vector<1x8x32xf32>
    %1014 = vector.shape_cast %1013 : vector<1x8x32xf32> to vector<8x32xf32>
    %1015 = arith.addf %1012, %1014 : vector<8x32xf32>
    %1016 = math.tanh %1015 : vector<8x32xf32>
    %cst_761 = arith.constant 5.000000e-01 : f32
    %1017 = vector.broadcast %cst_761 : f32 to vector<8x32xf32>
    %1018 = arith.mulf %1017, %1016 : vector<8x32xf32>
    %cst_762 = arith.constant 5.000000e-01 : f32
    %1019 = vector.broadcast %cst_762 : f32 to vector<8x32xf32>
    %1020 = arith.addf %1018, %1019 : vector<8x32xf32>
    %c2_763 = arith.constant 2 : index
    %c0_764 = arith.constant 0 : index
    %c0_765 = arith.constant 0 : index
    %1021 = vector.load %arg7[%c2_763, %c0_764, %c0_765] : memref<4x32x32xbf16, #tpu.memory_space<vmem>>, vector<1x32x32xbf16>
    %1022 = vector.shape_cast %1021 : vector<1x32x32xbf16> to vector<32x32xbf16>
    %cst_766 = arith.constant dense<0.000000e+00> : vector<8x32xf32>
    %1023 = tpu.matmul %990, %1022, %cst_766 {dimension_numbers = #tpu.dot_dimension_numbers<[1], [0], [0], [1], [0, 0, 1, 1], [], []>} : vector<8x32xbf16>, vector<32x32xbf16>, vector<8x32xf32> -> vector<8x32xf32>
    %c2_767 = arith.constant 2 : index
    %c0_768 = arith.constant 0 : index
    %c0_769 = arith.constant 0 : index
    %1024 = vector.load %arg8[%c2_767, %c0_768, %c0_769] : memref<4x32x32xbf16, #tpu.memory_space<vmem>>, vector<1x32x32xbf16>
    %1025 = vector.shape_cast %1024 : vector<1x32x32xbf16> to vector<32x32xbf16>
    %cst_770 = arith.constant dense<0.000000e+00> : vector<8x32xf32>
    %1026 = tpu.matmul %898, %1025, %cst_770 {dimension_numbers = #tpu.dot_dimension_numbers<[1], [0], [0], [1], [0, 0, 1, 1], [], []>} : vector<8x32xbf16>, vector<32x32xbf16>, vector<8x32xf32> -> vector<8x32xf32>
    %1027 = arith.addf %1023, %1026 : vector<8x32xf32>
    %c2_771 = arith.constant 2 : index
    %c0_772 = arith.constant 0 : index
    %c0_773 = arith.constant 0 : index
    %1028 = vector.load %arg9[%c2_771, %c0_772, %c0_773] : memref<4x8x32xf32, #tpu.memory_space<vmem>>, vector<1x8x32xf32>
    %1029 = vector.shape_cast %1028 : vector<1x8x32xf32> to vector<8x32xf32>
    %1030 = arith.addf %1027, %1029 : vector<8x32xf32>
    %1031 = math.tanh %1030 : vector<8x32xf32>
    %c3_774 = arith.constant 3 : index
    %c0_775 = arith.constant 0 : index
    %c0_776 = arith.constant 0 : index
    %1032 = vector.load %arg7[%c3_774, %c0_775, %c0_776] : memref<4x32x32xbf16, #tpu.memory_space<vmem>>, vector<1x32x32xbf16>
    %1033 = vector.shape_cast %1032 : vector<1x32x32xbf16> to vector<32x32xbf16>
    %cst_777 = arith.constant dense<0.000000e+00> : vector<8x32xf32>
    %1034 = tpu.matmul %990, %1033, %cst_777 {dimension_numbers = #tpu.dot_dimension_numbers<[1], [0], [0], [1], [0, 0, 1, 1], [], []>} : vector<8x32xbf16>, vector<32x32xbf16>, vector<8x32xf32> -> vector<8x32xf32>
    %c3_778 = arith.constant 3 : index
    %c0_779 = arith.constant 0 : index
    %c0_780 = arith.constant 0 : index
    %1035 = vector.load %arg8[%c3_778, %c0_779, %c0_780] : memref<4x32x32xbf16, #tpu.memory_space<vmem>>, vector<1x32x32xbf16>
    %1036 = vector.shape_cast %1035 : vector<1x32x32xbf16> to vector<32x32xbf16>
    %cst_781 = arith.constant dense<0.000000e+00> : vector<8x32xf32>
    %1037 = tpu.matmul %898, %1036, %cst_781 {dimension_numbers = #tpu.dot_dimension_numbers<[1], [0], [0], [1], [0, 0, 1, 1], [], []>} : vector<8x32xbf16>, vector<32x32xbf16>, vector<8x32xf32> -> vector<8x32xf32>
    %1038 = arith.addf %1034, %1037 : vector<8x32xf32>
    %c3_782 = arith.constant 3 : index
    %c0_783 = arith.constant 0 : index
    %c0_784 = arith.constant 0 : index
    %1039 = vector.load %arg9[%c3_782, %c0_783, %c0_784] : memref<4x8x32xf32, #tpu.memory_space<vmem>>, vector<1x8x32xf32>
    %1040 = vector.shape_cast %1039 : vector<1x8x32xf32> to vector<8x32xf32>
    %1041 = arith.addf %1038, %1040 : vector<8x32xf32>
    %1042 = math.tanh %1041 : vector<8x32xf32>
    %cst_785 = arith.constant 5.000000e-01 : f32
    %1043 = vector.broadcast %cst_785 : f32 to vector<8x32xf32>
    %1044 = arith.mulf %1043, %1042 : vector<8x32xf32>
    %cst_786 = arith.constant 5.000000e-01 : f32
    %1045 = vector.broadcast %cst_786 : f32 to vector<8x32xf32>
    %1046 = arith.addf %1044, %1045 : vector<8x32xf32>
    %1047 = arith.mulf %1020, %895 : vector<8x32xf32>
    %1048 = arith.mulf %1005, %1031 : vector<8x32xf32>
    %1049 = arith.addf %1047, %1048 : vector<8x32xf32>
    %1050 = math.tanh %1049 : vector<8x32xf32>
    %1051 = arith.mulf %1046, %1050 : vector<8x32xf32>
    %1052 = arith.truncf %1051 : vector<8x32xf32> to vector<8x32xbf16>
    %c0_787 = arith.constant 0 : index
    %c0_788 = arith.constant 0 : index
    %1053 = vector.load %arg2[%c0_787, %c0_788] : memref<32x128xf32, #tpu.memory_space<vmem>>, vector<32x128xf32>
    %cst_789 = arith.constant dense<0.000000e+00> : vector<8x128xf32>
    %1054 = tpu.matmul %1051, %1053, %cst_789 {dimension_numbers = #tpu.dot_dimension_numbers<[1], [0], [0], [1], [0, 0, 1, 1], [], []>} : vector<8x32xf32>, vector<32x128xf32>, vector<8x128xf32> -> vector<8x128xf32>
    %c0_790 = arith.constant 0 : index
    %c0_791 = arith.constant 0 : index
    %1055 = vector.load %arg3[%c0_790, %c0_791] : memref<8x128xf32, #tpu.memory_space<vmem>>, vector<8x128xf32>
    %1056 = arith.addf %1054, %1055 : vector<8x128xf32>
    %1057 = tpu.iota {dimensions = array<i32: 1>} : vector<8x128xi32>
    %1058 = tpu.bitcast %1056 : vector<8x128xf32> -> vector<8x128xi32>
    %c0_i32_792 = arith.constant 0 : i32
    %1059 = vector.broadcast %c0_i32_792 : i32 to vector<8x128xi32>
    %1060 = arith.cmpi slt, %1058, %1059 : vector<8x128xi32>
    %c-2147483648_i32_793 = arith.constant -2147483648 : i32
    %1061 = vector.broadcast %c-2147483648_i32_793 : i32 to vector<8x128xi32>
    %1062 = arith.subi %1061, %1058 : vector<8x128xi32>
    %1063 = arith.select %1060, %1062, %1058 : vector<8x128xi1>, vector<8x128xi32>
    %c-128_i32_794 = arith.constant -128 : i32
    %1064 = vector.broadcast %c-128_i32_794 : i32 to vector<8x128xi32>
    %1065 = arith.andi %1063, %1064 : vector<8x128xi32>
    %c127_i32_795 = arith.constant 127 : i32
    %1066 = vector.broadcast %c127_i32_795 : i32 to vector<8x128xi32>
    %1067 = arith.subi %1066, %1057 : vector<8x128xi32>
    %1068 = arith.ori %1065, %1067 : vector<8x128xi32>
    %cst_796 = arith.constant dense<-2147483648> : vector<8xi32>
    %1069 = vector.multi_reduction <maxsi>, %1068, %cst_796 [1] : vector<8x128xi32> to vector<8xi32>
    %1070 = vector.shape_cast %1069 : vector<8xi32> to vector<8x1xi32>
    %c127_i32_797 = arith.constant 127 : i32
    %1071 = vector.broadcast %c127_i32_797 : i32 to vector<8x1xi32>
    %1072 = arith.andi %1070, %1071 : vector<8x1xi32>
    %c127_i32_798 = arith.constant 127 : i32
    %1073 = vector.broadcast %c127_i32_798 : i32 to vector<8x1xi32>
    %1074 = arith.subi %1073, %1072 : vector<8x1xi32>
    %1075 = vector.broadcast %1074 : vector<8x1xi32> to vector<8x128xi32>
    %1076 = arith.cmpi eq, %1057, %1075 : vector<8x128xi32>
    %1077 = arith.extui %1076 : vector<8x128xi1> to vector<8x128xi32>
    %1078 = arith.sitofp %1077 : vector<8x128xi32> to vector<8x128xf32>
    %1079 = arith.truncf %1078 : vector<8x128xf32> to vector<8x128xbf16>
    %c0_799 = arith.constant 0 : index
    %c0_800 = arith.constant 0 : index
    %1080 = vector.load %arg1[%c0_799, %c0_800] : memref<128x32xbf16, #tpu.memory_space<vmem>>, vector<128x32xbf16>
    %cst_801 = arith.constant dense<0.000000e+00> : vector<8x32xf32>
    %1081 = tpu.matmul %1079, %1080, %cst_801 {dimension_numbers = #tpu.dot_dimension_numbers<[1], [0], [0], [1], [0, 0, 1, 1], [], []>} : vector<8x128xbf16>, vector<128x32xbf16>, vector<8x32xf32> -> vector<8x32xf32>
    %1082 = arith.truncf %1081 : vector<8x32xf32> to vector<8x32xbf16>
    %c0_802 = arith.constant 0 : index
    %c0_803 = arith.constant 0 : index
    %c0_804 = arith.constant 0 : index
    %1083 = vector.load %arg4[%c0_802, %c0_803, %c0_804] : memref<4x32x32xbf16, #tpu.memory_space<vmem>>, vector<1x32x32xbf16>
    %1084 = vector.shape_cast %1083 : vector<1x32x32xbf16> to vector<32x32xbf16>
    %cst_805 = arith.constant dense<0.000000e+00> : vector<8x32xf32>
    %1085 = tpu.matmul %1082, %1084, %cst_805 {dimension_numbers = #tpu.dot_dimension_numbers<[1], [0], [0], [1], [0, 0, 1, 1], [], []>} : vector<8x32xbf16>, vector<32x32xbf16>, vector<8x32xf32> -> vector<8x32xf32>
    %c0_806 = arith.constant 0 : index
    %c0_807 = arith.constant 0 : index
    %c0_808 = arith.constant 0 : index
    %1086 = vector.load %arg5[%c0_806, %c0_807, %c0_808] : memref<4x32x32xbf16, #tpu.memory_space<vmem>>, vector<1x32x32xbf16>
    %1087 = vector.shape_cast %1086 : vector<1x32x32xbf16> to vector<32x32xbf16>
    %cst_809 = arith.constant dense<0.000000e+00> : vector<8x32xf32>
    %1088 = tpu.matmul %990, %1087, %cst_809 {dimension_numbers = #tpu.dot_dimension_numbers<[1], [0], [0], [1], [0, 0, 1, 1], [], []>} : vector<8x32xbf16>, vector<32x32xbf16>, vector<8x32xf32> -> vector<8x32xf32>
    %1089 = arith.addf %1085, %1088 : vector<8x32xf32>
    %c0_810 = arith.constant 0 : index
    %c0_811 = arith.constant 0 : index
    %c0_812 = arith.constant 0 : index
    %1090 = vector.load %arg6[%c0_810, %c0_811, %c0_812] : memref<4x8x32xf32, #tpu.memory_space<vmem>>, vector<1x8x32xf32>
    %1091 = vector.shape_cast %1090 : vector<1x8x32xf32> to vector<8x32xf32>
    %1092 = arith.addf %1089, %1091 : vector<8x32xf32>
    %1093 = math.tanh %1092 : vector<8x32xf32>
    %cst_813 = arith.constant 5.000000e-01 : f32
    %1094 = vector.broadcast %cst_813 : f32 to vector<8x32xf32>
    %1095 = arith.mulf %1094, %1093 : vector<8x32xf32>
    %cst_814 = arith.constant 5.000000e-01 : f32
    %1096 = vector.broadcast %cst_814 : f32 to vector<8x32xf32>
    %1097 = arith.addf %1095, %1096 : vector<8x32xf32>
    %c1_815 = arith.constant 1 : index
    %c0_816 = arith.constant 0 : index
    %c0_817 = arith.constant 0 : index
    %1098 = vector.load %arg4[%c1_815, %c0_816, %c0_817] : memref<4x32x32xbf16, #tpu.memory_space<vmem>>, vector<1x32x32xbf16>
    %1099 = vector.shape_cast %1098 : vector<1x32x32xbf16> to vector<32x32xbf16>
    %cst_818 = arith.constant dense<0.000000e+00> : vector<8x32xf32>
    %1100 = tpu.matmul %1082, %1099, %cst_818 {dimension_numbers = #tpu.dot_dimension_numbers<[1], [0], [0], [1], [0, 0, 1, 1], [], []>} : vector<8x32xbf16>, vector<32x32xbf16>, vector<8x32xf32> -> vector<8x32xf32>
    %c1_819 = arith.constant 1 : index
    %c0_820 = arith.constant 0 : index
    %c0_821 = arith.constant 0 : index
    %1101 = vector.load %arg5[%c1_819, %c0_820, %c0_821] : memref<4x32x32xbf16, #tpu.memory_space<vmem>>, vector<1x32x32xbf16>
    %1102 = vector.shape_cast %1101 : vector<1x32x32xbf16> to vector<32x32xbf16>
    %cst_822 = arith.constant dense<0.000000e+00> : vector<8x32xf32>
    %1103 = tpu.matmul %990, %1102, %cst_822 {dimension_numbers = #tpu.dot_dimension_numbers<[1], [0], [0], [1], [0, 0, 1, 1], [], []>} : vector<8x32xbf16>, vector<32x32xbf16>, vector<8x32xf32> -> vector<8x32xf32>
    %1104 = arith.addf %1100, %1103 : vector<8x32xf32>
    %c1_823 = arith.constant 1 : index
    %c0_824 = arith.constant 0 : index
    %c0_825 = arith.constant 0 : index
    %1105 = vector.load %arg6[%c1_823, %c0_824, %c0_825] : memref<4x8x32xf32, #tpu.memory_space<vmem>>, vector<1x8x32xf32>
    %1106 = vector.shape_cast %1105 : vector<1x8x32xf32> to vector<8x32xf32>
    %1107 = arith.addf %1104, %1106 : vector<8x32xf32>
    %1108 = math.tanh %1107 : vector<8x32xf32>
    %cst_826 = arith.constant 5.000000e-01 : f32
    %1109 = vector.broadcast %cst_826 : f32 to vector<8x32xf32>
    %1110 = arith.mulf %1109, %1108 : vector<8x32xf32>
    %cst_827 = arith.constant 5.000000e-01 : f32
    %1111 = vector.broadcast %cst_827 : f32 to vector<8x32xf32>
    %1112 = arith.addf %1110, %1111 : vector<8x32xf32>
    %c2_828 = arith.constant 2 : index
    %c0_829 = arith.constant 0 : index
    %c0_830 = arith.constant 0 : index
    %1113 = vector.load %arg4[%c2_828, %c0_829, %c0_830] : memref<4x32x32xbf16, #tpu.memory_space<vmem>>, vector<1x32x32xbf16>
    %1114 = vector.shape_cast %1113 : vector<1x32x32xbf16> to vector<32x32xbf16>
    %cst_831 = arith.constant dense<0.000000e+00> : vector<8x32xf32>
    %1115 = tpu.matmul %1082, %1114, %cst_831 {dimension_numbers = #tpu.dot_dimension_numbers<[1], [0], [0], [1], [0, 0, 1, 1], [], []>} : vector<8x32xbf16>, vector<32x32xbf16>, vector<8x32xf32> -> vector<8x32xf32>
    %c2_832 = arith.constant 2 : index
    %c0_833 = arith.constant 0 : index
    %c0_834 = arith.constant 0 : index
    %1116 = vector.load %arg5[%c2_832, %c0_833, %c0_834] : memref<4x32x32xbf16, #tpu.memory_space<vmem>>, vector<1x32x32xbf16>
    %1117 = vector.shape_cast %1116 : vector<1x32x32xbf16> to vector<32x32xbf16>
    %cst_835 = arith.constant dense<0.000000e+00> : vector<8x32xf32>
    %1118 = tpu.matmul %990, %1117, %cst_835 {dimension_numbers = #tpu.dot_dimension_numbers<[1], [0], [0], [1], [0, 0, 1, 1], [], []>} : vector<8x32xbf16>, vector<32x32xbf16>, vector<8x32xf32> -> vector<8x32xf32>
    %1119 = arith.addf %1115, %1118 : vector<8x32xf32>
    %c2_836 = arith.constant 2 : index
    %c0_837 = arith.constant 0 : index
    %c0_838 = arith.constant 0 : index
    %1120 = vector.load %arg6[%c2_836, %c0_837, %c0_838] : memref<4x8x32xf32, #tpu.memory_space<vmem>>, vector<1x8x32xf32>
    %1121 = vector.shape_cast %1120 : vector<1x8x32xf32> to vector<8x32xf32>
    %1122 = arith.addf %1119, %1121 : vector<8x32xf32>
    %1123 = math.tanh %1122 : vector<8x32xf32>
    %c3_839 = arith.constant 3 : index
    %c0_840 = arith.constant 0 : index
    %c0_841 = arith.constant 0 : index
    %1124 = vector.load %arg4[%c3_839, %c0_840, %c0_841] : memref<4x32x32xbf16, #tpu.memory_space<vmem>>, vector<1x32x32xbf16>
    %1125 = vector.shape_cast %1124 : vector<1x32x32xbf16> to vector<32x32xbf16>
    %cst_842 = arith.constant dense<0.000000e+00> : vector<8x32xf32>
    %1126 = tpu.matmul %1082, %1125, %cst_842 {dimension_numbers = #tpu.dot_dimension_numbers<[1], [0], [0], [1], [0, 0, 1, 1], [], []>} : vector<8x32xbf16>, vector<32x32xbf16>, vector<8x32xf32> -> vector<8x32xf32>
    %c3_843 = arith.constant 3 : index
    %c0_844 = arith.constant 0 : index
    %c0_845 = arith.constant 0 : index
    %1127 = vector.load %arg5[%c3_843, %c0_844, %c0_845] : memref<4x32x32xbf16, #tpu.memory_space<vmem>>, vector<1x32x32xbf16>
    %1128 = vector.shape_cast %1127 : vector<1x32x32xbf16> to vector<32x32xbf16>
    %cst_846 = arith.constant dense<0.000000e+00> : vector<8x32xf32>
    %1129 = tpu.matmul %990, %1128, %cst_846 {dimension_numbers = #tpu.dot_dimension_numbers<[1], [0], [0], [1], [0, 0, 1, 1], [], []>} : vector<8x32xbf16>, vector<32x32xbf16>, vector<8x32xf32> -> vector<8x32xf32>
    %1130 = arith.addf %1126, %1129 : vector<8x32xf32>
    %c3_847 = arith.constant 3 : index
    %c0_848 = arith.constant 0 : index
    %c0_849 = arith.constant 0 : index
    %1131 = vector.load %arg6[%c3_847, %c0_848, %c0_849] : memref<4x8x32xf32, #tpu.memory_space<vmem>>, vector<1x8x32xf32>
    %1132 = vector.shape_cast %1131 : vector<1x8x32xf32> to vector<8x32xf32>
    %1133 = arith.addf %1130, %1132 : vector<8x32xf32>
    %1134 = math.tanh %1133 : vector<8x32xf32>
    %cst_850 = arith.constant 5.000000e-01 : f32
    %1135 = vector.broadcast %cst_850 : f32 to vector<8x32xf32>
    %1136 = arith.mulf %1135, %1134 : vector<8x32xf32>
    %cst_851 = arith.constant 5.000000e-01 : f32
    %1137 = vector.broadcast %cst_851 : f32 to vector<8x32xf32>
    %1138 = arith.addf %1136, %1137 : vector<8x32xf32>
    %1139 = arith.mulf %1112, %987 : vector<8x32xf32>
    %1140 = arith.mulf %1097, %1123 : vector<8x32xf32>
    %1141 = arith.addf %1139, %1140 : vector<8x32xf32>
    %1142 = math.tanh %1141 : vector<8x32xf32>
    %1143 = arith.mulf %1138, %1142 : vector<8x32xf32>
    %1144 = arith.truncf %1143 : vector<8x32xf32> to vector<8x32xbf16>
    %c0_852 = arith.constant 0 : index
    %c0_853 = arith.constant 0 : index
    %c0_854 = arith.constant 0 : index
    %1145 = vector.load %arg7[%c0_852, %c0_853, %c0_854] : memref<4x32x32xbf16, #tpu.memory_space<vmem>>, vector<1x32x32xbf16>
    %1146 = vector.shape_cast %1145 : vector<1x32x32xbf16> to vector<32x32xbf16>
    %cst_855 = arith.constant dense<0.000000e+00> : vector<8x32xf32>
    %1147 = tpu.matmul %1144, %1146, %cst_855 {dimension_numbers = #tpu.dot_dimension_numbers<[1], [0], [0], [1], [0, 0, 1, 1], [], []>} : vector<8x32xbf16>, vector<32x32xbf16>, vector<8x32xf32> -> vector<8x32xf32>
    %c0_856 = arith.constant 0 : index
    %c0_857 = arith.constant 0 : index
    %c0_858 = arith.constant 0 : index
    %1148 = vector.load %arg8[%c0_856, %c0_857, %c0_858] : memref<4x32x32xbf16, #tpu.memory_space<vmem>>, vector<1x32x32xbf16>
    %1149 = vector.shape_cast %1148 : vector<1x32x32xbf16> to vector<32x32xbf16>
    %cst_859 = arith.constant dense<0.000000e+00> : vector<8x32xf32>
    %1150 = tpu.matmul %1052, %1149, %cst_859 {dimension_numbers = #tpu.dot_dimension_numbers<[1], [0], [0], [1], [0, 0, 1, 1], [], []>} : vector<8x32xbf16>, vector<32x32xbf16>, vector<8x32xf32> -> vector<8x32xf32>
    %1151 = arith.addf %1147, %1150 : vector<8x32xf32>
    %c0_860 = arith.constant 0 : index
    %c0_861 = arith.constant 0 : index
    %c0_862 = arith.constant 0 : index
    %1152 = vector.load %arg9[%c0_860, %c0_861, %c0_862] : memref<4x8x32xf32, #tpu.memory_space<vmem>>, vector<1x8x32xf32>
    %1153 = vector.shape_cast %1152 : vector<1x8x32xf32> to vector<8x32xf32>
    %1154 = arith.addf %1151, %1153 : vector<8x32xf32>
    %1155 = math.tanh %1154 : vector<8x32xf32>
    %cst_863 = arith.constant 5.000000e-01 : f32
    %1156 = vector.broadcast %cst_863 : f32 to vector<8x32xf32>
    %1157 = arith.mulf %1156, %1155 : vector<8x32xf32>
    %cst_864 = arith.constant 5.000000e-01 : f32
    %1158 = vector.broadcast %cst_864 : f32 to vector<8x32xf32>
    %1159 = arith.addf %1157, %1158 : vector<8x32xf32>
    %c1_865 = arith.constant 1 : index
    %c0_866 = arith.constant 0 : index
    %c0_867 = arith.constant 0 : index
    %1160 = vector.load %arg7[%c1_865, %c0_866, %c0_867] : memref<4x32x32xbf16, #tpu.memory_space<vmem>>, vector<1x32x32xbf16>
    %1161 = vector.shape_cast %1160 : vector<1x32x32xbf16> to vector<32x32xbf16>
    %cst_868 = arith.constant dense<0.000000e+00> : vector<8x32xf32>
    %1162 = tpu.matmul %1144, %1161, %cst_868 {dimension_numbers = #tpu.dot_dimension_numbers<[1], [0], [0], [1], [0, 0, 1, 1], [], []>} : vector<8x32xbf16>, vector<32x32xbf16>, vector<8x32xf32> -> vector<8x32xf32>
    %c1_869 = arith.constant 1 : index
    %c0_870 = arith.constant 0 : index
    %c0_871 = arith.constant 0 : index
    %1163 = vector.load %arg8[%c1_869, %c0_870, %c0_871] : memref<4x32x32xbf16, #tpu.memory_space<vmem>>, vector<1x32x32xbf16>
    %1164 = vector.shape_cast %1163 : vector<1x32x32xbf16> to vector<32x32xbf16>
    %cst_872 = arith.constant dense<0.000000e+00> : vector<8x32xf32>
    %1165 = tpu.matmul %1052, %1164, %cst_872 {dimension_numbers = #tpu.dot_dimension_numbers<[1], [0], [0], [1], [0, 0, 1, 1], [], []>} : vector<8x32xbf16>, vector<32x32xbf16>, vector<8x32xf32> -> vector<8x32xf32>
    %1166 = arith.addf %1162, %1165 : vector<8x32xf32>
    %c1_873 = arith.constant 1 : index
    %c0_874 = arith.constant 0 : index
    %c0_875 = arith.constant 0 : index
    %1167 = vector.load %arg9[%c1_873, %c0_874, %c0_875] : memref<4x8x32xf32, #tpu.memory_space<vmem>>, vector<1x8x32xf32>
    %1168 = vector.shape_cast %1167 : vector<1x8x32xf32> to vector<8x32xf32>
    %1169 = arith.addf %1166, %1168 : vector<8x32xf32>
    %1170 = math.tanh %1169 : vector<8x32xf32>
    %cst_876 = arith.constant 5.000000e-01 : f32
    %1171 = vector.broadcast %cst_876 : f32 to vector<8x32xf32>
    %1172 = arith.mulf %1171, %1170 : vector<8x32xf32>
    %cst_877 = arith.constant 5.000000e-01 : f32
    %1173 = vector.broadcast %cst_877 : f32 to vector<8x32xf32>
    %1174 = arith.addf %1172, %1173 : vector<8x32xf32>
    %c2_878 = arith.constant 2 : index
    %c0_879 = arith.constant 0 : index
    %c0_880 = arith.constant 0 : index
    %1175 = vector.load %arg7[%c2_878, %c0_879, %c0_880] : memref<4x32x32xbf16, #tpu.memory_space<vmem>>, vector<1x32x32xbf16>
    %1176 = vector.shape_cast %1175 : vector<1x32x32xbf16> to vector<32x32xbf16>
    %cst_881 = arith.constant dense<0.000000e+00> : vector<8x32xf32>
    %1177 = tpu.matmul %1144, %1176, %cst_881 {dimension_numbers = #tpu.dot_dimension_numbers<[1], [0], [0], [1], [0, 0, 1, 1], [], []>} : vector<8x32xbf16>, vector<32x32xbf16>, vector<8x32xf32> -> vector<8x32xf32>
    %c2_882 = arith.constant 2 : index
    %c0_883 = arith.constant 0 : index
    %c0_884 = arith.constant 0 : index
    %1178 = vector.load %arg8[%c2_882, %c0_883, %c0_884] : memref<4x32x32xbf16, #tpu.memory_space<vmem>>, vector<1x32x32xbf16>
    %1179 = vector.shape_cast %1178 : vector<1x32x32xbf16> to vector<32x32xbf16>
    %cst_885 = arith.constant dense<0.000000e+00> : vector<8x32xf32>
    %1180 = tpu.matmul %1052, %1179, %cst_885 {dimension_numbers = #tpu.dot_dimension_numbers<[1], [0], [0], [1], [0, 0, 1, 1], [], []>} : vector<8x32xbf16>, vector<32x32xbf16>, vector<8x32xf32> -> vector<8x32xf32>
    %1181 = arith.addf %1177, %1180 : vector<8x32xf32>
    %c2_886 = arith.constant 2 : index
    %c0_887 = arith.constant 0 : index
    %c0_888 = arith.constant 0 : index
    %1182 = vector.load %arg9[%c2_886, %c0_887, %c0_888] : memref<4x8x32xf32, #tpu.memory_space<vmem>>, vector<1x8x32xf32>
    %1183 = vector.shape_cast %1182 : vector<1x8x32xf32> to vector<8x32xf32>
    %1184 = arith.addf %1181, %1183 : vector<8x32xf32>
    %1185 = math.tanh %1184 : vector<8x32xf32>
    %c3_889 = arith.constant 3 : index
    %c0_890 = arith.constant 0 : index
    %c0_891 = arith.constant 0 : index
    %1186 = vector.load %arg7[%c3_889, %c0_890, %c0_891] : memref<4x32x32xbf16, #tpu.memory_space<vmem>>, vector<1x32x32xbf16>
    %1187 = vector.shape_cast %1186 : vector<1x32x32xbf16> to vector<32x32xbf16>
    %cst_892 = arith.constant dense<0.000000e+00> : vector<8x32xf32>
    %1188 = tpu.matmul %1144, %1187, %cst_892 {dimension_numbers = #tpu.dot_dimension_numbers<[1], [0], [0], [1], [0, 0, 1, 1], [], []>} : vector<8x32xbf16>, vector<32x32xbf16>, vector<8x32xf32> -> vector<8x32xf32>
    %c3_893 = arith.constant 3 : index
    %c0_894 = arith.constant 0 : index
    %c0_895 = arith.constant 0 : index
    %1189 = vector.load %arg8[%c3_893, %c0_894, %c0_895] : memref<4x32x32xbf16, #tpu.memory_space<vmem>>, vector<1x32x32xbf16>
    %1190 = vector.shape_cast %1189 : vector<1x32x32xbf16> to vector<32x32xbf16>
    %cst_896 = arith.constant dense<0.000000e+00> : vector<8x32xf32>
    %1191 = tpu.matmul %1052, %1190, %cst_896 {dimension_numbers = #tpu.dot_dimension_numbers<[1], [0], [0], [1], [0, 0, 1, 1], [], []>} : vector<8x32xbf16>, vector<32x32xbf16>, vector<8x32xf32> -> vector<8x32xf32>
    %1192 = arith.addf %1188, %1191 : vector<8x32xf32>
    %c3_897 = arith.constant 3 : index
    %c0_898 = arith.constant 0 : index
    %c0_899 = arith.constant 0 : index
    %1193 = vector.load %arg9[%c3_897, %c0_898, %c0_899] : memref<4x8x32xf32, #tpu.memory_space<vmem>>, vector<1x8x32xf32>
    %1194 = vector.shape_cast %1193 : vector<1x8x32xf32> to vector<8x32xf32>
    %1195 = arith.addf %1192, %1194 : vector<8x32xf32>
    %1196 = math.tanh %1195 : vector<8x32xf32>
    %cst_900 = arith.constant 5.000000e-01 : f32
    %1197 = vector.broadcast %cst_900 : f32 to vector<8x32xf32>
    %1198 = arith.mulf %1197, %1196 : vector<8x32xf32>
    %cst_901 = arith.constant 5.000000e-01 : f32
    %1199 = vector.broadcast %cst_901 : f32 to vector<8x32xf32>
    %1200 = arith.addf %1198, %1199 : vector<8x32xf32>
    %1201 = arith.mulf %1174, %1049 : vector<8x32xf32>
    %1202 = arith.mulf %1159, %1185 : vector<8x32xf32>
    %1203 = arith.addf %1201, %1202 : vector<8x32xf32>
    %1204 = math.tanh %1203 : vector<8x32xf32>
    %1205 = arith.mulf %1200, %1204 : vector<8x32xf32>
    %c0_902 = arith.constant 0 : index
    %c0_903 = arith.constant 0 : index
    %1206 = vector.load %arg2[%c0_902, %c0_903] : memref<32x128xf32, #tpu.memory_space<vmem>>, vector<32x128xf32>
    %cst_904 = arith.constant dense<0.000000e+00> : vector<8x128xf32>
    %1207 = tpu.matmul %1205, %1206, %cst_904 {dimension_numbers = #tpu.dot_dimension_numbers<[1], [0], [0], [1], [0, 0, 1, 1], [], []>} : vector<8x32xf32>, vector<32x128xf32>, vector<8x128xf32> -> vector<8x128xf32>
    %c0_905 = arith.constant 0 : index
    %c0_906 = arith.constant 0 : index
    %1208 = vector.load %arg3[%c0_905, %c0_906] : memref<8x128xf32, #tpu.memory_space<vmem>>, vector<8x128xf32>
    %1209 = arith.addf %1207, %1208 : vector<8x128xf32>
    %c0_907 = arith.constant 0 : index
    %c0_908 = arith.constant 0 : index
    %1210 = vector.load %arg10[%c0_907, %c0_908] : memref<8x128xf32, #tpu.memory_space<vmem>>, vector<8x128xf32>
    tpu.vector_store %arg10[%c0_907, %c0_908], %1209 {strides = array<i32>} : memref<8x128xf32, #tpu.memory_space<vmem>>, vector<8x128xf32>,
    return
  }
}

</mosaic_0001>

<bundles_post_ra>
// kernel: tpu_custom_call.1
= control target key start
LH: loop header
LB: loop body
LE: loop exit
PB: predicated region body
PF: predicated region fallthrough
CT: control target
= control target key end

     0   :  { %15 = vsyncpa [#allocation3], 0  ;;  %s5098_s0 = inlined_call_operand.vmem [shape: bf16[8,32], index: 0, kind: input, shape index: {}]   ;;  %s5099_s1 = inlined_call_operand.vmem [shape: bf16[128,32], index: 1, kind: input, shape index: {}]   ;;  %s5100_s2 = inlined_call_operand.hbm [shape: f32[32,128], index: 2, kind: input, shape index: {}]   ;;  %s5101_s3 = inlined_call_operand.vmem [shape: f32[8,128], index: 3, kind: input, shape index: {}]   ;;  %s5102_s4 = inlined_call_operand.vmem [shape: bf16[4,32,32], index: 4, kind: input, shape index: {}]   ;;  %s5103_s5 = inlined_call_operand.hbm [shape: bf16[4,32,32], index: 5, kind: input, shape index: {}]   ;;  %s5104_s6 = inlined_call_operand.hbm [shape: f32[4,8,32], index: 6, kind: input, shape index: {}]   ;;  %s5105_s7 = inlined_call_operand.hbm [shape: bf16[4,32,32], index: 7, kind: input, shape index: {}]   ;;  %s5106_s8 = inlined_call_operand.hbm [shape: bf16[4,32,32], index: 8, kind: input, shape index: {}]   ;;  %s5107_s9 = inlined_call_operand.hbm [shape: f32[4,8,32], index: 9, kind: input, shape index: {}]   ;;  %s5108_s10 = inlined_call_operand.hbm [shape: f32[8,128], index: 10, kind: output, shape index: {}]  }
   0x1   :  { %16 = vsyncpa [#allocation6], 0 }
   0x2   :  { %17 = vsyncpa [#allocation9], 0 }
   0x3   :  { %18 = vsyncpa [#allocation12], 0  ;;  %s45_s15 = sshll.u32 %s5103_s5, 4  ;;  %s46_s15 = int_to_ptr.hbm [resolvable:$true] %s45_s15 }
   0x4   :  { %19 = vsyncpa [#allocation4], 0  ;;  %s3837_s16 = smov [#allocation5]   ;;  %s71_s20 = sshll.u32 %s5105_s7, 4  ;;  %s72_s20 = int_to_ptr.hbm [resolvable:$true] %s71_s20 }
   0x5   :  { %s47_s17 = sshll.u32 %s3837_s16, 4  ;;  %s3838_s21 = smov 64   ;;  %s48_s17 = int_to_ptr.vmem [resolvable:$true] %s47_s17 }
   0x6   :  { %s3839_s22 = smov 4   ;;  %s3840_s23 = smov [#allocation8]  }
   0x7   :  { %53 = dma.hbm_to_vmem [thread:$0]  %s46_s15, 1024, %s48_s17, [#allocation6], %s3838_s21, %s3838_s21, %s3839_s22  }
   0x8   :  { %s73_s24 = sshll.u32 %s3840_s23, 4  ;;  %s28_s26 = sshll.u32 %s5100_s2, 4  ;;  %s74_s24 = int_to_ptr.vmem [resolvable:$true] %s73_s24  ;;  %s29_s26 = int_to_ptr.hbm [resolvable:$true] %s28_s26 }
   0x9   :  { %79 = dma.hbm_to_vmem [thread:$0]  %s72_s20, 1024, %s74_s24, [#allocation9], %s3838_s21, %s3838_s21, %s3839_s22  }
   0xa   :  { %s3841_s7 = smov [#allocation2]   ;;  %s58_s30 = sshll.u32 %s5104_s6, 4  ;;  %s59_s30 = int_to_ptr.hbm [resolvable:$true] %s58_s30 }
   0xb   :  { %s30_s27 = sshll.u32 %s3841_s7, 4  ;;  %s3842_s11 = smov 128   ;;  %s31_s27 = int_to_ptr.vmem [resolvable:$true] %s30_s27 }
   0xc   :  { %s3843_s12 = smov 8   ;;  %s3844_s13 = smov [#allocation7]  }
   0xd   :  { %36 = dma.hbm_to_vmem [thread:$0]  %s29_s26, 512, %s31_s27, [#allocation3], %s3842_s11, %s3842_s11, %s3843_s12  }
   0xe   :  { %s60_s14 = sshll.u32 %s3844_s13, 4  ;;  %s84_s16 = sshll.u32 %s5106_s8, 4  ;;  %s61_s14 = int_to_ptr.vmem [resolvable:$true] %s60_s14  ;;  %s85_s16 = int_to_ptr.hbm [resolvable:$true] %s84_s16 }
   0xf   :  { %66 = dma.hbm_to_vmem [thread:$0]  %s59_s30, 512, %s61_s14, [#allocation6], %s3842_s11, %s3842_s11, %s3843_s12  }
  0x10   :  { %s97_s19 = sshll.u32 %s5107_s9, 4  ;;  %s3845_s20 = smov [#allocation10]   ;;  %s98_s19 = int_to_ptr.hbm [resolvable:$true] %s97_s19 }
  0x11   :  { %s86_s23 = sshll.u32 %s3845_s20, 4  ;;  %s3846_s6 = smov [#allocation11]   ;;  %s87_s23 = int_to_ptr.vmem [resolvable:$true] %s86_s23 }
  0x12   :  { %92 = dma.hbm_to_vmem [thread:$0]  %s85_s16, 1024, %s87_s23, [#allocation9], %s3838_s21, %s3838_s21, %s3839_s22  }
  0x13   :  { %s99_s24 = sshll.u32 %s3846_s6, 4  ;;  %s100_s24 = int_to_ptr.vmem [resolvable:$true] %s99_s24 }
  0x14   :  { %105 = dma.hbm_to_vmem [thread:$0]  %s98_s19, 512, %s100_s24, [#allocation12], %s3842_s11, %s3842_s11, %s3843_s12  }
  0x15   :  { %3827 = dma.done.wait [#allocation3], 512  }
  0x16   :  { %3828 = vsyncadd [#allocation3], 4294966784 }
  0x17   :  { %3829 = dma.done.wait [#allocation6], 1536  }
  0x18   :  { %3830 = vsyncadd [#allocation6], 4294965760 }
  0x19   :  { %3831 = dma.done.wait [#allocation9], 2048  }
  0x1a   :  { %3832 = vsyncadd [#allocation9], 4294965248 }
  0x1b   :  { %3833 = dma.done.wait [#allocation12], 512  }
  0x1c   :  { %3834 = vsyncadd [#allocation12], 4294966784  ;;  %v3932_v0 = vld [vmem:[#allocation5 + $0x8] sm:$0xff]  ;;  %v3939_v2 = vld [vmem:[#allocation5 + $0x18] sm:$0xff]  ;;  %vm152_vm0 = vcmask 261120   ;;  %v3847_v15 = vmov 0  }
  0x1d   :  { %v3937_v1 = vld [vmem:[%s5102_s4 + $0x8] sm:$0xff]  ;;  %v3944_v3 = vld [vmem:[%s5102_s4 + $0x18] sm:$0xff]  ;;  %162 = vmatpush.bf16.msra.mxu0 %v3932_v0  ;;  %v3948_v4 = vld [vmem:[#allocation5] sm:$0xff]  ;;  %230 = vmatpush.bf16.msra.mxu2 %v3939_v2  ;;  %s3014_s27 = sshll.u32 %s5108_s10, 4  ;;  %s3015_s27 = int_to_ptr.hbm [resolvable:$true] %s3014_s27 }
  0x1e   :  { %5149 = vst [vmem:[#allocation19_spill] sm:$0xff] %v3937_v1  ;;  %190 = vmatpush.bf16.msra.mxu1 %v3937_v1  ;;  %v3953_v5 = vld [vmem:[%s5102_s4] sm:$0xff]  ;;  %255 = vmatpush.bf16.msra.mxu3 %v3944_v3  ;;  %v3957_v6 = vld [vmem:[#allocation5 + $0x10] sm:$0xff]  ;;  %v3964_v8 = vld [vmem:[#allocation5 + $0x28] sm:$0xff] }
  0x1f   :  { %5150 = vst [vmem:[#allocation20_spill] sm:$0xff] %v3944_v3  ;;  %v3962_v7 = vld [vmem:[%s5102_s4 + $0x10] sm:$0xff]  ;;  %v3969_v9 = vld [vmem:[%s5102_s4 + $0x28] sm:$0xff]  ;;  %v131_v10 = vld [vmem:[%s5098_s0] sm:$0xf] }
  0x20   :  { %5151 = vst [vmem:[#allocation21_spill] sm:$0xff] %v3953_v5  ;;  %v3978_v11 = vld [vmem:[#allocation5 + $0x38] sm:$0xff]  ;;  %v3987_v13 = vld [vmem:[#allocation5 + $0x20] sm:$0xff]  ;;  %v3998_v16 = vld [vmem:[#allocation5 + $0x30] sm:$0xff] }
  0x21   :  { %5152 = vst [vmem:[#allocation22_spill] sm:$0xff] %v3962_v7  ;;  %163 = vmatpush.bf16.msra.mxu0 %v3948_v4  ;;  %231 = vmatpush.bf16.msra.mxu2 %v3957_v6  ;;  %v3983_v12 = vld [vmem:[%s5102_s4 + $0x38] sm:$0xff]  ;;  %v3992_v14 = vld [vmem:[%s5102_s4 + $0x20] sm:$0xff]  ;;  %v4003_v17 = vld [vmem:[%s5102_s4 + $0x30] sm:$0xff] }
  0x22   :  { %191 = vmatpush.bf16.msra.mxu1 %v3953_v5  ;;  %256 = vmatpush.bf16.msra.mxu3 %v3962_v7  ;;  %5153 = vst [vmem:[#allocation23_spill] sm:$0xff] %v3983_v12  ;;  %v4011_v18 = vld [vmem:[#allocation10 + $0x8] sm:$0xff]  ;;  %v4013_v19 = vld [vmem:[#allocation10 + $0x18] sm:$0xff]  ;;  %v4017_v20 = vld [vmem:[#allocation10] sm:$0xff] }
  0x23   :  { %5154 = vst [vmem:[#allocation24_spill] sm:$0xff] %v4003_v17  ;;  %v4019_v21 = vld [vmem:[#allocation10 + $0x10] sm:$0xff]  ;;  %v4023_v22 = vld [vmem:[#allocation10 + $0x28] sm:$0xff]  ;;  %v4025_v23 = vld [vmem:[#allocation10 + $0x38] sm:$0xff] }
  0x24   :  { %164 = vmatmul.bf16.vlgmr.msra.gmra.mxu0 %v3847_v15  ;;  %232 = vmatmul.bf16.vlgmr.msra.gmra.mxu2 %v3847_v15  ;;  %v4029_v24 = vld [vmem:[#allocation10 + $0x20] sm:$0xff]  ;;  %v4031_v25 = vld [vmem:[#allocation10 + $0x30] sm:$0xff]  ;;  %v4041_v28 = vld [vmem:[#allocation8 + $0x8] sm:$0xff] }
  0x25   :  { %296 = vmatpush.bf16.msrb.mxu0 %v3964_v8  ;;  %3043 = vmatmul.msk.bf16.vlgmr.msra.gmra.mxu1 %vm152_vm0, %v131_v10  ;;  %v4043_v29 = vld [vmem:[#allocation8 + $0x18] sm:$0xff]  ;;  %v4049_v31 = vld [vmem:[#allocation7] sm:$0xff]  ;;  %v4051_v34 = vld [vmem:[#allocation7 + $0x8] sm:$0xff] }
  0x26   :  { %321 = vmatpush.bf16.msrb.mxu1 %v3969_v9  ;;  %3064 = vmatmul.msk.bf16.vlgmr.msra.gmra.mxu3 %vm152_vm0, %v131_v10  ;;  %v4053_v35 = vld [vmem:[#allocation8] sm:$0xff]  ;;  %v4055_v36 = vld [vmem:[#allocation8 + $0x10] sm:$0xff]  ;;  %v4061_v42 = vld [vmem:[#allocation8 + $0x28] sm:$0xff] }
  0x27   :  { %360 = vmatpush.bf16.msrb.mxu2 %v3978_v11  ;;  %385 = vmatpush.bf16.msrb.mxu3 %v3983_v12  ;;  %v4063_v43 = vld [vmem:[#allocation8 + $0x38] sm:$0xff]  ;;  %v4066_v44 = vld [vmem:[#allocation8 + $0x20] sm:$0xff]  ;;  %v4069_v45 = vld [vmem:[#allocation8 + $0x30] sm:$0xff] }
  0x28   :  { %5155 = vst [vmem:[#allocation25_spill] sm:$0xff] %v4069_v45  ;;  %v4071_v50 = vld [vmem:[#allocation7 + $0x10] sm:$0xff]  ;;  %v4076_v59 = vld [vmem:[#allocation7 + $0x18] sm:$0xff] }
  0x29   :  { %297 = vmatpush.bf16.msrb.mxu0 %v3987_v13 }
  0x2a   :  { %322 = vmatpush.bf16.msrb.mxu1 %v3992_v14 }
  0x2b   :  { %361 = vmatpush.bf16.msrb.mxu2 %v3998_v16  ;;  %386 = vmatpush.bf16.msrb.mxu3 %v4003_v17 }
  0x2d   :  { %430 = vmatpush.bf16.msra.mxu0 %v4011_v18 }
  0x2e   :  { %458 = vmatpush.bf16.msra.mxu1 %v4041_v28 }
  0x2f   :  { %498 = vmatpush.bf16.msra.mxu2 %v4013_v19  ;;  %523 = vmatpush.bf16.msra.mxu3 %v4043_v29 }
  0x31   :  { %431 = vmatpush.bf16.msra.mxu0 %v4017_v20 }
  0x32   :  { %459 = vmatpush.bf16.msra.mxu1 %v4053_v35 }
  0x33   :  { %499 = vmatpush.bf16.msra.mxu2 %v4019_v21  ;;  %524 = vmatpush.bf16.msra.mxu3 %v4055_v36 }
  0x34   :  { %298 = vmatmul.bf16.vlgmr.msrb.gmra.mxu0 %v3847_v15  ;;  %362 = vmatmul.bf16.vlgmr.msrb.gmra.mxu2 %v3847_v15 }
  0x35   :  { %3085 = vmatmul.msk.bf16.vlgmr.msrb.gmra.mxu1 %vm152_vm0, %v131_v10  ;;  %564 = vmatpush.bf16.msrb.mxu0 %v4023_v22 }
  0x36   :  { %3106 = vmatmul.msk.bf16.vlgmr.msrb.gmra.mxu3 %vm152_vm0, %v131_v10  ;;  %589 = vmatpush.bf16.msrb.mxu1 %v4061_v42 }
  0x37   :  { %628 = vmatpush.bf16.msrb.mxu2 %v4025_v23  ;;  %653 = vmatpush.bf16.msrb.mxu3 %v4063_v43 }
  0x39   :  { %565 = vmatpush.bf16.msrb.mxu0 %v4029_v24 }
  0x3a   :  { %590 = vmatpush.bf16.msrb.mxu1 %v4066_v44 }
  0x3b   :  { %629 = vmatpush.bf16.msrb.mxu2 %v4031_v25  ;;  %654 = vmatpush.bf16.msrb.mxu3 %v4069_v45 }
  0x44   :  { %432 = vmatmul.bf16.vlgmr.msra.gmra.mxu0 %v3847_v15  ;;  %500 = vmatmul.bf16.vlgmr.msra.gmra.mxu2 %v3847_v15 }
  0x45   :  { %813 = vmatpush.bf16.msra.mxu2 %v3932_v0  ;;  %846 = vmatpush.bf16.msra.mxu0 %v3939_v2 }
  0x49   :  { %814 = vmatpush.bf16.msra.mxu2 %v3948_v4  ;;  %847 = vmatpush.bf16.msra.mxu0 %v3957_v6 }
  0x54   :  { %566 = vmatmul.bf16.vlgmr.msrb.gmra.mxu0 %v3847_v15  ;;  %630 = vmatmul.bf16.vlgmr.msrb.gmra.mxu2 %v3847_v15 }
  0x55   :  { %859 = vmatpush.bf16.msrb.mxu2 %v3944_v3  ;;  %889 = vmatpush.bf16.msrb.mxu0 %v3969_v9  ;;  %v5121_v3 = vmov 1.0|1.0  }
  0x59   :  { %860 = vmatpush.bf16.msrb.mxu2 %v3962_v7  ;;  %890 = vmatpush.bf16.msrb.mxu0 %v3992_v14 }
  0xa1   :  { %v165_v26 = vpop.f32.mrf.mxu0 }
  0xa2   :  { %v193_v27 = vpop.f32.mrf.mxu1 }
  0xa3   :  { %v194_v30 = vadd.f32 %v193_v27, %v165_v26 }
  0xa5   :  { %v198_v40 = vadd.f32 %v4049_v31, %v194_v30 }
  0xa7   :  { %v233_v32 = vpop.f32.mrf.mxu2 }
  0xa9   :  { %v258_v33 = vpop.f32.mrf.mxu3  ;;  %v167_v38 = vpop.f32.mrf.mxu0 }
  0xaa   :  { %v259_v37 = vadd.f32 %v258_v33, %v233_v32  ;;  %v195_v39 = vpop.f32.mrf.mxu1 }
  0xac   :  { %v264_v41 = vadd.f32 %v4051_v34, %v259_v37 }
  0xae   :  { %3401 = vtanh.f32 %v264_v41 }
  0xaf   :  { %3403 = vtanh.f32 %v198_v40  ;;  %v235_v46 = vpop.f32.mrf.mxu2 }
  0xb1   :  { %v260_v47 = vpop.f32.mrf.mxu3  ;;  %v299_v48 = vpop.f32.mrf.mxu0 }
  0xb2   :  { %v324_v49 = vpop.f32.mrf.mxu1 }
  0xb3   :  { %v325_v51 = vadd.f32 %v324_v49, %v299_v48 }
  0xb4   :  { %v3402_v52 = vpop.eup %3401 }
  0xb5   :  { %v3404_v53 = vpop.eup %3403  ;;  %v330_v54 = vadd.f32 %v4071_v50, %v325_v51  ;;  %v266_v55 = vmul.f32 0.5, %v3402_v52 }
  0xb6   :  { %v200_v56 = vmul.f32 0.5, %v3404_v53 }
  0xb7   :  { %3405 = vtanh.f32 %v330_v54  ;;  %v363_v57 = vpop.f32.mrf.mxu2  ;;  %v267_v60 = vadd.f32 0.5, %v266_v55 }
  0xb8   :  { %v201_v10 = vadd.f32 0.5, %v200_v56 }
  0xb9   :  { %v388_v58 = vpop.f32.mrf.mxu3  ;;  %v301_v62 = vpop.f32.mrf.mxu0  ;;  %v398_v27 = vmul.f32 0.0, %v267_v60  ;;  %v4102_v60 = vld [vmem:[#allocation2 + $0x18] sm:$0xff] }
  0xba   :  { %v389_v61 = vadd.f32 %v388_v58, %v363_v57  ;;  %v326_v63 = vpop.f32.mrf.mxu1  ;;  %5156 = vst [vmem:[#allocation26_spill] sm:$0xff] %v4102_v60 }
  0xbb   :  { %v4108_v63 = vld [vmem:[#allocation11] sm:$0xff] }
  0xbc   :  { %v394_v15 = vadd.f32 %v4076_v59, %v389_v61  ;;  %v4105_v61 = vld [vmem:[#allocation2 + $0x10] sm:$0xff] }
  0xbd   :  { %v3406_v26 = vpop.eup %3405  ;;  %5157 = vst [vmem:[#allocation27_spill] sm:$0xff] %v4105_v61 }
  0xbe   :  { %v399_v30 = vmul.f32 %v3406_v26, %v201_v10  ;;  %3407 = vtanh.f32 %v394_v15  ;;  %v4110_v15 = vld [vmem:[#allocation11 + $0x8] sm:$0xff] }
  0xbf   :  { %v365_v33 = vpop.f32.mrf.mxu2  ;;  %v4112_v26 = vld [vmem:[#allocation2 + $0x8] sm:$0xff] }
  0xc0   :  { %v4079_v32 = vadd.f32 %v399_v30, %v398_v27  ;;  %5158 = vst [vmem:[#allocation28_spill] sm:$0xff] %v4112_v26 }
  0xc1   :  { %v390_v37 = vpop.f32.mrf.mxu3  ;;  %v433_v48 = vpop.f32.mrf.mxu0 }
  0xc2   :  { %3409 = vtanh.f32 %v4079_v32  ;;  %v4117_v37 = vld [vmem:[#allocation2] sm:$0xff] }
  0xc3   :  { %5159 = vst [vmem:[#allocation29_spill] sm:$0xff] %v4117_v37 }
  0xc4   :  { %v3408_v38 = vpop.eup %3407 }
  0xc5   :  { %v396_v39 = vmul.f32 0.5, %v3408_v38 }
  0xc7   :  { %v397_v40 = vadd.f32 0.5, %v396_v39  ;;  %v501_v49 = vpop.f32.mrf.mxu2 }
  0xc8   :  { %v3410_v41 = vpop.eup %3409 }
  0xc9   :  { %v402_v46 = vmul.f32 %v3410_v41, %v397_v40  ;;  %v435_v51 = vpop.f32.mrf.mxu0 }
  0xcb   :  { %v4082_v47 = vpack.c.bf16 %v402_v46, %v402_v46 }
  0xcd   :  { %3123 = vmatmul.msk.bf16.vlgmr.msra.gmra.mxu1 %vm152_vm0, %v4082_v47  ;;  %3140 = vmatmul.msk.bf16.vlgmr.msra.gmra.mxu3 %vm152_vm0, %v4082_v47 }
  0xce   :  { %3211 = vmatmul.msk.bf16.vlgmr.msra.gmra.mxu2 %vm152_vm0, %v4082_v47  ;;  %3213 = vmatmul.msk.bf16.vlgmr.msra.gmra.mxu0 %vm152_vm0, %v4082_v47 }
  0xcf   :  { %917 = vmatpush.bf16.msra.mxu2 %v3983_v12  ;;  %959 = vmatpush.bf16.msra.mxu0 %v4041_v28  ;;  %v503_v52 = vpop.f32.mrf.mxu2 }
  0xd0   :  { %692 = vmatpush.msra.mxu3 %v4102_v60 }
  0xd1   :  { %v567_v53 = vpop.f32.mrf.mxu0 }
  0xd2   :  { %693 = vmatpush.msra.mxu3 %v4105_v61 }
  0xd3   :  { %918 = vmatpush.bf16.msra.mxu2 %v4003_v17  ;;  %960 = vmatpush.bf16.msra.mxu0 %v4053_v35 }
  0xd4   :  { %694 = vmatpush.msra.mxu3 %v4112_v26 }
  0xd6   :  { %695 = vmatpush.msra.mxu3 %v4117_v37 }
  0xd7   :  { %v631_v54 = vpop.f32.mrf.mxu2 }
  0xd9   :  { %v569_v55 = vpop.f32.mrf.mxu0 }
  0xdd   :  { %3157 = vmatmul.msk.bf16.vlgmr.msrb.gmra.mxu1 %vm152_vm0, %v4082_v47  ;;  %3174 = vmatmul.msk.bf16.vlgmr.msrb.gmra.mxu3 %vm152_vm0, %v4082_v47 }
  0xde   :  { %829 = vmatpush.bf16.msrb.mxu3 %v3937_v1 }
  0xdf   :  { %v633_v56 = vpop.f32.mrf.mxu2 }
  0xe2   :  { %830 = vmatpush.bf16.msrb.mxu3 %v3953_v5 }
 0x14a   :  { %v461_v57 = vpop.f32.mrf.mxu1 }
 0x14b   :  { %v4100_v58 = vpop.f32.mrf.mxu0  ;;  %v462_v62 = vadd.f32 %v461_v57, %v433_v48 }
 0x14d   :  { %v466_v38 = vadd.f32 %v4108_v63, %v462_v62 }
 0x150   :  { %v526_v10 = vpop.f32.mrf.mxu3 }
 0x151   :  { %v527_v27 = vadd.f32 %v526_v10, %v501_v49  ;;  %v4114_v30 = vpop.f32.mrf.mxu2  ;;  %v4124_v49 = vld [vmem:[#allocation11 + $0x10] sm:$0xff] }
 0x152   :  { %v463_v33 = vpop.f32.mrf.mxu1 }
 0x153   :  { %v532_v39 = vadd.f32 %v4110_v15, %v527_v27  ;;  %v851_v40 = vpop.f32.mrf.mxu0  ;;  %v4127_v27 = vld [vmem:[#allocation11 + $0x18] sm:$0xff] }
 0x155   :  { %3411 = vtanh.f32 %v532_v39 }
 0x156   :  { %3413 = vtanh.f32 %v466_v38 }
 0x158   :  { %v528_v41 = vpop.f32.mrf.mxu3 }
 0x159   :  { %v818_v46 = vpop.f32.mrf.mxu2 }
 0x15a   :  { %v592_v48 = vpop.f32.mrf.mxu1 }
 0x15b   :  { %v3412_v51 = vpop.eup %3411  ;;  %v593_v52 = vadd.f32 %v592_v48, %v567_v53 }
 0x15c   :  { %v3414_v55 = vpop.eup %3413  ;;  %v534_v57 = vmul.f32 0.5, %v3412_v51 }
 0x15d   :  { %v598_v56 = vadd.f32 %v4124_v49, %v593_v52  ;;  %v468_v62 = vmul.f32 0.5, %v3414_v55 }
 0x15e   :  { %v535_v38 = vadd.f32 0.5, %v534_v57 }
 0x15f   :  { %3415 = vtanh.f32 %v598_v56  ;;  %v469_v41 = vadd.f32 0.5, %v468_v62 }
 0x160   :  { %v656_v10 = vpop.f32.mrf.mxu3  ;;  %v666_v17 = vmul.f32 0.0, %v535_v38 }
 0x161   :  { %v657_v33 = vadd.f32 %v656_v10, %v631_v54  ;;  %v700_v54 = vlaneseq }
 0x162   :  { %v594_v39 = vpop.f32.mrf.mxu1 }
 0x163   :  { %v662_v40 = vadd.f32 %v4127_v27, %v657_v33  ;;  %v4141_v57 = vand.u32 127, %v700_v54  ;;  %v4181_v54 = vld [vmem:[%s5099_s1 + $0x10] sm:$0xff] }
 0x165   :  { %v3416_v46 = vpop.eup %3415  ;;  %3417 = vtanh.f32 %v662_v40  ;;  %v4145_v33 = vsub.s32 127, %v4141_v57 }
 0x166   :  { %v667_v12 = vmul.f32 %v3416_v46, %v469_v41 }
 0x167   :  { %5161 = vst [vmem:[#allocation31_spill] sm:$0xff] %v4145_v33 }
 0x168   :  { %v4130_v53 = vadd.f32 %v667_v12, %v666_v17  ;;  %v658_v48 = vpop.f32.mrf.mxu3  ;;  %v4139_v12 = vld [vmem:[%s5101_s3] sm:$0xff] }
 0x169   :  { %5160 = vst [vmem:[#allocation30_spill] sm:$0xff] %v4139_v12  ;;  %v4151_v48 = vld [vmem:[%s5099_s1 + $0x38] sm:$0xff] }
 0x16a   :  { %3419 = vtanh.f32 %v4130_v53  ;;  %793 = vmatpush.bf16.msra.mxu1 %v4151_v48 }
 0x16b   :  { %v3418_v51 = vpop.eup %3417 }
 0x16c   :  { %v664_v52 = vmul.f32 0.5, %v3418_v51  ;;  %v4157_v51 = vld [vmem:[%s5099_s1 + $0x30] sm:$0xff] }
 0x16e   :  { %v665_v55 = vadd.f32 0.5, %v664_v52  ;;  %794 = vmatpush.bf16.msra.mxu1 %v4157_v51  ;;  %v4163_v52 = vld [vmem:[%s5099_s1 + $0x28] sm:$0xff] }
 0x170   :  { %v3420_v56 = vpop.eup %3419 }
 0x171   :  { %v670_v7 = vmul.f32 %v3420_v56, %v665_v55  ;;  %v4169_v55 = vld [vmem:[%s5099_s1 + $0x20] sm:$0xff]  ;;  %v4175_v56 = vld [vmem:[%s5099_s1 + $0x18] sm:$0xff] }
 0x172   :  { %795 = vmatpush.bf16.msra.mxu1 %v4163_v52 }
 0x173   :  { %3175 = vmatmul.msk.f32.vlgmr.msra.gmra.mxu3 %vm152_vm0, %v670_v7 }
 0x174   :  { %876 = vmatpush.bf16.msra.mxu3 %v3964_v8 }
 0x176   :  { %796 = vmatpush.bf16.msra.mxu1 %v4169_v55 }
 0x178   :  { %877 = vmatpush.bf16.msra.mxu3 %v3987_v13 }
 0x17a   :  { %797 = vmatpush.bf16.msra.mxu1 %v4175_v56 }
 0x17e   :  { %798 = vmatpush.bf16.msra.mxu1 %v4181_v54 }
 0x1f6   :  { %v697_v17 = vpop.f32.mrf.mxu3 }
 0x1f7   :  { %v698_v62 = vadd.f32 %v697_v17, %v4139_v12 }
 0x1f9   :  { %vm703_vm1 = vcmp.lt.s32.totalorder %v698_v62, 0  ;;  %v704_v10 = vsub.s32 2147483648, %v698_v62 }
 0x1fb   :  { %v705_v38 = vsel %vm703_vm1, %v704_v10, %v698_v62 }
 0x1fc   :  { %v706_v39 = vand.u32 4294967168, %v705_v38 }
 0x1fe   :  { %v708_v40 = vor.u32 %v4145_v33, %v706_v39  ;;  %v4187_v39 = vld [vmem:[%s5099_s1 + $0x8] sm:$0xff] }
 0x1ff   :  { %799 = vmatpush.bf16.msra.mxu1 %v4187_v39 }
 0x200   :  { %v710_v41 = vshra.s32 %v708_v40, 16  ;;  %v709_v17 = vand.u32 65535, %v708_v40 }
 0x202   :  { %v712_v46 = vcvt.s32.f32 %v710_v41  ;;  %v711_v10 = vcvt.s32.f32 %v709_v17  ;;  %v4193_v41 = vld [vmem:[%s5099_s1] sm:$0xff] }
 0x203   :  { %800 = vmatpush.bf16.msra.mxu1 %v4193_v41 }
 0x204   :  { %713 = vmax.xlane.f32.xlu0 %v712_v46 }
 0x207   :  { %904 = vmatpush.bf16.msrb.mxu1 %v3978_v11 }
 0x20b   :  { %905 = vmatpush.bf16.msrb.mxu1 %v3998_v16 }
 0x277   :  { %v714_v62 = vpop.xlane.xlu0 %713 }
 0x278   :  { %vm715_vm2 = vcmp.eq.f32.partialorder %v712_v46, %v714_v62  ;;  %v720_v40 = vcvt.f32.s32 %v714_v62  ;;  %v671_v62 = vpack.c.bf16 %v670_v7, %v670_v7 }
 0x279   :  { %v716_v38 = vsel %vm715_vm2, %v711_v10, -inf }
 0x27a   :  { %717 = vmax.xlane.f32.xlu0 %v716_v38  ;;  %v721_v17 = vshll.u32 %v720_v40, 16 }
 0x2ed   :  { %v718_v46 = vpop.xlane.xlu0 %717 }
 0x2ee   :  { %v719_v10 = vcvt.f32.s32 %v718_v46 }
 0x2f0   :  { %v722_v38 = vadd.s32 %v721_v17, %v719_v10 }
 0x2f2   :  { %v723_v33 = vand.u32 127, %v722_v38 }
 0x2f4   :  { %v724_v12 = vsub.s32 127, %v723_v33 }
 0x2f6   :  { %vm725_vm3 = vcmp.eq.s32.totalorder %v4141_v57, %v724_v12 }
 0x2f7   :  { %vm3209_vm4 = vmpackc.low %vm725_vm3, %vm725_vm3 }
 0x2f8   :  { %3210 = vmatmul.msk.bf16.vlgmr.msra.gmra.mxu1 %vm3209_vm4, %v5121_v3 }
 0x2f9   :  { %976 = vmatpush.bf16.msra.mxu1 %v4013_v19 }
 0x2fd   :  { %977 = vmatpush.bf16.msra.mxu1 %v4019_v21 }
 0x308   :  { %3217 = vmatmul.msk.bf16.vlgmr.msrb.gmra.mxu1 %vm152_vm0, %v4082_v47 }
 0x309   :  { %1034 = vmatpush.bf16.msrb.mxu1 %v4025_v23 }
 0x30d   :  { %1035 = vmatpush.bf16.msrb.mxu1 %v4031_v25 }
 0x318   :  { %3221 = vmatmul.msk.bf16.vlgmr.msra.gmra.mxu1 %vm152_vm0, %v671_v62 }
 0x319   :  { %1149 = vmatpush.bf16.msra.mxu1 %v3937_v1 }
 0x31d   :  { %1150 = vmatpush.bf16.msra.mxu1 %v3953_v5 }
 0x328   :  { %3225 = vmatmul.msk.bf16.vlgmr.msrb.gmra.mxu1 %vm152_vm0, %v671_v62 }
 0x329   :  { %1196 = vmatpush.bf16.msrb.mxu1 %v3964_v8 }
 0x32d   :  { %1197 = vmatpush.bf16.msrb.mxu1 %v3987_v13 }
 0x375   :  { %v802_v12 = vpop.f32.mrf.mxu1 }
 0x376   :  { %v806_v33 = vpack.c.bf16 %v802_v12, %v802_v12 }
 0x378   :  { %3212 = vmatmul.msk.bf16.vlgmr.msrb.gmra.mxu3 %vm152_vm0, %v806_v33  ;;  %3214 = vmatmul.msk.bf16.vlgmr.msrb.gmra.mxu2 %vm152_vm0, %v806_v33 }
 0x379   :  { %3216 = vmatmul.msk.bf16.vlgmr.msrb.gmra.mxu0 %vm152_vm0, %v806_v33  ;;  %943 = vmatpush.bf16.msrb.mxu3 %v4011_v18 }
 0x37a   :  { %989 = vmatpush.bf16.msrb.mxu2 %v4043_v29  ;;  %1019 = vmatpush.bf16.msrb.mxu0 %v4061_v42 }
 0x37d   :  { %v804_v7 = vpop.f32.mrf.mxu1  ;;  %944 = vmatpush.bf16.msrb.mxu3 %v4017_v20 }
 0x37e   :  { %990 = vmatpush.bf16.msrb.mxu2 %v4055_v36  ;;  %1020 = vmatpush.bf16.msrb.mxu0 %v4066_v44 }
 0x385   :  { %v907_v8 = vpop.f32.mrf.mxu1 }
 0x388   :  { %3215 = vmatmul.msk.bf16.vlgmr.msra.gmra.mxu3 %vm152_vm0, %v4082_v47  ;;  %3218 = vmatmul.msk.bf16.vlgmr.msra.gmra.mxu2 %vm152_vm0, %v806_v33 }
 0x389   :  { %1006 = vmatpush.bf16.msra.mxu3 %v4023_v22  ;;  %1047 = vmatpush.bf16.msra.mxu2 %v4063_v43 }
 0x38d   :  { %v909_v13 = vpop.f32.mrf.mxu1  ;;  %1007 = vmatpush.bf16.msra.mxu3 %v4029_v24  ;;  %1048 = vmatpush.bf16.msra.mxu2 %v4069_v45 }
 0x395   :  { %v4228_v40 = vpop.f32.mrf.mxu1 }
 0x398   :  { %3219 = vmatmul.msk.bf16.vlgmr.msrb.gmra.mxu3 %vm152_vm0, %v671_v62 }
 0x399   :  { %1079 = vmatpush.msrb.mxu3 %v4102_v60 }
 0x39b   :  { %1080 = vmatpush.msrb.mxu3 %v4105_v61 }
 0x39d   :  { %v981_v47 = vpop.f32.mrf.mxu1  ;;  %1081 = vmatpush.msrb.mxu3 %v4112_v26 }
 0x39f   :  { %1082 = vmatpush.msrb.mxu3 %v4117_v37 }
 0x3a5   :  { %v4235_v46 = vpop.f32.mrf.mxu1 }
 0x3a8   :  { %3223 = vmatmul.msk.bf16.vlgmr.msra.gmra.mxu3 %vm152_vm0, %v671_v62 }
 0x3a9   :  { %1133 = vmatpush.bf16.msra.mxu3 %v3932_v0 }
 0x3ad   :  { %v1039_v17 = vpop.f32.mrf.mxu1  ;;  %1134 = vmatpush.bf16.msra.mxu3 %v3948_v4 }
 0x3f6   :  { %v892_v10 = vpop.f32.mrf.mxu0 }
 0x3fb   :  { %v832_v38 = vpop.f32.mrf.mxu3  ;;  %v862_v12 = vpop.f32.mrf.mxu2 }
 0x3fc   :  { %v863_v33 = vadd.f32 %v862_v12, %v4100_v58  ;;  %v833_v13 = vadd.f32 %v832_v38, %v4114_v30 }
 0x3fe   :  { %v894_v7 = vpop.f32.mrf.mxu0  ;;  %v866_v47 = vadd.f32 %v863_v33, %v4051_v34  ;;  %v836_v1 = vadd.f32 %v833_v13, %v4049_v31 }
 0x400   :  { %3421 = vtanh.f32 %v866_v47 }
 0x401   :  { %3423 = vtanh.f32 %v836_v1 }
 0x403   :  { %v834_v3 = vpop.f32.mrf.mxu3  ;;  %v864_v5 = vpop.f32.mrf.mxu2 }
 0x406   :  { %v3422_v37 = vpop.eup %3421 }
 0x407   :  { %v3424_v60 = vpop.eup %3423  ;;  %v868_v58 = vmul.f32 0.5, %v3422_v37 }
 0x408   :  { %v838_v30 = vmul.f32 0.5, %v3424_v60 }
 0x409   :  { %v869_v38 = vadd.f32 0.5, %v868_v58 }
 0x40a   :  { %v839_v33 = vadd.f32 0.5, %v838_v30 }
 0x40b   :  { %v879_v62 = vpop.f32.mrf.mxu3  ;;  %v920_v17 = vpop.f32.mrf.mxu2  ;;  %v928_v1 = vmul.f32 %v869_v38, %v4079_v32 }
 0x40c   :  { %v893_v26 = vadd.f32 %v892_v10, %v879_v62  ;;  %v921_v61 = vadd.f32 %v920_v17, %v907_v8 }
 0x40e   :  { %v896_v45 = vadd.f32 %v893_v26, %v4071_v50  ;;  %v924_v12 = vadd.f32 %v921_v61, %v4076_v59 }
 0x410   :  { %3425 = vtanh.f32 %v896_v45 }
 0x411   :  { %3427 = vtanh.f32 %v924_v12 }
 0x413   :  { %v881_v3 = vpop.f32.mrf.mxu3  ;;  %v922_v5 = vpop.f32.mrf.mxu2 }
 0x416   :  { %v3426_v7 = vpop.eup %3425 }
 0x417   :  { %v929_v13 = vmul.f32 %v3426_v7, %v839_v33  ;;  %v3428_v47 = vpop.eup %3427 }
 0x418   :  { %v926_v37 = vmul.f32 0.5, %v3428_v47 }
 0x419   :  { %v4247_v10 = vadd.f32 %v929_v13, %v928_v1 }
 0x41a   :  { %v927_v8 = vadd.f32 0.5, %v926_v37 }
 0x41b   :  { %3429 = vtanh.f32 %v4247_v10  ;;  %v946_v26 = vpop.f32.mrf.mxu3 }
 0x421   :  { %v3430_v61 = vpop.eup %3429 }
 0x422   :  { %v932_v45 = vmul.f32 %v3430_v61, %v927_v8 }
 0x423   :  { %v948_v60 = vpop.f32.mrf.mxu3 }
 0x424   :  { %v4250_v62 = vpack.c.bf16 %v932_v45, %v932_v45 }
 0x426   :  { %3220 = vmatmul.msk.bf16.vlgmr.msra.gmra.mxu0 %vm152_vm0, %v4250_v62  ;;  %3222 = vmatmul.msk.bf16.vlgmr.msrb.gmra.mxu2 %vm152_vm0, %v4250_v62 }
 0x427   :  { %1166 = vmatpush.bf16.msrb.mxu2 %v3939_v2  ;;  %1113 = vmatpush.bf16.msra.mxu0 %v4151_v48 }
 0x42b   :  { %v1009_v32 = vpop.f32.mrf.mxu3  ;;  %1167 = vmatpush.bf16.msrb.mxu2 %v3957_v6  ;;  %1114 = vmatpush.bf16.msra.mxu0 %v4157_v51 }
 0x42f   :  { %1115 = vmatpush.bf16.msra.mxu0 %v4163_v52 }
 0x433   :  { %v1011_v17 = vpop.f32.mrf.mxu3  ;;  %1116 = vmatpush.bf16.msra.mxu0 %v4169_v55 }
 0x436   :  { %3224 = vmatmul.msk.bf16.vlgmr.msrb.gmra.mxu0 %vm152_vm0, %v4250_v62  ;;  %3226 = vmatmul.msk.bf16.vlgmr.msra.gmra.mxu2 %vm152_vm0, %v4250_v62 }
 0x437   :  { %1117 = vmatpush.bf16.msra.mxu0 %v4175_v56  ;;  %1209 = vmatpush.bf16.msra.mxu2 %v3969_v9 }
 0x43b   :  { %1118 = vmatpush.bf16.msra.mxu0 %v4181_v54  ;;  %1210 = vmatpush.bf16.msra.mxu2 %v3992_v14 }
 0x43f   :  { %1119 = vmatpush.bf16.msra.mxu0 %v4187_v39 }
 0x443   :  { %1120 = vmatpush.bf16.msra.mxu0 %v4193_v41 }
 0x446   :  { %3233 = vmatmul.msk.bf16.vlgmr.msrb.gmra.mxu2 %vm152_vm0, %v4250_v62 }
 0x447   :  { %1224 = vmatpush.bf16.msrb.mxu0 %v3978_v11  ;;  %1279 = vmatpush.bf16.msrb.mxu2 %v4041_v28 }
 0x44b   :  { %1225 = vmatpush.bf16.msrb.mxu0 %v3998_v16  ;;  %1280 = vmatpush.bf16.msrb.mxu2 %v4053_v35 }
 0x4a3   :  { %v962_v2 = vpop.f32.mrf.mxu0 }
 0x4a4   :  { %v963_v6 = vadd.f32 %v962_v2, %v946_v26 }
 0x4a6   :  { %v966_v12 = vadd.f32 %v963_v6, %v4108_v63 }
 0x4a9   :  { %v992_v9 = vpop.f32.mrf.mxu2 }
 0x4aa   :  { %v993_v14 = vadd.f32 %v992_v9, %v4228_v40 }
 0x4ab   :  { %v964_v58 = vpop.f32.mrf.mxu0 }
 0x4ac   :  { %v996_v30 = vadd.f32 %v993_v14, %v4110_v15 }
 0x4ae   :  { %3431 = vtanh.f32 %v996_v30 }
 0x4af   :  { %3433 = vtanh.f32 %v966_v12  ;;  %v5162_v12 = vld [vmem:[#allocation20_spill] sm:$0xff] }
 0x4b1   :  { %v994_v11 = vpop.f32.mrf.mxu2 }
 0x4b2   :  { %v5163_v11 = vld [vmem:[#allocation22_spill] sm:$0xff] }
 0x4b3   :  { %v1022_v38 = vpop.f32.mrf.mxu0 }
 0x4b4   :  { %v3432_v3 = vpop.eup %3431  ;;  %v1023_v5 = vadd.f32 %v1022_v38, %v1009_v32  ;;  %v5165_v38 = vld [vmem:[#allocation24_spill] sm:$0xff] }
 0x4b5   :  { %v3434_v33 = vpop.eup %3433  ;;  %v998_v7 = vmul.f32 0.5, %v3432_v3 }
 0x4b6   :  { %v1026_v16 = vadd.f32 %v1023_v5, %v4124_v49  ;;  %v968_v1 = vmul.f32 0.5, %v3434_v33  ;;  %v5166_v5 = vld [vmem:[#allocation30_spill] sm:$0xff] }
 0x4b7   :  { %v999_v47 = vadd.f32 0.5, %v998_v7 }
 0x4b8   :  { %3435 = vtanh.f32 %v1026_v16  ;;  %v969_v8 = vadd.f32 0.5, %v968_v1 }
 0x4b9   :  { %v1050_v13 = vpop.f32.mrf.mxu2  ;;  %v1058_v45 = vmul.f32 %v999_v47, %v4130_v53  ;;  %v5164_v53 = vld [vmem:[#allocation23_spill] sm:$0xff] }
 0x4ba   :  { %v1051_v40 = vadd.f32 %v1050_v13, %v4235_v46 }
 0x4bb   :  { %v1024_v26 = vpop.f32.mrf.mxu0 }
 0x4bc   :  { %v1054_v37 = vadd.f32 %v1051_v40, %v4127_v27  ;;  %v5167_v40 = vld [vmem:[#allocation31_spill] sm:$0xff] }
 0x4be   :  { %v3436_v61 = vpop.eup %3435  ;;  %3437 = vtanh.f32 %v1054_v37 }
 0x4bf   :  { %v1059_v60 = vmul.f32 %v3436_v61, %v969_v8 }
 0x4c1   :  { %v4285_v32 = vadd.f32 %v1059_v60, %v1058_v45  ;;  %v1052_v17 = vpop.f32.mrf.mxu2 }
 0x4c3   :  { %3439 = vtanh.f32 %v4285_v32 }
 0x4c4   :  { %v3438_v2 = vpop.eup %3437 }
 0x4c5   :  { %v1056_v6 = vmul.f32 0.5, %v3438_v2 }
 0x4c7   :  { %v1057_v9 = vadd.f32 0.5, %v1056_v6 }
 0x4c9   :  { %v3440_v14 = vpop.eup %3439  ;;  %v4288_v46 = vpop.f32.mrf.mxu2 }
 0x4ca   :  { %v1062_v58 = vmul.f32 %v3440_v14, %v1057_v9 }
 0x4cc   :  { %3227 = vmatmul.msk.f32.vlgmr.msrb.gmra.mxu3 %vm152_vm0, %v1062_v58 }
 0x4cd   :  { %1179 = vmatpush.bf16.msrb.mxu3 %v5162_v12 }
 0x4d1   :  { %v1171_v30 = vpop.f32.mrf.mxu2  ;;  %1180 = vmatpush.bf16.msrb.mxu3 %v5163_v11 }
 0x4d4   :  { %3231 = vmatmul.msk.bf16.vlgmr.msra.gmra.mxu3 %vm152_vm0, %v4250_v62 }
 0x4d5   :  { %1237 = vmatpush.bf16.msra.mxu3 %v5164_v53 }
 0x4d9   :  { %1238 = vmatpush.bf16.msra.mxu3 %v5165_v38 }
 0x54f   :  { %v1084_v3 = vpop.f32.mrf.mxu3 }
 0x550   :  { %v1085_v33 = vadd.f32 %v1084_v3, %v5166_v5 }
 0x552   :  { %vm1088_vm5 = vcmp.lt.s32.totalorder %v1085_v33, 0  ;;  %v1089_v16 = vsub.s32 2147483648, %v1085_v33 }
 0x554   :  { %v1090_v7 = vsel %vm1088_vm5, %v1089_v16, %v1085_v33  ;;  %v5168_v16 = vmov 1.0|1.0  }
 0x555   :  { %v1091_v1 = vand.u32 4294967168, %v1090_v7  ;;  %v1063_v7 = vpack.c.bf16 %v1062_v58, %v1062_v58 }
 0x557   :  { %v4298_v13 = vpop.f32.mrf.mxu3  ;;  %v1092_v47 = vor.u32 %v1091_v1, %v5167_v40 }
 0x559   :  { %v1094_v26 = vshra.s32 %v1092_v47, 16  ;;  %v1093_v61 = vand.u32 65535, %v1092_v47 }
 0x55b   :  { %v1096_v37 = vcvt.s32.f32 %v1094_v26  ;;  %v1095_v60 = vcvt.s32.f32 %v1093_v61 }
 0x55d   :  { %1097 = vmax.xlane.f32.xlu1 %v1096_v37 }
 0x55f   :  { %v1138_v8 = vpop.f32.mrf.mxu3 }
 0x5d0   :  { %v1098_v45 = vpop.xlane.xlu1 %1097 }
 0x5d1   :  { %vm1099_vm6 = vcmp.eq.f32.partialorder %v1096_v37, %v1098_v45  ;;  %v1104_v2 = vcvt.f32.s32 %v1098_v45 }
 0x5d2   :  { %v1100_v17 = vsel %vm1099_vm6, %v1095_v60, -inf }
 0x5d3   :  { %1101 = vmax.xlane.f32.xlu1 %v1100_v17  ;;  %v1105_v9 = vshll.u32 %v1104_v2, 16 }
 0x646   :  { %v1102_v6 = vpop.xlane.xlu1 %1101 }
 0x647   :  { %v1103_v14 = vcvt.f32.s32 %v1102_v6 }
 0x649   :  { %v1106_v30 = vadd.s32 %v1105_v9, %v1103_v14 }
 0x64b   :  { %v1107_v3 = vand.u32 127, %v1106_v30 }
 0x64d   :  { %v1108_v33 = vsub.s32 127, %v1107_v3 }
 0x64f   :  { %vm1109_vm7 = vcmp.eq.s32.totalorder %v4141_v57, %v1108_v33 }
 0x650   :  { %vm3229_vm8 = vmpackc.low %vm1109_vm7, %vm1109_vm7 }
 0x651   :  { %3230 = vmatmul.msk.bf16.vlgmr.msra.gmra.mxu0 %vm3229_vm8, %v5168_v16 }
 0x652   :  { %1296 = vmatpush.bf16.msra.mxu0 %v4013_v19 }
 0x656   :  { %1297 = vmatpush.bf16.msra.mxu0 %v4019_v21 }
 0x661   :  { %3237 = vmatmul.msk.bf16.vlgmr.msrb.gmra.mxu0 %vm152_vm0, %v4250_v62 }
 0x662   :  { %1354 = vmatpush.bf16.msrb.mxu0 %v4025_v23  ;;  %v5169_v23 = vld [vmem:[#allocation25_spill] sm:$0xff] }
 0x666   :  { %1355 = vmatpush.bf16.msrb.mxu0 %v4031_v25  ;;  %v5170_v25 = vld [vmem:[#allocation26_spill] sm:$0xff] }
 0x671   :  { %3241 = vmatmul.msk.bf16.vlgmr.msra.gmra.mxu0 %vm152_vm0, %v1063_v7 }
 0x672   :  { %1453 = vmatpush.bf16.msra.mxu0 %v3932_v0 }
 0x676   :  { %1454 = vmatpush.bf16.msra.mxu0 %v3948_v4 }
 0x681   :  { %3245 = vmatmul.msk.bf16.vlgmr.msrb.gmra.mxu0 %vm152_vm0, %v1063_v7 }
 0x682   :  { %1499 = vmatpush.bf16.msrb.mxu0 %v5162_v12 }
 0x686   :  { %1500 = vmatpush.bf16.msrb.mxu0 %v5163_v11 }
 0x6ce   :  { %v1122_v19 = vpop.f32.mrf.mxu0 }
 0x6cf   :  { %v1126_v21 = vpack.c.bf16 %v1122_v19, %v1122_v19 }
 0x6d1   :  { %3232 = vmatmul.msk.bf16.vlgmr.msra.gmra.mxu1 %vm152_vm0, %v1126_v21  ;;  %3234 = vmatmul.msk.bf16.vlgmr.msrb.gmra.mxu3 %vm152_vm0, %v1126_v21 }
 0x6d2   :  { %3236 = vmatmul.msk.bf16.vlgmr.msra.gmra.mxu2 %vm152_vm0, %v1126_v21  ;;  %1263 = vmatpush.bf16.msra.mxu1 %v4011_v18 }
 0x6d3   :  { %1309 = vmatpush.bf16.msrb.mxu3 %v4043_v29  ;;  %1339 = vmatpush.bf16.msra.mxu2 %v4061_v42  ;;  %v5171_v29 = vld [vmem:[#allocation27_spill] sm:$0xff]  ;;  %v5172_v42 = vld [vmem:[#allocation28_spill] sm:$0xff] }
 0x6d6   :  { %v1124_v0 = vpop.f32.mrf.mxu0  ;;  %1264 = vmatpush.bf16.msra.mxu1 %v4017_v20 }
 0x6d7   :  { %1310 = vmatpush.bf16.msrb.mxu3 %v4055_v36  ;;  %1340 = vmatpush.bf16.msra.mxu2 %v4066_v44  ;;  %v5173_v44 = vld [vmem:[#allocation29_spill] sm:$0xff] }
 0x6de   :  { %v1227_v4 = vpop.f32.mrf.mxu0 }
 0x6e1   :  { %3235 = vmatmul.msk.bf16.vlgmr.msrb.gmra.mxu1 %vm152_vm0, %v4250_v62  ;;  %3238 = vmatmul.msk.bf16.vlgmr.msra.gmra.mxu3 %vm152_vm0, %v1126_v21  ;;  %v5175_v62 = vld [vmem:[#allocation21_spill] sm:$0xff] }
 0x6e2   :  { %1326 = vmatpush.bf16.msrb.mxu1 %v4023_v22  ;;  %1367 = vmatpush.bf16.msra.mxu3 %v4063_v43 }
 0x6e6   :  { %v1229_v18 = vpop.f32.mrf.mxu0  ;;  %1327 = vmatpush.bf16.msrb.mxu1 %v4029_v24  ;;  %1368 = vmatpush.bf16.msra.mxu3 %v5169_v23  ;;  %v5174_v24 = vld [vmem:[#allocation19_spill] sm:$0xff] }
 0x6ee   :  { %v4331_v20 = vpop.f32.mrf.mxu0 }
 0x6f1   :  { %3239 = vmatmul.msk.bf16.vlgmr.msra.gmra.mxu1 %vm152_vm0, %v1063_v7 }
 0x6f2   :  { %1399 = vmatpush.msra.mxu1 %v5170_v25 }
 0x6f4   :  { %1400 = vmatpush.msra.mxu1 %v5171_v29 }
 0x6f6   :  { %v1301_v36 = vpop.f32.mrf.mxu0  ;;  %1401 = vmatpush.msra.mxu1 %v5172_v42 }
 0x6f8   :  { %1402 = vmatpush.msra.mxu1 %v5173_v44 }
 0x6fe   :  { %v4338_v22 = vpop.f32.mrf.mxu0 }
 0x701   :  { %3243 = vmatmul.msk.bf16.vlgmr.msrb.gmra.mxu1 %vm152_vm0, %v1063_v7 }
 0x702   :  { %1469 = vmatpush.bf16.msrb.mxu1 %v5174_v24 }
 0x706   :  { %v1359_v43 = vpop.f32.mrf.mxu0  ;;  %1470 = vmatpush.bf16.msrb.mxu1 %v5175_v62 }
 0x74e   :  { %v1152_v58 = vpop.f32.mrf.mxu1 }
 0x74f   :  { %v1153_v12 = vadd.f32 %v1152_v58, %v4298_v13 }
 0x751   :  { %v1156_v37 = vadd.f32 %v1153_v12, %v4049_v31  ;;  %v4366_v12 = vld [vmem:[#allocation5 + $0x10] sm:$0xff] }
 0x754   :  { %v1182_v11 = vpop.f32.mrf.mxu3 }
 0x755   :  { %v1183_v1 = vadd.f32 %v1182_v11, %v4288_v46  ;;  %v1212_v47 = vpop.f32.mrf.mxu2 }
 0x756   :  { %v1154_v26 = vpop.f32.mrf.mxu1 }
 0x757   :  { %v1186_v8 = vadd.f32 %v1183_v1, %v4051_v34  ;;  %v4393_v1 = vld [vmem:[#allocation5 + $0x38] sm:$0xff] }
 0x759   :  { %3441 = vtanh.f32 %v1186_v8 }
 0x75a   :  { %3443 = vtanh.f32 %v1156_v37 }
 0x75c   :  { %v1184_v61 = vpop.f32.mrf.mxu3 }
 0x75d   :  { %v1214_v45 = vpop.f32.mrf.mxu2 }
 0x75e   :  { %v1199_v60 = vpop.f32.mrf.mxu1 }
 0x75f   :  { %v3442_v17 = vpop.eup %3441  ;;  %v1213_v2 = vadd.f32 %v1212_v47, %v1199_v60  ;;  %v4399_v47 = vld [vmem:[#allocation5 + $0x30] sm:$0xff] }
 0x760   :  { %v3444_v6 = vpop.eup %3443  ;;  %v1188_v13 = vmul.f32 0.5, %v3442_v17 }
 0x761   :  { %v1216_v9 = vadd.f32 %v1213_v2, %v4071_v50  ;;  %v1158_v14 = vmul.f32 0.5, %v3444_v6 }
 0x762   :  { %v1189_v3 = vadd.f32 0.5, %v1188_v13 }
 0x763   :  { %3445 = vtanh.f32 %v1216_v9  ;;  %v1159_v34 = vadd.f32 0.5, %v1158_v14 }
 0x764   :  { %v1240_v46 = vpop.f32.mrf.mxu3  ;;  %v1248_v19 = vmul.f32 %v1189_v3, %v4247_v10 }
 0x765   :  { %v1241_v30 = vadd.f32 %v1240_v46, %v1227_v4 }
 0x766   :  { %v1201_v33 = vpop.f32.mrf.mxu1 }
 0x767   :  { %v1244_v31 = vadd.f32 %v1241_v30, %v4076_v59  ;;  %v4361_v59 = vld [vmem:[#allocation5 + $0x18] sm:$0xff] }
 0x769   :  { %v3446_v7 = vpop.eup %3445  ;;  %3447 = vtanh.f32 %v1244_v31 }
 0x76a   :  { %v1249_v21 = vmul.f32 %v3446_v7, %v1159_v34 }
 0x76c   :  { %v4350_v0 = vadd.f32 %v1249_v21, %v1248_v19  ;;  %v1242_v18 = vpop.f32.mrf.mxu3 }
 0x76e   :  { %3449 = vtanh.f32 %v4350_v0  ;;  %v1266_v50 = vpop.f32.mrf.mxu1 }
 0x76f   :  { %v3448_v23 = vpop.eup %3447 }
 0x770   :  { %v1246_v36 = vmul.f32 0.5, %v3448_v23 }
 0x772   :  { %v1247_v24 = vadd.f32 0.5, %v1246_v36 }
 0x774   :  { %v3450_v4 = vpop.eup %3449 }
 0x775   :  { %v1252_v43 = vmul.f32 %v3450_v4, %v1247_v24 }
 0x776   :  { %v1268_v62 = vpop.f32.mrf.mxu1 }
 0x777   :  { %v4353_v58 = vpack.c.bf16 %v1252_v43, %v1252_v43  ;;  %v4418_v43 = vld [vmem:[#allocation5 + $0x28] sm:$0xff] }
 0x779   :  { %3240 = vmatmul.msk.bf16.vlgmr.msrb.gmra.mxu2 %vm152_vm0, %v4353_v58  ;;  %3242 = vmatmul.msk.bf16.vlgmr.msrb.gmra.mxu3 %vm152_vm0, %v4353_v58 }
 0x77a   :  { %3251 = vmatmul.msk.bf16.vlgmr.msra.gmra.mxu0 %vm152_vm0, %v4353_v58  ;;  %1486 = vmatpush.bf16.msrb.mxu3 %v4361_v59 }
 0x77b   :  { %1433 = vmatpush.bf16.msrb.mxu2 %v4151_v48  ;;  %1557 = vmatpush.bf16.msra.mxu0 %v5164_v53  ;;  %v4380_v53 = vld [vmem:[%s5102_s4 + $0x28] sm:$0xff] }
 0x77e   :  { %v1329_v10 = vpop.f32.mrf.mxu1  ;;  %1487 = vmatpush.bf16.msrb.mxu3 %v4366_v12 }
 0x77f   :  { %1434 = vmatpush.bf16.msrb.mxu2 %v4157_v51  ;;  %1558 = vmatpush.bf16.msra.mxu0 %v5165_v38  ;;  %v4387_v38 = vld [vmem:[%s5102_s4 + $0x20] sm:$0xff] }
 0x783   :  { %1435 = vmatpush.bf16.msrb.mxu2 %v4163_v52 }
 0x786   :  { %v1331_v11 = vpop.f32.mrf.mxu1 }
 0x787   :  { %1436 = vmatpush.bf16.msrb.mxu2 %v4169_v55 }
 0x789   :  { %3244 = vmatmul.msk.bf16.vlgmr.msra.gmra.mxu2 %vm152_vm0, %v4353_v58  ;;  %3246 = vmatmul.msk.bf16.vlgmr.msra.gmra.mxu3 %vm152_vm0, %v4353_v58 }
 0x78a   :  { %1529 = vmatpush.bf16.msra.mxu3 %v4380_v53 }
 0x78b   :  { %1437 = vmatpush.bf16.msrb.mxu2 %v4175_v56 }
 0x78e   :  { %1530 = vmatpush.bf16.msra.mxu3 %v4387_v38 }
 0x78f   :  { %1438 = vmatpush.bf16.msrb.mxu2 %v4181_v54 }
 0x793   :  { %1439 = vmatpush.bf16.msrb.mxu2 %v4187_v39 }
 0x797   :  { %1440 = vmatpush.bf16.msrb.mxu2 %v4193_v41 }
 0x799   :  { %3253 = vmatmul.msk.bf16.vlgmr.msrb.gmra.mxu3 %vm152_vm0, %v4353_v58 }
 0x79a   :  { %1599 = vmatpush.bf16.msrb.mxu3 %v4041_v28 }
 0x79b   :  { %1544 = vmatpush.bf16.msra.mxu2 %v4393_v1 }
 0x79e   :  { %1600 = vmatpush.bf16.msrb.mxu3 %v4053_v35 }
 0x79f   :  { %1545 = vmatpush.bf16.msra.mxu2 %v4399_v47 }
 0x7f7   :  { %v4403_v26 = vpop.f32.mrf.mxu0 }
 0x7fc   :  { %v1282_v37 = vpop.f32.mrf.mxu2  ;;  %v1312_v8 = vpop.f32.mrf.mxu3 }
 0x7fd   :  { %v1313_v61 = vadd.f32 %v1312_v8, %v4331_v20  ;;  %v1283_v60 = vadd.f32 %v1282_v37, %v1266_v50 }
 0x7ff   :  { %v1458_v45 = vpop.f32.mrf.mxu0  ;;  %v1316_v17 = vadd.f32 %v1313_v61, %v4110_v15  ;;  %v1286_v28 = vadd.f32 %v1283_v60, %v4108_v63 }
 0x801   :  { %3451 = vtanh.f32 %v1316_v17 }
 0x802   :  { %3453 = vtanh.f32 %v1286_v28 }
 0x804   :  { %v1284_v2 = vpop.f32.mrf.mxu2  ;;  %v1314_v6 = vpop.f32.mrf.mxu3 }
 0x807   :  { %v3452_v14 = vpop.eup %3451 }
 0x808   :  { %v3454_v30 = vpop.eup %3453  ;;  %v1318_v20 = vmul.f32 0.5, %v3452_v14 }
 0x809   :  { %v1288_v15 = vmul.f32 0.5, %v3454_v30 }
 0x80a   :  { %v1319_v31 = vadd.f32 0.5, %v1318_v20  ;;  %v4431_v20 = vld [vmem:[#allocation10 + $0x10] sm:$0xff] }
 0x80b   :  { %v1289_v7 = vadd.f32 0.5, %v1288_v15  ;;  %v4439_v15 = vld [vmem:[#allocation10 + $0x30] sm:$0xff] }
 0x80c   :  { %v1342_v9 = vpop.f32.mrf.mxu2  ;;  %v1370_v13 = vpop.f32.mrf.mxu3  ;;  %v1378_v21 = vmul.f32 %v1319_v31, %v4285_v32  ;;  %v4421_v32 = vld [vmem:[#allocation5 + $0x20] sm:$0xff] }
 0x80d   :  { %v1343_v35 = vadd.f32 %v1342_v9, %v1329_v10  ;;  %v1371_v46 = vadd.f32 %v1370_v13, %v4338_v22 }
 0x80f   :  { %v1346_v3 = vadd.f32 %v1343_v35, %v4124_v49  ;;  %v1374_v33 = vadd.f32 %v1371_v46, %v4127_v27 }
 0x811   :  { %3455 = vtanh.f32 %v1346_v3  ;;  %v4428_v3 = vld [vmem:[#allocation10 + $0x18] sm:$0xff] }
 0x812   :  { %3457 = vtanh.f32 %v1374_v33  ;;  %v4436_v33 = vld [vmem:[#allocation10 + $0x38] sm:$0xff] }
 0x814   :  { %v1344_v34 = vpop.f32.mrf.mxu2  ;;  %v1372_v63 = vpop.f32.mrf.mxu3 }
 0x815   :  { %v4446_v34 = vld [vmem:[%s5102_s4 + $0x8] sm:$0xff]  ;;  %v4452_v63 = vld [vmem:[%s5102_s4] sm:$0xff] }
 0x817   :  { %v3456_v19 = vpop.eup %3455 }
 0x818   :  { %v1379_v18 = vmul.f32 %v3456_v19, %v1289_v7  ;;  %v3458_v50 = vpop.eup %3457 }
 0x819   :  { %v1376_v22 = vmul.f32 0.5, %v3458_v50  ;;  %v4467_v50 = vld [vmem:[#allocation8 + $0x28] sm:$0xff] }
 0x81a   :  { %v4412_v23 = vadd.f32 %v1379_v18, %v1378_v21  ;;  %v4461_v21 = vld [vmem:[#allocation10 + $0x8] sm:$0xff]  ;;  %v4464_v18 = vld [vmem:[#allocation8 + $0x18] sm:$0xff] }
 0x81b   :  { %v1377_v27 = vadd.f32 0.5, %v1376_v22 }
 0x81c   :  { %3459 = vtanh.f32 %v4412_v23  ;;  %v4415_v49 = vpop.f32.mrf.mxu3 }
 0x822   :  { %v3460_v36 = vpop.eup %3459 }
 0x823   :  { %v1382_v24 = vmul.f32 %v3460_v36, %v1377_v27  ;;  %v4470_v27 = vld [vmem:[#allocation10] sm:$0xff]  ;;  %v4473_v36 = vld [vmem:[#allocation8 + $0x10] sm:$0xff] }
 0x824   :  { %v1491_v4 = vpop.f32.mrf.mxu3 }
 0x825   :  { %3247 = vmatmul.msk.f32.vlgmr.msra.gmra.mxu1 %vm152_vm0, %v1382_v24  ;;  %v1383_v31 = vpack.c.bf16 %v1382_v24, %v1382_v24  ;;  %v4476_v24 = vld [vmem:[#allocation8 + $0x20] sm:$0xff] }
 0x826   :  { %1516 = vmatpush.bf16.msra.mxu1 %v4418_v43 }
 0x82a   :  { %1517 = vmatpush.bf16.msra.mxu1 %v4421_v32 }
 0x8a2   :  { %v1404_v62 = vpop.f32.mrf.mxu1 }
 0x8a3   :  { %v1405_v10 = vadd.f32 %v1404_v62, %v5166_v5  ;;  %v4482_v62 = vld [vmem:[#allocation10 + $0x28] sm:$0xff] }
 0x8a5   :  { %vm1408_vm9 = vcmp.lt.s32.totalorder %v1405_v10, 0  ;;  %v1409_v11 = vsub.s32 2147483648, %v1405_v10 }
 0x8a7   :  { %v1410_v37 = vsel %vm1408_vm9, %v1409_v11, %v1405_v10  ;;  %v4485_v10 = vld [vmem:[#allocation8 + $0x38] sm:$0xff] }
 0x8a8   :  { %v1411_v8 = vand.u32 4294967168, %v1410_v37  ;;  %v4488_v37 = vld [vmem:[#allocation10 + $0x20] sm:$0xff] }
 0x8aa   :  { %v1412_v61 = vor.u32 %v1411_v8, %v5167_v40  ;;  %v4491_v8 = vld [vmem:[#allocation8 + $0x30] sm:$0xff] }
 0x8ac   :  { %v1414_v45 = vshra.s32 %v1412_v61, 16  ;;  %v1413_v17 = vand.u32 65535, %v1412_v61 }
 0x8ae   :  { %v1416_v60 = vcvt.s32.f32 %v1414_v45  ;;  %v1415_v6 = vcvt.s32.f32 %v1413_v17 }
 0x8b0   :  { %1417 = vmax.xlane.f32.xlu2 %v1416_v60 }
 0x923   :  { %v1418_v2 = vpop.xlane.xlu2 %1417 }
 0x924   :  { %vm1419_vm10 = vcmp.eq.f32.partialorder %v1416_v60, %v1418_v2  ;;  %v1424_v9 = vcvt.f32.s32 %v1418_v2  ;;  %v4504_v60 = vld [vmem:[#allocation5 + $0x8] sm:$0xff]  ;;  %v4507_v2 = vld [vmem:[#allocation5] sm:$0xff] }
 0x925   :  { %v1420_v28 = vsel %vm1419_vm10, %v1415_v6, -inf  ;;  %5176 = vst [vmem:[#allocation20_spill] sm:$0xff] %v4504_v60 }
 0x926   :  { %1421 = vmax.xlane.f32.xlu2 %v1420_v28  ;;  %v1425_v14 = vshll.u32 %v1424_v9, 16  ;;  %5177 = vst [vmem:[#allocation22_spill] sm:$0xff] %v4507_v2 }
 0x999   :  { %v1422_v13 = vpop.xlane.xlu2 %1421 }
 0x99a   :  { %v1423_v35 = vcvt.f32.s32 %v1422_v13 }
 0x99c   :  { %v1426_v5 = vadd.s32 %v1425_v14, %v1423_v35  ;;  %v4515_v35 = vld [vmem:[#allocation7] sm:$0xff] }
 0x99e   :  { %v1427_v46 = vand.u32 127, %v1426_v5 }
 0x9a0   :  { %v1428_v30 = vsub.s32 127, %v1427_v46 }
 0x9a2   :  { %vm1429_vm11 = vcmp.eq.s32.totalorder %v4141_v57, %v1428_v30 }
 0x9a3   :  { %vm3249_vm12 = vmpackc.low %vm1429_vm11, %vm1429_vm11 }
 0x9a4   :  { %3250 = vmatmul.msk.bf16.vlgmr.msrb.gmra.mxu2 %vm3249_vm12, %v5168_v16 }
 0x9a5   :  { %1616 = vmatpush.bf16.msrb.mxu2 %v4428_v3 }
 0x9a9   :  { %1617 = vmatpush.bf16.msrb.mxu2 %v4431_v20 }
 0x9b4   :  { %3257 = vmatmul.msk.bf16.vlgmr.msra.gmra.mxu2 %vm152_vm0, %v4353_v58 }
 0x9b5   :  { %1674 = vmatpush.bf16.msra.mxu2 %v4436_v33 }
 0x9b9   :  { %1675 = vmatpush.bf16.msra.mxu2 %v4439_v15 }
 0x9c4   :  { %3261 = vmatmul.msk.bf16.vlgmr.msrb.gmra.mxu2 %vm152_vm0, %v1383_v31 }
 0x9c5   :  { %1789 = vmatpush.bf16.msrb.mxu2 %v4446_v34 }
 0x9c9   :  { %1790 = vmatpush.bf16.msrb.mxu2 %v4452_v63 }
 0x9d4   :  { %3265 = vmatmul.msk.bf16.vlgmr.msra.gmra.mxu2 %vm152_vm0, %v1383_v31 }
 0x9d5   :  { %1836 = vmatpush.bf16.msra.mxu2 %v4418_v43 }
 0x9d9   :  { %1837 = vmatpush.bf16.msra.mxu2 %v4421_v32 }
 0xa27   :  { %v1442_v7 = vpop.f32.mrf.mxu2 }
 0xa28   :  { %v1446_v19 = vpack.c.bf16 %v1442_v7, %v1442_v7 }
 0xa2a   :  { %3252 = vmatmul.msk.bf16.vlgmr.msrb.gmra.mxu1 %vm152_vm0, %v1446_v19  ;;  %3254 = vmatmul.msk.bf16.vlgmr.msrb.gmra.mxu0 %vm152_vm0, %v1446_v19 }
 0xa2b   :  { %3256 = vmatmul.msk.bf16.vlgmr.msra.gmra.mxu3 %vm152_vm0, %v1446_v19  ;;  %1583 = vmatpush.bf16.msrb.mxu1 %v4461_v21 }
 0xa2c   :  { %1629 = vmatpush.bf16.msrb.mxu0 %v4464_v18  ;;  %1659 = vmatpush.bf16.msra.mxu3 %v4467_v50 }
 0xa2f   :  { %v1444_v22 = vpop.f32.mrf.mxu2  ;;  %1584 = vmatpush.bf16.msrb.mxu1 %v4470_v27 }
 0xa30   :  { %1630 = vmatpush.bf16.msrb.mxu0 %v4473_v36  ;;  %1660 = vmatpush.bf16.msra.mxu3 %v4476_v24  ;;  %v4518_v22 = vld [vmem:[#allocation7 + $0x10] sm:$0xff] }
 0xa37   :  { %v1547_v4 = vpop.f32.mrf.mxu2 }
 0xa3a   :  { %3255 = vmatmul.msk.bf16.vlgmr.msra.gmra.mxu1 %vm152_vm0, %v4353_v58  ;;  %3258 = vmatmul.msk.bf16.vlgmr.msra.gmra.mxu0 %vm152_vm0, %v1446_v19 }
 0xa3b   :  { %1646 = vmatpush.bf16.msra.mxu1 %v4482_v62  ;;  %1687 = vmatpush.bf16.msra.mxu0 %v4485_v10 }
 0xa3f   :  { %v1549_v11 = vpop.f32.mrf.mxu2  ;;  %1647 = vmatpush.bf16.msra.mxu1 %v4488_v37  ;;  %1688 = vmatpush.bf16.msra.mxu0 %v4491_v8 }
 0xa47   :  { %v4494_v58 = vpop.f32.mrf.mxu2 }
 0xa4a   :  { %3259 = vmatmul.msk.bf16.vlgmr.msrb.gmra.mxu1 %vm152_vm0, %v1383_v31 }
 0xa4b   :  { %1719 = vmatpush.msrb.mxu1 %v5170_v25 }
 0xa4d   :  { %1720 = vmatpush.msrb.mxu1 %v5171_v29 }
 0xa4f   :  { %v1621_v61 = vpop.f32.mrf.mxu2  ;;  %1721 = vmatpush.msrb.mxu1 %v5172_v42 }
 0xa51   :  { %1722 = vmatpush.msrb.mxu1 %v5173_v44  ;;  %v4512_v44 = vld [vmem:[#allocation7 + $0x8] sm:$0xff] }
 0xa57   :  { %v4501_v45 = vpop.f32.mrf.mxu2 }
 0xa5a   :  { %3263 = vmatmul.msk.bf16.vlgmr.msra.gmra.mxu1 %vm152_vm0, %v1383_v31 }
 0xa5b   :  { %1773 = vmatpush.bf16.msra.mxu1 %v4504_v60 }
 0xa5f   :  { %v1679_v17 = vpop.f32.mrf.mxu2  ;;  %1774 = vmatpush.bf16.msra.mxu1 %v4507_v2 }
 0xa60   :  { %v4521_v17 = vld [vmem:[#allocation7 + $0x18] sm:$0xff] }
 0xaa7   :  { %v1472_v25 = vpop.f32.mrf.mxu1  ;;  %v1502_v29 = vpop.f32.mrf.mxu0 }
 0xaa8   :  { %v1503_v6 = vadd.f32 %v1502_v29, %v4415_v49  ;;  %v1473_v42 = vadd.f32 %v1472_v25, %v4403_v26 }
 0xaaa   :  { %v1506_v28 = vadd.f32 %v4512_v44, %v1503_v6  ;;  %v1476_v5 = vadd.f32 %v4515_v35, %v1473_v42 }
 0xaac   :  { %3461 = vtanh.f32 %v1506_v28 }
 0xaad   :  { %3463 = vtanh.f32 %v1476_v5 }
 0xaae   :  { %v1532_v9 = vpop.f32.mrf.mxu3 }
 0xaaf   :  { %v1474_v13 = vpop.f32.mrf.mxu1  ;;  %v1504_v14 = vpop.f32.mrf.mxu0 }
 0xab2   :  { %v3462_v7 = vpop.eup %3461 }
 0xab3   :  { %v3464_v26 = vpop.eup %3463  ;;  %v1508_v61 = vmul.f32 0.5, %v3462_v7 }
 0xab4   :  { %v1478_v29 = vmul.f32 0.5, %v3464_v26 }
 0xab5   :  { %v1509_v6 = vadd.f32 0.5, %v1508_v61 }
 0xab6   :  { %v1534_v46 = vpop.f32.mrf.mxu3  ;;  %v1479_v13 = vadd.f32 0.5, %v1478_v29 }
 0xab7   :  { %v1519_v30 = vpop.f32.mrf.mxu1  ;;  %v1560_v31 = vpop.f32.mrf.mxu0 }
 0xab8   :  { %v1533_v49 = vadd.f32 %v1532_v9, %v1519_v30  ;;  %v1561_v19 = vadd.f32 %v1560_v31, %v1547_v4  ;;  %v1568_v4 = vmul.f32 %v1509_v6, %v4350_v0  ;;  %v4564_v6 = vld [vmem:[#allocation11] sm:$0xff] }
 0xaba   :  { %v1536_v11 = vadd.f32 %v4518_v22, %v1533_v49  ;;  %v1564_v25 = vadd.f32 %v4521_v17, %v1561_v19 }
 0xabc   :  { %3465 = vtanh.f32 %v1536_v11 }
 0xabd   :  { %3467 = vtanh.f32 %v1564_v25 }
 0xabf   :  { %v1521_v42 = vpop.f32.mrf.mxu1  ;;  %v1562_v28 = vpop.f32.mrf.mxu0 }
 0xac2   :  { %v3466_v14 = vpop.eup %3465 }
 0xac3   :  { %v1569_v9 = vmul.f32 %v3466_v14, %v1479_v13  ;;  %v3468_v5 = vpop.eup %3467 }
 0xac4   :  { %v1566_v31 = vmul.f32 0.5, %v3468_v5 }
 0xac5   :  { %v4525_v46 = vadd.f32 %v1569_v9, %v1568_v4 }
 0xac6   :  { %v1567_v7 = vadd.f32 0.5, %v1566_v31 }
 0xac7   :  { %3469 = vtanh.f32 %v4525_v46  ;;  %v1586_v30 = vpop.f32.mrf.mxu1 }
 0xacd   :  { %v3470_v49 = vpop.eup %3469 }
 0xace   :  { %v1572_v19 = vmul.f32 %v3470_v49, %v1567_v7  ;;  %v4571_v49 = vld [vmem:[#allocation11 + $0x18] sm:$0xff] }
 0xacf   :  { %v1588_v26 = vpop.f32.mrf.mxu1 }
 0xad0   :  { %v4528_v11 = vpack.c.bf16 %v1572_v19, %v1572_v19 }
 0xad2   :  { %3260 = vmatmul.msk.bf16.vlgmr.msrb.gmra.mxu3 %vm152_vm0, %v4528_v11  ;;  %3262 = vmatmul.msk.bf16.vlgmr.msrb.gmra.mxu0 %vm152_vm0, %v4528_v11 }
 0xad3   :  { %1806 = vmatpush.bf16.msrb.mxu0 %v4361_v59  ;;  %1753 = vmatpush.bf16.msrb.mxu3 %v4151_v48  ;;  %v4553_v48 = vld [vmem:[#allocation8 + $0x8] sm:$0xff] }
 0xad7   :  { %v1649_v0 = vpop.f32.mrf.mxu1  ;;  %1807 = vmatpush.bf16.msrb.mxu0 %v4366_v12  ;;  %1754 = vmatpush.bf16.msrb.mxu3 %v4157_v51  ;;  %v4557_v51 = vld [vmem:[#allocation8] sm:$0xff] }
 0xad8   :  { %5178 = vst [vmem:[#allocation23_spill] sm:$0xff] %v4557_v51 }
 0xadb   :  { %1755 = vmatpush.bf16.msrb.mxu3 %v4163_v52 }
 0xadf   :  { %v1651_v61 = vpop.f32.mrf.mxu1  ;;  %1756 = vmatpush.bf16.msrb.mxu3 %v4169_v55 }
 0xae2   :  { %3264 = vmatmul.msk.bf16.vlgmr.msra.gmra.mxu3 %vm152_vm0, %v4528_v11  ;;  %3266 = vmatmul.msk.bf16.vlgmr.msra.gmra.mxu0 %vm152_vm0, %v4528_v11 }
 0xae3   :  { %1757 = vmatpush.bf16.msrb.mxu3 %v4175_v56  ;;  %1849 = vmatpush.bf16.msra.mxu0 %v4380_v53 }
 0xae7   :  { %1758 = vmatpush.bf16.msrb.mxu3 %v4181_v54  ;;  %1850 = vmatpush.bf16.msra.mxu0 %v4387_v38 }
 0xaeb   :  { %1759 = vmatpush.bf16.msrb.mxu3 %v4187_v39 }
 0xaef   :  { %1760 = vmatpush.bf16.msrb.mxu3 %v4193_v41  ;;  %v4561_v41 = vld [vmem:[#allocation11 + $0x8] sm:$0xff] }
 0xaf2   :  { %3273 = vmatmul.msk.bf16.vlgmr.msrb.gmra.mxu0 %vm152_vm0, %v4528_v11 }
 0xaf3   :  { %1864 = vmatpush.bf16.msra.mxu3 %v4393_v1  ;;  %1919 = vmatpush.bf16.msrb.mxu0 %v4553_v48 }
 0xaf7   :  { %1865 = vmatpush.bf16.msra.mxu3 %v4399_v47  ;;  %1920 = vmatpush.bf16.msrb.mxu0 %v4557_v51 }
 0xb4f   :  { %v1632_v52 = vpop.f32.mrf.mxu0 }
 0xb50   :  { %v1633_v54 = vadd.f32 %v1632_v52, %v4494_v58 }
 0xb52   :  { %v1636_v25 = vadd.f32 %v4561_v41, %v1633_v54 }
 0xb54   :  { %3471 = vtanh.f32 %v1636_v25 }
 0xb55   :  { %v1602_v55 = vpop.f32.mrf.mxu3 }
 0xb56   :  { %v1603_v39 = vadd.f32 %v1602_v55, %v1586_v30  ;;  %v4568_v30 = vld [vmem:[#allocation11 + $0x10] sm:$0xff] }
 0xb57   :  { %v1634_v56 = vpop.f32.mrf.mxu0 }
 0xb58   :  { %v1606_v42 = vadd.f32 %v4564_v6, %v1603_v39 }
 0xb5a   :  { %3473 = vtanh.f32 %v1606_v42  ;;  %v3472_v4 = vpop.eup %3471 }
 0xb5b   :  { %v1638_v7 = vmul.f32 0.5, %v3472_v4  ;;  %v4584_v4 = vld [vmem:[%s5102_s4 + $0x18] sm:$0xff] }
 0xb5d   :  { %v1604_v29 = vpop.f32.mrf.mxu3  ;;  %v1639_v61 = vadd.f32 0.5, %v1638_v7 }
 0xb5f   :  { %v1690_v28 = vpop.f32.mrf.mxu0  ;;  %v1698_v56 = vmul.f32 %v1639_v61, %v4412_v23  ;;  %v4590_v23 = vld [vmem:[%s5102_s4 + $0x10] sm:$0xff] }
 0xb60   :  { %v1691_v13 = vadd.f32 %v1690_v28, %v4501_v45  ;;  %v3474_v58 = vpop.eup %3473 }
 0xb61   :  { %v1608_v26 = vmul.f32 0.5, %v3474_v58 }
 0xb62   :  { %v1694_v19 = vadd.f32 %v4571_v49, %v1691_v13 }
 0xb63   :  { %v1609_v45 = vadd.f32 0.5, %v1608_v26 }
 0xb65   :  { %v1662_v14 = vpop.f32.mrf.mxu3 }
 0xb66   :  { %v1663_v9 = vadd.f32 %v1662_v14, %v1649_v0 }
 0xb67   :  { %v1692_v5 = vpop.f32.mrf.mxu0 }
 0xb68   :  { %v1666_v31 = vadd.f32 %v4568_v30, %v1663_v9  ;;  %v4598_v9 = vld [vmem:[%s5102_s4 + $0x38] sm:$0xff]  ;;  %v4604_v5 = vld [vmem:[%s5102_s4 + $0x30] sm:$0xff] }
 0xb69   :  { %5179 = vst [vmem:[#allocation24_spill] sm:$0xff] %v4604_v5 }
 0xb6a   :  { %3475 = vtanh.f32 %v1666_v31  ;;  %v4610_v31 = vld [vmem:[%s5101_s3] sm:$0xff] }
 0xb6b   :  { %3477 = vtanh.f32 %v1694_v19  ;;  %5180 = vst [vmem:[#allocation30_spill] sm:$0xff] %v4610_v31 }
 0xb6d   :  { %v1664_v52 = vpop.f32.mrf.mxu3 }
 0xb6f   :  { %v4574_v55 = vpop.f32.mrf.mxu0 }
 0xb70   :  { %v3476_v0 = vpop.eup %3475 }
 0xb71   :  { %v1699_v54 = vmul.f32 %v3476_v0, %v1609_v45  ;;  %v3478_v39 = vpop.eup %3477 }
 0xb72   :  { %v1696_v29 = vmul.f32 0.5, %v3478_v39 }
 0xb73   :  { %v4577_v25 = vadd.f32 %v1699_v54, %v1698_v56 }
 0xb74   :  { %v1697_v28 = vadd.f32 0.5, %v1696_v29 }
 0xb75   :  { %3479 = vtanh.f32 %v4577_v25 }
 0xb77   :  { %v1811_v42 = vpop.f32.mrf.mxu0 }
 0xb7b   :  { %v3480_v13 = vpop.eup %3479 }
 0xb7c   :  { %v1702_v14 = vmul.f32 %v3480_v13, %v1697_v28 }
 0xb7e   :  { %3267 = vmatmul.msk.f32.vlgmr.msrb.gmra.mxu1 %vm152_vm0, %v1702_v14 }
 0xb7f   :  { %1819 = vmatpush.bf16.msrb.mxu1 %v4584_v4 }
 0xb83   :  { %1820 = vmatpush.bf16.msrb.mxu1 %v4590_v23 }
 0xb86   :  { %3271 = vmatmul.msk.bf16.vlgmr.msra.gmra.mxu1 %vm152_vm0, %v4528_v11 }
 0xb87   :  { %1877 = vmatpush.bf16.msra.mxu1 %v4598_v9 }
 0xb8b   :  { %1878 = vmatpush.bf16.msra.mxu1 %v4604_v5 }
 0xbfb   :  { %v1724_v58 = vpop.f32.mrf.mxu1 }
 0xbfc   :  { %v1725_v7 = vadd.f32 %v4610_v31, %v1724_v58 }
 0xbfe   :  { %vm1728_vm13 = vcmp.lt.s32.totalorder %v1725_v7, 0  ;;  %v1729_v19 = vsub.s32 2147483648, %v1725_v7 }
 0xc00   :  { %v1730_v26 = vsel %vm1728_vm13, %v1729_v19, %v1725_v7 }
 0xc01   :  { %v1731_v61 = vand.u32 4294967168, %v1730_v26 }
 0xc03   :  { %v4613_v52 = vpop.f32.mrf.mxu1  ;;  %v1732_v45 = vor.u32 %v1731_v61, %v5167_v40  ;;  %v1703_v61 = vpack.c.bf16 %v1702_v14, %v1702_v14 }
 0xc05   :  { %v1734_v0 = vshra.s32 %v1732_v45, 16  ;;  %v1733_v39 = vand.u32 65535, %v1732_v45 }
 0xc07   :  { %v1736_v56 = vcvt.s32.f32 %v1734_v0  ;;  %v1735_v42 = vcvt.s32.f32 %v1733_v39 }
 0xc09   :  { %1737 = vmax.xlane.f32.xlu0 %v1736_v56 }
 0xc0b   :  { %v1778_v54 = vpop.f32.mrf.mxu1 }
 0xc0c   :  { %v4649_v54 = vld [vmem:[#allocation2 + $0x18] sm:$0xff] }
 0xc0d   :  { %5181 = vst [vmem:[#allocation31_spill] sm:$0xff] %v4649_v54 }
 0xc7c   :  { %v1738_v29 = vpop.xlane.xlu0 %1737 }
 0xc7d   :  { %vm1739_vm14 = vcmp.eq.f32.partialorder %v1736_v56, %v1738_v29  ;;  %v1744_v13 = vcvt.f32.s32 %v1738_v29  ;;  %v4655_v29 = vld [vmem:[#allocation2 + $0x8] sm:$0xff] }
 0xc7e   :  { %v1740_v28 = vsel %vm1739_vm14, %v1735_v42, -inf  ;;  %5183 = vst [vmem:[#allocation26_spill] sm:$0xff] %v4655_v29  ;;  %v4658_v42 = vld [vmem:[#allocation2] sm:$0xff] }
 0xc7f   :  { %1741 = vmax.xlane.f32.xlu1 %v1740_v28  ;;  %v1745_v31 = vshll.u32 %v1744_v13, 16  ;;  %5184 = vst [vmem:[#allocation27_spill] sm:$0xff] %v4658_v42 }
 0xcf2   :  { %v1742_v58 = vpop.xlane.xlu1 %1741 }
 0xcf3   :  { %v1743_v5 = vcvt.f32.s32 %v1742_v58 }
 0xcf5   :  { %v1746_v7 = vadd.s32 %v1745_v31, %v1743_v5 }
 0xcf7   :  { %v1747_v19 = vand.u32 127, %v1746_v7 }
 0xcf9   :  { %v1748_v26 = vsub.s32 127, %v1747_v19 }
 0xcfb   :  { %vm1749_vm15 = vcmp.eq.s32.totalorder %v4141_v57, %v1748_v26 }
 0xcfc   :  { %vm3269_vm1 = vmpackc.low %vm1749_vm15, %vm1749_vm15 }
 0xcfd   :  { %3270 = vmatmul.msk.bf16.vlgmr.msrb.gmra.mxu3 %vm3269_vm1, %v5168_v16 }
 0xcfe   :  { %1936 = vmatpush.bf16.msrb.mxu3 %v4428_v3 }
 0xd02   :  { %1937 = vmatpush.bf16.msrb.mxu3 %v4431_v20 }
 0xd0d   :  { %3277 = vmatmul.msk.bf16.vlgmr.msra.gmra.mxu3 %vm152_vm0, %v4528_v11 }
 0xd0e   :  { %1994 = vmatpush.bf16.msra.mxu3 %v4436_v33 }
 0xd12   :  { %1995 = vmatpush.bf16.msra.mxu3 %v4439_v15 }
 0xd1d   :  { %3281 = vmatmul.msk.bf16.vlgmr.msrb.gmra.mxu3 %vm152_vm0, %v1703_v61 }
 0xd1e   :  { %2109 = vmatpush.bf16.msrb.mxu3 %v4446_v34 }
 0xd22   :  { %2110 = vmatpush.bf16.msrb.mxu3 %v4452_v63 }
 0xd2d   :  { %3285 = vmatmul.msk.bf16.vlgmr.msra.gmra.mxu3 %vm152_vm0, %v1703_v61 }
 0xd2e   :  { %2156 = vmatpush.bf16.msra.mxu3 %v4418_v43 }
 0xd32   :  { %2157 = vmatpush.bf16.msra.mxu3 %v4421_v32 }
 0xd80   :  { %v1762_v5 = vpop.f32.mrf.mxu3 }
 0xd81   :  { %v1766_v31 = vpack.c.bf16 %v1762_v5, %v1762_v5 }
 0xd83   :  { %3272 = vmatmul.msk.bf16.vlgmr.msrb.gmra.mxu2 %vm152_vm0, %v1766_v31  ;;  %3274 = vmatmul.msk.bf16.vlgmr.msrb.gmra.mxu1 %vm152_vm0, %v1766_v31 }
 0xd84   :  { %3276 = vmatmul.msk.bf16.vlgmr.msra.gmra.mxu0 %vm152_vm0, %v1766_v31  ;;  %1903 = vmatpush.bf16.msrb.mxu2 %v4461_v21 }
 0xd85   :  { %1949 = vmatpush.bf16.msrb.mxu1 %v4464_v18  ;;  %1979 = vmatpush.bf16.msra.mxu0 %v4467_v50 }
 0xd88   :  { %v1764_v14 = vpop.f32.mrf.mxu3  ;;  %1904 = vmatpush.bf16.msrb.mxu2 %v4470_v27 }
 0xd89   :  { %1950 = vmatpush.bf16.msrb.mxu1 %v4473_v36  ;;  %1980 = vmatpush.bf16.msra.mxu0 %v4476_v24 }
 0xd90   :  { %v1867_v45 = vpop.f32.mrf.mxu3 }
 0xd93   :  { %3275 = vmatmul.msk.bf16.vlgmr.msra.gmra.mxu2 %vm152_vm0, %v4528_v11  ;;  %3278 = vmatmul.msk.bf16.vlgmr.msra.gmra.mxu1 %vm152_vm0, %v1766_v31  ;;  %v4652_v11 = vld [vmem:[#allocation2 + $0x10] sm:$0xff] }
 0xd94   :  { %1966 = vmatpush.bf16.msra.mxu2 %v4482_v62  ;;  %2007 = vmatpush.bf16.msra.mxu1 %v4485_v10  ;;  %5182 = vst [vmem:[#allocation25_spill] sm:$0xff] %v4652_v11 }
 0xd98   :  { %v1869_v0 = vpop.f32.mrf.mxu3  ;;  %1967 = vmatpush.bf16.msra.mxu2 %v4488_v37  ;;  %2008 = vmatpush.bf16.msra.mxu1 %v4491_v8 }
 0xda0   :  { %v4646_v56 = vpop.f32.mrf.mxu3 }
 0xda3   :  { %3279 = vmatmul.msk.bf16.vlgmr.msrb.gmra.mxu2 %vm152_vm0, %v1703_v61 }
 0xda4   :  { %2039 = vmatpush.msrb.mxu2 %v4649_v54 }
 0xda6   :  { %2040 = vmatpush.msrb.mxu2 %v4652_v11 }
 0xda8   :  { %v1941_v39 = vpop.f32.mrf.mxu3  ;;  %2041 = vmatpush.msrb.mxu2 %v4655_v29 }
 0xdaa   :  { %2042 = vmatpush.msrb.mxu2 %v4658_v42 }
 0xdb0   :  { %v4661_v28 = vpop.f32.mrf.mxu3 }
 0xdb3   :  { %3283 = vmatmul.msk.bf16.vlgmr.msra.gmra.mxu2 %vm152_vm0, %v1703_v61 }
 0xdb4   :  { %2093 = vmatpush.bf16.msra.mxu2 %v4504_v60 }
 0xdb8   :  { %v1999_v13 = vpop.f32.mrf.mxu3  ;;  %2094 = vmatpush.bf16.msra.mxu2 %v4507_v2 }
 0xe00   :  { %v1822_v58 = vpop.f32.mrf.mxu1 }
 0xe01   :  { %v1852_v7 = vpop.f32.mrf.mxu0  ;;  %v1823_v5 = vadd.f32 %v1822_v58, %v4574_v55 }
 0xe03   :  { %v1826_v0 = vadd.f32 %v4512_v44, %v1823_v5 }
 0xe05   :  { %3481 = vtanh.f32 %v1826_v0 }
 0xe06   :  { %v1792_v19 = vpop.f32.mrf.mxu2 }
 0xe07   :  { %v1793_v14 = vadd.f32 %v1792_v19, %v4613_v52 }
 0xe08   :  { %v1824_v26 = vpop.f32.mrf.mxu1 }
 0xe09   :  { %v1854_v31 = vpop.f32.mrf.mxu0  ;;  %v1796_v42 = vadd.f32 %v4515_v35, %v1793_v14 }
 0xe0b   :  { %3483 = vtanh.f32 %v1796_v42  ;;  %v3482_v2 = vpop.eup %3481 }
 0xe0c   :  { %v1828_v55 = vmul.f32 0.5, %v3482_v2 }
 0xe0e   :  { %v1794_v39 = vpop.f32.mrf.mxu2  ;;  %v1829_v19 = vadd.f32 0.5, %v1828_v55 }
 0xe10   :  { %v1880_v61 = vpop.f32.mrf.mxu1  ;;  %v1888_v42 = vmul.f32 %v1829_v19, %v4525_v46  ;;  %v4686_v46 = vld [vmem:[%s5099_s1 + $0x38] sm:$0xff]  ;;  %v4729_v19 = vld [vmem:[%s5099_s1 + $0x8] sm:$0xff] }
 0xe11   :  { %v1881_v13 = vadd.f32 %v1880_v61, %v1867_v45  ;;  %v3484_v54 = vpop.eup %3483 }
 0xe12   :  { %v1798_v52 = vmul.f32 0.5, %v3484_v54 }
 0xe13   :  { %v1884_v58 = vadd.f32 %v4521_v17, %v1881_v13 }
 0xe14   :  { %v1799_v31 = vadd.f32 0.5, %v1798_v52  ;;  %v4722_v52 = vld [vmem:[%s5099_s1 + $0x10] sm:$0xff] }
 0xe16   :  { %v1839_v60 = vpop.f32.mrf.mxu2 }
 0xe17   :  { %v1853_v29 = vadd.f32 %v1852_v7, %v1839_v60 }
 0xe18   :  { %v1882_v11 = vpop.f32.mrf.mxu1 }
 0xe19   :  { %v1856_v26 = vadd.f32 %v4518_v22, %v1853_v29 }
 0xe1b   :  { %3485 = vtanh.f32 %v1856_v26  ;;  %v4693_v26 = vld [vmem:[%s5099_s1 + $0x30] sm:$0xff] }
 0xe1c   :  { %3487 = vtanh.f32 %v1884_v58  ;;  %v4705_v58 = vld [vmem:[%s5099_s1 + $0x20] sm:$0xff] }
 0xe1e   :  { %v1841_v5 = vpop.f32.mrf.mxu2 }
 0xe21   :  { %v3486_v14 = vpop.eup %3485 }
 0xe22   :  { %v1889_v45 = vmul.f32 %v3486_v14, %v1799_v31  ;;  %v3488_v0 = vpop.eup %3487 }
 0xe23   :  { %v1886_v11 = vmul.f32 0.5, %v3488_v0 }
 0xe24   :  { %v4673_v39 = vadd.f32 %v1889_v45, %v1888_v42 }
 0xe25   :  { %v1887_v2 = vadd.f32 0.5, %v1886_v11 }
 0xe26   :  { %3489 = vtanh.f32 %v4673_v39  ;;  %v1906_v60 = vpop.f32.mrf.mxu2 }
 0xe2c   :  { %v3490_v29 = vpop.eup %3489 }
 0xe2d   :  { %v1892_v7 = vmul.f32 %v3490_v29, %v1887_v2 }
 0xe2e   :  { %v1908_v61 = vpop.f32.mrf.mxu2 }
 0xe2f   :  { %v4676_v54 = vpack.c.bf16 %v1892_v7, %v1892_v7 }
 0xe31   :  { %3280 = vmatmul.msk.bf16.vlgmr.msrb.gmra.mxu0 %vm152_vm0, %v4676_v54  ;;  %3282 = vmatmul.msk.bf16.vlgmr.msrb.gmra.mxu1 %vm152_vm0, %v4676_v54 }
 0xe32   :  { %2126 = vmatpush.bf16.msrb.mxu1 %v4361_v59  ;;  %2073 = vmatpush.bf16.msrb.mxu0 %v4686_v46  ;;  %v4699_v59 = vld [vmem:[%s5099_s1 + $0x28] sm:$0xff] }
 0xe36   :  { %v1969_v13 = vpop.f32.mrf.mxu2  ;;  %2127 = vmatpush.bf16.msrb.mxu1 %v4366_v12  ;;  %2074 = vmatpush.bf16.msrb.mxu0 %v4693_v26  ;;  %v4715_v12 = vld [vmem:[%s5099_s1 + $0x18] sm:$0xff] }
 0xe3a   :  { %2075 = vmatpush.bf16.msrb.mxu0 %v4699_v59 }
 0xe3e   :  { %v1971_v55 = vpop.f32.mrf.mxu2  ;;  %2076 = vmatpush.bf16.msrb.mxu0 %v4705_v58 }
 0xe41   :  { %3284 = vmatmul.msk.bf16.vlgmr.msra.gmra.mxu0 %vm152_vm0, %v4676_v54  ;;  %3286 = vmatmul.msk.bf16.vlgmr.msra.gmra.mxu1 %vm152_vm0, %v4676_v54 }
 0xe42   :  { %2077 = vmatpush.bf16.msrb.mxu0 %v4715_v12  ;;  %2169 = vmatpush.bf16.msra.mxu1 %v4380_v53  ;;  %v4735_v53 = vld [vmem:[%s5099_s1] sm:$0xff] }
 0xe46   :  { %2078 = vmatpush.bf16.msrb.mxu0 %v4722_v52  ;;  %2170 = vmatpush.bf16.msra.mxu1 %v4387_v38 }
 0xe4a   :  { %2079 = vmatpush.bf16.msrb.mxu0 %v4729_v19 }
 0xe4e   :  { %2080 = vmatpush.bf16.msrb.mxu0 %v4735_v53 }
 0xe51   :  { %3293 = vmatmul.msk.bf16.vlgmr.msrb.gmra.mxu1 %vm152_vm0, %v4676_v54 }
 0xe52   :  { %2184 = vmatpush.bf16.msra.mxu0 %v4393_v1  ;;  %2239 = vmatpush.bf16.msrb.mxu1 %v4553_v48 }
 0xe56   :  { %2185 = vmatpush.bf16.msra.mxu0 %v4399_v47  ;;  %2240 = vmatpush.bf16.msrb.mxu1 %v4557_v51 }
 0xeae   :  { %v1922_v38 = vpop.f32.mrf.mxu0  ;;  %v1952_v5 = vpop.f32.mrf.mxu1 }
 0xeaf   :  { %v1953_v31 = vadd.f32 %v1952_v5, %v4646_v56  ;;  %v1923_v14 = vadd.f32 %v1922_v38, %v1906_v60 }
 0xeb1   :  { %v1956_v42 = vadd.f32 %v4561_v41, %v1953_v31  ;;  %v1926_v1 = vadd.f32 %v4564_v6, %v1923_v14 }
 0xeb3   :  { %3491 = vtanh.f32 %v1956_v42 }
 0xeb4   :  { %3493 = vtanh.f32 %v1926_v1 }
 0xeb6   :  { %v1924_v45 = vpop.f32.mrf.mxu0  ;;  %v1954_v0 = vpop.f32.mrf.mxu1 }
 0xeb9   :  { %v3492_v29 = vpop.eup %3491 }
 0xeba   :  { %v3494_v61 = vpop.eup %3493  ;;  %v1958_v51 = vmul.f32 0.5, %v3492_v29 }
 0xebb   :  { %v1928_v60 = vmul.f32 0.5, %v3494_v61  ;;  %v5186_v61 = vld [vmem:[#allocation30_spill] sm:$0xff] }
 0xebc   :  { %v1959_v38 = vadd.f32 0.5, %v1958_v51 }
 0xebd   :  { %v1929_v14 = vadd.f32 0.5, %v1928_v60 }
 0xebe   :  { %v1982_v11 = vpop.f32.mrf.mxu0  ;;  %v2010_v2 = vpop.f32.mrf.mxu1  ;;  %v2018_v45 = vmul.f32 %v1959_v38, %v4577_v25  ;;  %v5185_v25 = vld [vmem:[#allocation24_spill] sm:$0xff] }
 0xebf   :  { %v1983_v7 = vadd.f32 %v1982_v11, %v1969_v13  ;;  %v2011_v47 = vadd.f32 %v2010_v2, %v4661_v28 }
 0xec1   :  { %v1986_v55 = vadd.f32 %v4568_v30, %v1983_v7  ;;  %v2014_v56 = vadd.f32 %v4571_v49, %v2011_v47 }
 0xec3   :  { %3495 = vtanh.f32 %v1986_v55 }
 0xec4   :  { %3497 = vtanh.f32 %v2014_v56 }
 0xec6   :  { %v1984_v5 = vpop.f32.mrf.mxu0  ;;  %v2012_v31 = vpop.f32.mrf.mxu1 }
 0xec9   :  { %v3496_v42 = vpop.eup %3495 }
 0xeca   :  { %v2019_v0 = vmul.f32 %v3496_v42, %v1929_v14  ;;  %v3498_v13 = vpop.eup %3497 }
 0xecb   :  { %v2016_v11 = vmul.f32 0.5, %v3498_v13 }
 0xecc   :  { %v4751_v1 = vadd.f32 %v2019_v0, %v2018_v45 }
 0xecd   :  { %v2017_v2 = vadd.f32 0.5, %v2016_v11 }
 0xece   :  { %3499 = vtanh.f32 %v4751_v1  ;;  %v4754_v28 = vpop.f32.mrf.mxu1 }
 0xed4   :  { %v3500_v29 = vpop.eup %3499 }
 0xed5   :  { %v2022_v7 = vmul.f32 %v3500_v29, %v2017_v2 }
 0xed6   :  { %v2131_v51 = vpop.f32.mrf.mxu1 }
 0xed7   :  { %3287 = vmatmul.msk.f32.vlgmr.msrb.gmra.mxu2 %vm152_vm0, %v2022_v7 }
 0xed8   :  { %2139 = vmatpush.bf16.msrb.mxu2 %v4584_v4 }
 0xedc   :  { %2140 = vmatpush.bf16.msrb.mxu2 %v4590_v23 }
 0xedf   :  { %3291 = vmatmul.msk.bf16.vlgmr.msra.gmra.mxu2 %vm152_vm0, %v4676_v54 }
 0xee0   :  { %2197 = vmatpush.bf16.msra.mxu2 %v4598_v9 }
 0xee4   :  { %2198 = vmatpush.bf16.msra.mxu2 %v5185_v25 }
 0xf5a   :  { %v2044_v47 = vpop.f32.mrf.mxu2 }
 0xf5b   :  { %v2045_v55 = vadd.f32 %v5186_v61, %v2044_v47 }
 0xf5d   :  { %vm2048_vm2 = vcmp.lt.s32.totalorder %v2045_v55, 0  ;;  %v2049_v56 = vsub.s32 2147483648, %v2045_v55 }
 0xf5f   :  { %v2050_v60 = vsel %vm2048_vm2, %v2049_v56, %v2045_v55 }
 0xf60   :  { %v2051_v38 = vand.u32 4294967168, %v2050_v60 }
 0xf62   :  { %v4764_v5 = vpop.f32.mrf.mxu2  ;;  %v2052_v31 = vor.u32 %v2051_v38, %v5167_v40  ;;  %v2023_v38 = vpack.c.bf16 %v2022_v7, %v2022_v7 }
 0xf64   :  { %v2054_v14 = vshra.s32 %v2052_v31, 16  ;;  %v2053_v0 = vand.u32 65535, %v2052_v31 }
 0xf66   :  { %v2056_v42 = vcvt.s32.f32 %v2054_v14  ;;  %v2055_v11 = vcvt.s32.f32 %v2053_v0 }
 0xf68   :  { %2057 = vmax.xlane.f32.xlu2 %v2056_v42 }
 0xf6a   :  { %v2098_v45 = vpop.f32.mrf.mxu2 }
 0xfdb   :  { %v2058_v13 = vpop.xlane.xlu2 %2057 }
 0xfdc   :  { %vm2059_vm3 = vcmp.eq.f32.partialorder %v2056_v42, %v2058_v13  ;;  %v2064_v29 = vcvt.f32.s32 %v2058_v13 }
 0xfdd   :  { %v2060_v2 = vsel %vm2059_vm3, %v2055_v11, -inf }
 0xfde   :  { %2061 = vmax.xlane.f32.xlu0 %v2060_v2  ;;  %v2065_v47 = vshll.u32 %v2064_v29, 16 }
0x1051   :  { %v2062_v51 = vpop.xlane.xlu0 %2061 }
0x1052   :  { %v2063_v61 = vcvt.f32.s32 %v2062_v51 }
0x1054   :  { %v2066_v55 = vadd.s32 %v2065_v47, %v2063_v61 }
0x1056   :  { %v2067_v56 = vand.u32 127, %v2066_v55 }
0x1058   :  { %v2068_v60 = vsub.s32 127, %v2067_v56 }
0x105a   :  { %vm2069_vm4 = vcmp.eq.s32.totalorder %v4141_v57, %v2068_v60 }
0x105b   :  { %vm3289_vm5 = vmpackc.low %vm2069_vm4, %vm2069_vm4 }
0x105c   :  { %3290 = vmatmul.msk.bf16.vlgmr.msrb.gmra.mxu0 %vm3289_vm5, %v5168_v16 }
0x105d   :  { %2256 = vmatpush.bf16.msrb.mxu0 %v4428_v3 }
0x1061   :  { %2257 = vmatpush.bf16.msrb.mxu0 %v4431_v20 }
0x106c   :  { %3297 = vmatmul.msk.bf16.vlgmr.msra.gmra.mxu0 %vm152_vm0, %v4676_v54 }
0x106d   :  { %2314 = vmatpush.bf16.msra.mxu0 %v4436_v33 }
0x1071   :  { %2315 = vmatpush.bf16.msra.mxu0 %v4439_v15 }
0x107c   :  { %3301 = vmatmul.msk.bf16.vlgmr.msrb.gmra.mxu0 %vm152_vm0, %v2023_v38 }
0x107d   :  { %2429 = vmatpush.bf16.msrb.mxu0 %v4446_v34  ;;  %v5187_v34 = vld [vmem:[#allocation31_spill] sm:$0xff] }
0x1081   :  { %2430 = vmatpush.bf16.msrb.mxu0 %v4452_v63  ;;  %v5188_v63 = vld [vmem:[#allocation25_spill] sm:$0xff] }
0x108c   :  { %3305 = vmatmul.msk.bf16.vlgmr.msra.gmra.mxu0 %vm152_vm0, %v2023_v38 }
0x108d   :  { %2476 = vmatpush.bf16.msra.mxu0 %v4418_v43 }
0x1091   :  { %2477 = vmatpush.bf16.msra.mxu0 %v4421_v32 }
0x10d9   :  { %v2082_v3 = vpop.f32.mrf.mxu0 }
0x10da   :  { %v2086_v20 = vpack.c.bf16 %v2082_v3, %v2082_v3 }
0x10dc   :  { %3292 = vmatmul.msk.bf16.vlgmr.msrb.gmra.mxu3 %vm152_vm0, %v2086_v20  ;;  %3294 = vmatmul.msk.bf16.vlgmr.msrb.gmra.mxu2 %vm152_vm0, %v2086_v20 }
0x10dd   :  { %3296 = vmatmul.msk.bf16.vlgmr.msra.gmra.mxu1 %vm152_vm0, %v2086_v20  ;;  %2223 = vmatpush.bf16.msrb.mxu3 %v4461_v21 }
0x10de   :  { %2269 = vmatpush.bf16.msrb.mxu2 %v4464_v18  ;;  %2299 = vmatpush.bf16.msra.mxu1 %v4467_v50  ;;  %v5189_v18 = vld [vmem:[#allocation26_spill] sm:$0xff]  ;;  %v5190_v50 = vld [vmem:[#allocation27_spill] sm:$0xff] }
0x10e1   :  { %v2084_v33 = vpop.f32.mrf.mxu0  ;;  %2224 = vmatpush.bf16.msrb.mxu3 %v4470_v27 }
0x10e2   :  { %2270 = vmatpush.bf16.msrb.mxu2 %v4473_v36  ;;  %2300 = vmatpush.bf16.msra.mxu1 %v4476_v24  ;;  %v5191_v36 = vld [vmem:[#allocation20_spill] sm:$0xff] }
0x10e9   :  { %v2187_v43 = vpop.f32.mrf.mxu0 }
0x10ec   :  { %3295 = vmatmul.msk.bf16.vlgmr.msra.gmra.mxu3 %vm152_vm0, %v4676_v54  ;;  %3298 = vmatmul.msk.bf16.vlgmr.msra.gmra.mxu2 %vm152_vm0, %v2086_v20 }
0x10ed   :  { %2286 = vmatpush.bf16.msra.mxu3 %v4482_v62  ;;  %2327 = vmatpush.bf16.msra.mxu2 %v4485_v10  ;;  %v5192_v62 = vld [vmem:[#allocation22_spill] sm:$0xff] }
0x10f1   :  { %v2189_v32 = vpop.f32.mrf.mxu0  ;;  %2287 = vmatpush.bf16.msra.mxu3 %v4488_v37  ;;  %2328 = vmatpush.bf16.msra.mxu2 %v4491_v8 }
0x10f9   :  { %v4797_v15 = vpop.f32.mrf.mxu0 }
0x10fc   :  { %3299 = vmatmul.msk.bf16.vlgmr.msrb.gmra.mxu3 %vm152_vm0, %v2023_v38 }
0x10fd   :  { %2359 = vmatpush.msrb.mxu3 %v5187_v34 }
0x10ff   :  { %2360 = vmatpush.msrb.mxu3 %v5188_v63 }
0x1101   :  { %v2261_v21 = vpop.f32.mrf.mxu0  ;;  %2361 = vmatpush.msrb.mxu3 %v5189_v18 }
0x1103   :  { %2362 = vmatpush.msrb.mxu3 %v5190_v50 }
0x1109   :  { %v4804_v27 = vpop.f32.mrf.mxu0 }
0x110c   :  { %3303 = vmatmul.msk.bf16.vlgmr.msra.gmra.mxu3 %vm152_vm0, %v2023_v38 }
0x110d   :  { %2413 = vmatpush.bf16.msra.mxu3 %v5191_v36 }
0x1111   :  { %v2319_v24 = vpop.f32.mrf.mxu0  ;;  %2414 = vmatpush.bf16.msra.mxu3 %v5192_v62 }
0x115a   :  { %v2172_v10 = vpop.f32.mrf.mxu1 }
0x115f   :  { %v2112_v37 = vpop.f32.mrf.mxu3  ;;  %v2142_v8 = vpop.f32.mrf.mxu2 }
0x1160   :  { %v2143_v54 = vadd.f32 %v2142_v8, %v4754_v28  ;;  %v2113_v61 = vadd.f32 %v2112_v37, %v4764_v5  ;;  %v4829_v37 = vld [vmem:[#allocation5 + $0x10] sm:$0xff] }
0x1162   :  { %v2174_v7 = vpop.f32.mrf.mxu1  ;;  %v2146_v31 = vadd.f32 %v4512_v44, %v2143_v54  ;;  %v2116_v45 = vadd.f32 %v4515_v35, %v2113_v61  ;;  %v4843_v54 = vld [vmem:[%s5102_s4 + $0x28] sm:$0xff]  ;;  %v4855_v61 = vld [vmem:[#allocation5 + $0x38] sm:$0xff] }
0x1163   :  { %v4850_v7 = vld [vmem:[%s5102_s4 + $0x20] sm:$0xff] }
0x1164   :  { %3501 = vtanh.f32 %v2146_v31  ;;  %v4861_v31 = vld [vmem:[#allocation5 + $0x30] sm:$0xff] }
0x1165   :  { %3503 = vtanh.f32 %v2116_v45 }
0x1167   :  { %v2114_v14 = vpop.f32.mrf.mxu3  ;;  %v2144_v42 = vpop.f32.mrf.mxu2 }
0x1168   :  { %v5193_v14 = vld [vmem:[#allocation23_spill] sm:$0xff] }
0x116a   :  { %v3502_v11 = vpop.eup %3501 }
0x116b   :  { %v3504_v51 = vpop.eup %3503  ;;  %v2148_v28 = vmul.f32 0.5, %v3502_v11 }
0x116c   :  { %v2118_v5 = vmul.f32 0.5, %v3504_v51 }
0x116d   :  { %v2149_v44 = vadd.f32 0.5, %v2148_v28 }
0x116e   :  { %v2119_v35 = vadd.f32 0.5, %v2118_v5 }
0x116f   :  { %v2159_v0 = vpop.f32.mrf.mxu3  ;;  %v2200_v13 = vpop.f32.mrf.mxu2  ;;  %v2208_v3 = vmul.f32 %v2149_v44, %v4673_v39  ;;  %v4825_v39 = vld [vmem:[#allocation5 + $0x18] sm:$0xff] }
0x1170   :  { %v2173_v2 = vadd.f32 %v2172_v10, %v2159_v0  ;;  %v2201_v29 = vadd.f32 %v2200_v13, %v2187_v43 }
0x1172   :  { %v2176_v47 = vadd.f32 %v4518_v22, %v2173_v2  ;;  %v2204_v55 = vadd.f32 %v4521_v17, %v2201_v29 }
0x1174   :  { %3505 = vtanh.f32 %v2176_v47 }
0x1175   :  { %3507 = vtanh.f32 %v2204_v55 }
0x1177   :  { %v2161_v56 = vpop.f32.mrf.mxu3  ;;  %v2202_v60 = vpop.f32.mrf.mxu2 }
0x117a   :  { %v3506_v38 = vpop.eup %3505 }
0x117b   :  { %v2209_v20 = vmul.f32 %v3506_v38, %v2119_v35  ;;  %v3508_v33 = vpop.eup %3507 }
0x117c   :  { %v2206_v43 = vmul.f32 0.5, %v3508_v33 }
0x117d   :  { %v4816_v32 = vadd.f32 %v2209_v20, %v2208_v3 }
0x117e   :  { %v2207_v21 = vadd.f32 0.5, %v2206_v43 }
0x117f   :  { %3509 = vtanh.f32 %v4816_v32  ;;  %v2226_v22 = vpop.f32.mrf.mxu3 }
0x1185   :  { %v3510_v17 = vpop.eup %3509 }
0x1186   :  { %v2212_v36 = vmul.f32 %v3510_v17, %v2207_v21 }
0x1187   :  { %v2228_v24 = vpop.f32.mrf.mxu3 }
0x1188   :  { %v4819_v62 = vpack.c.bf16 %v2212_v36, %v2212_v36 }
0x118a   :  { %3300 = vmatmul.msk.bf16.vlgmr.msrb.gmra.mxu1 %vm152_vm0, %v4819_v62  ;;  %3302 = vmatmul.msk.bf16.vlgmr.msrb.gmra.mxu2 %vm152_vm0, %v4819_v62 }
0x118b   :  { %2446 = vmatpush.bf16.msrb.mxu2 %v4825_v39  ;;  %2393 = vmatpush.bf16.msrb.mxu1 %v4686_v46 }
0x118f   :  { %v2289_v10 = vpop.f32.mrf.mxu3  ;;  %2447 = vmatpush.bf16.msrb.mxu2 %v4829_v37  ;;  %2394 = vmatpush.bf16.msrb.mxu1 %v4693_v26 }
0x1193   :  { %2395 = vmatpush.bf16.msrb.mxu1 %v4699_v59 }
0x1197   :  { %v2291_v8 = vpop.f32.mrf.mxu3  ;;  %2396 = vmatpush.bf16.msrb.mxu1 %v4705_v58 }
0x119a   :  { %3304 = vmatmul.msk.bf16.vlgmr.msra.gmra.mxu1 %vm152_vm0, %v4819_v62  ;;  %3306 = vmatmul.msk.bf16.vlgmr.msra.gmra.mxu2 %vm152_vm0, %v4819_v62 }
0x119b   :  { %2397 = vmatpush.bf16.msrb.mxu1 %v4715_v12  ;;  %2489 = vmatpush.bf16.msra.mxu2 %v4843_v54 }
0x119f   :  { %2398 = vmatpush.bf16.msrb.mxu1 %v4722_v52  ;;  %2490 = vmatpush.bf16.msra.mxu2 %v4850_v7 }
0x11a3   :  { %2399 = vmatpush.bf16.msrb.mxu1 %v4729_v19 }
0x11a7   :  { %2400 = vmatpush.bf16.msrb.mxu1 %v4735_v53 }
0x11aa   :  { %3313 = vmatmul.msk.bf16.vlgmr.msrb.gmra.mxu2 %vm152_vm0, %v4819_v62 }
0x11ab   :  { %2504 = vmatpush.bf16.msra.mxu1 %v4855_v61  ;;  %2559 = vmatpush.bf16.msrb.mxu2 %v4553_v48 }
0x11af   :  { %2505 = vmatpush.bf16.msra.mxu1 %v4861_v31  ;;  %2560 = vmatpush.bf16.msrb.mxu2 %v5193_v14 }
0x1207   :  { %v2242_v42 = vpop.f32.mrf.mxu1 }
0x1208   :  { %v2243_v45 = vadd.f32 %v2242_v42, %v2226_v22 }
0x120a   :  { %v2246_v2 = vadd.f32 %v4564_v6, %v2243_v45 }
0x120d   :  { %v2272_v0 = vpop.f32.mrf.mxu2 }
0x120e   :  { %v2273_v13 = vadd.f32 %v2272_v0, %v4797_v15 }
0x120f   :  { %v2244_v11 = vpop.f32.mrf.mxu1 }
0x1210   :  { %v2276_v29 = vadd.f32 %v4561_v41, %v2273_v13 }
0x1212   :  { %3511 = vtanh.f32 %v2276_v29 }
0x1213   :  { %3513 = vtanh.f32 %v2246_v2 }
0x1215   :  { %v2274_v51 = vpop.f32.mrf.mxu2 }
0x1217   :  { %v2302_v48 = vpop.f32.mrf.mxu1 }
0x1218   :  { %v3512_v47 = vpop.eup %3511  ;;  %v2303_v28 = vadd.f32 %v2302_v48, %v2289_v10  ;;  %v5194_v10 = vld [vmem:[#allocation30_spill] sm:$0xff] }
0x1219   :  { %v3514_v55 = vpop.eup %3513  ;;  %v2278_v44 = vmul.f32 0.5, %v3512_v47 }
0x121a   :  { %v2306_v5 = vadd.f32 %v4568_v30, %v2303_v28  ;;  %v2248_v56 = vmul.f32 0.5, %v3514_v55 }
0x121b   :  { %v2279_v35 = vadd.f32 0.5, %v2278_v44 }
0x121c   :  { %3515 = vtanh.f32 %v2306_v5  ;;  %v2249_v41 = vadd.f32 0.5, %v2248_v56  ;;  %v4890_v56 = vld [vmem:[#allocation10 + $0x18] sm:$0xff] }
0x121d   :  { %v2330_v60 = vpop.f32.mrf.mxu2  ;;  %v2338_v20 = vmul.f32 %v2279_v35, %v4751_v1  ;;  %v4901_v35 = vld [vmem:[#allocation10 + $0x30] sm:$0xff] }
0x121e   :  { %v2331_v15 = vadd.f32 %v2330_v60, %v4804_v27  ;;  %v4893_v60 = vld [vmem:[#allocation10 + $0x10] sm:$0xff] }
0x121f   :  { %v2304_v38 = vpop.f32.mrf.mxu1 }
0x1220   :  { %v2334_v6 = vadd.f32 %v4571_v49, %v2331_v15  ;;  %v4898_v15 = vld [vmem:[#allocation10 + $0x38] sm:$0xff] }
0x1222   :  { %v3516_v3 = vpop.eup %3515  ;;  %3517 = vtanh.f32 %v2334_v6  ;;  %v3624_v6 = vld [vmem:[%s5102_s4 + $0x8] sm:$0xff] }
0x1223   :  { %v2339_v33 = vmul.f32 %v3516_v3, %v2249_v41  ;;  %v3625_v41 = vld [vmem:[%s5102_s4] sm:$0xff]  ;;  %v3626_v3 = vld [vmem:[#allocation5 + $0x28] sm:$0xff] }
0x1225   :  { %v4872_v22 = vadd.f32 %v2339_v33, %v2338_v20  ;;  %v2332_v43 = vpop.f32.mrf.mxu2  ;;  %v3627_v20 = vld [vmem:[#allocation5 + $0x20] sm:$0xff] }
0x1227   :  { %3519 = vtanh.f32 %v4872_v22 }
0x1228   :  { %v3518_v30 = vpop.eup %3517 }
0x1229   :  { %v2336_v21 = vmul.f32 0.5, %v3518_v30  ;;  %v4915_v30 = vld [vmem:[#allocation10 + $0x8] sm:$0xff] }
0x122b   :  { %v2337_v17 = vadd.f32 0.5, %v2336_v21  ;;  %v4918_v21 = vld [vmem:[#allocation8 + $0x18] sm:$0xff] }
0x122d   :  { %v3520_v36 = vpop.eup %3519  ;;  %v4875_v27 = vpop.f32.mrf.mxu2 }
0x122e   :  { %v2342_v24 = vmul.f32 %v3520_v36, %v2337_v17  ;;  %v4921_v17 = vld [vmem:[#allocation8 + $0x28] sm:$0xff] }
0x1230   :  { %3307 = vmatmul.msk.f32.vlgmr.msrb.gmra.mxu3 %vm152_vm0, %v2342_v24  ;;  %v2343_v38 = vpack.c.bf16 %v2342_v24, %v2342_v24  ;;  %v4924_v24 = vld [vmem:[#allocation10] sm:$0xff] }
0x1231   :  { %2459 = vmatpush.bf16.msrb.mxu3 %v4584_v4 }
0x1235   :  { %v2451_v49 = vpop.f32.mrf.mxu2  ;;  %2460 = vmatpush.bf16.msrb.mxu3 %v4590_v23 }
0x1236   :  { %v4927_v49 = vld [vmem:[#allocation8 + $0x10] sm:$0xff] }
0x1238   :  { %3311 = vmatmul.msk.bf16.vlgmr.msra.gmra.mxu3 %vm152_vm0, %v4819_v62 }
0x1239   :  { %2517 = vmatpush.bf16.msra.mxu3 %v4598_v9 }
0x123d   :  { %2518 = vmatpush.bf16.msra.mxu3 %v5185_v25 }
0x12b3   :  { %v2364_v1 = vpop.f32.mrf.mxu3 }
0x12b4   :  { %v2365_v8 = vadd.f32 %v5194_v10, %v2364_v1  ;;  %v4930_v1 = vld [vmem:[#allocation8 + $0x20] sm:$0xff] }
0x12b6   :  { %vm2368_vm6 = vcmp.lt.s32.totalorder %v2365_v8, 0  ;;  %v2369_v14 = vsub.s32 2147483648, %v2365_v8 }
0x12b8   :  { %v2370_v42 = vsel %vm2368_vm6, %v2369_v14, %v2365_v8  ;;  %v4936_v8 = vld [vmem:[#allocation10 + $0x28] sm:$0xff]  ;;  %v4939_v14 = vld [vmem:[#allocation8 + $0x38] sm:$0xff] }
0x12b9   :  { %v2371_v45 = vand.u32 4294967168, %v2370_v42 }
0x12bb   :  { %v4885_v0 = vpop.f32.mrf.mxu3  ;;  %v2372_v4 = vor.u32 %v2371_v45, %v5167_v40  ;;  %v4942_v45 = vld [vmem:[#allocation10 + $0x20] sm:$0xff] }
0x12bd   :  { %v2374_v13 = vshra.s32 %v2372_v4, 16  ;;  %v2373_v2 = vand.u32 65535, %v2372_v4  ;;  %v4945_v4 = vld [vmem:[#allocation8 + $0x30] sm:$0xff] }
0x12bf   :  { %v2376_v23 = vcvt.s32.f32 %v2374_v13  ;;  %v2375_v9 = vcvt.s32.f32 %v2373_v2 }
0x12c1   :  { %2377 = vmax.xlane.f32.xlu1 %v2376_v23 }
0x12c3   :  { %v2418_v11 = vpop.f32.mrf.mxu3 }
0x12c4   :  { %v3638_v11 = vld [vmem:[#allocation5 + $0x8] sm:$0xff] }
0x1334   :  { %v2378_v29 = vpop.xlane.xlu1 %2377 }
0x1335   :  { %vm2379_vm7 = vcmp.eq.f32.partialorder %v2376_v23, %v2378_v29  ;;  %v2384_v51 = vcvt.f32.s32 %v2378_v29  ;;  %v3639_v29 = vld [vmem:[#allocation5] sm:$0xff] }
0x1336   :  { %v2380_v25 = vsel %vm2379_vm7, %v2375_v9, -inf }
0x1337   :  { %2381 = vmax.xlane.f32.xlu2 %v2380_v25  ;;  %v2385_v47 = vshll.u32 %v2384_v51, 16 }
0x13aa   :  { %v2382_v48 = vpop.xlane.xlu2 %2381 }
0x13ab   :  { %v2383_v28 = vcvt.f32.s32 %v2382_v48 }
0x13ad   :  { %v2386_v55 = vadd.s32 %v2385_v47, %v2383_v28  ;;  %v4963_v47 = vld [vmem:[#allocation7 + $0x8] sm:$0xff] }
0x13af   :  { %v2387_v5 = vand.u32 127, %v2386_v55 }
0x13b1   :  { %v2388_v44 = vsub.s32 127, %v2387_v5 }
0x13b3   :  { %vm2389_vm8 = vcmp.eq.s32.totalorder %v4141_v57, %v2388_v44 }
0x13b4   :  { %vm3309_vm9 = vmpackc.low %vm2389_vm8, %vm2389_vm8 }
0x13b5   :  { %3310 = vmatmul.msk.bf16.vlgmr.msrb.gmra.mxu1 %vm3309_vm9, %v5168_v16 }
0x13b6   :  { %2576 = vmatpush.bf16.msrb.mxu1 %v4890_v56 }
0x13ba   :  { %2577 = vmatpush.bf16.msrb.mxu1 %v4893_v60 }
0x13c5   :  { %3317 = vmatmul.msk.bf16.vlgmr.msra.gmra.mxu1 %vm152_vm0, %v4819_v62 }
0x13c6   :  { %2634 = vmatpush.bf16.msra.mxu1 %v4898_v15 }
0x13ca   :  { %2635 = vmatpush.bf16.msra.mxu1 %v4901_v35 }
0x13d5   :  { %3321 = vmatmul.msk.bf16.vlgmr.msrb.gmra.mxu1 %vm152_vm0, %v2343_v38 }
0x13d6   :  { %2749 = vmatpush.bf16.msrb.mxu1 %v3624_v6 }
0x13da   :  { %2750 = vmatpush.bf16.msrb.mxu1 %v3625_v41  ;;  %v4966_v41 = vld [vmem:[#allocation7 + $0x10] sm:$0xff] }
0x13e5   :  { %3325 = vmatmul.msk.bf16.vlgmr.msra.gmra.mxu1 %vm152_vm0, %v2343_v38 }
0x13e6   :  { %2796 = vmatpush.bf16.msra.mxu1 %v3626_v3 }
0x13ea   :  { %2797 = vmatpush.bf16.msra.mxu1 %v3627_v20 }
0x1432   :  { %v2402_v33 = vpop.f32.mrf.mxu1 }
0x1433   :  { %v2406_v43 = vpack.c.bf16 %v2402_v33, %v2402_v33 }
0x1435   :  { %3312 = vmatmul.msk.bf16.vlgmr.msrb.gmra.mxu0 %vm152_vm0, %v2406_v43  ;;  %3314 = vmatmul.msk.bf16.vlgmr.msrb.gmra.mxu3 %vm152_vm0, %v2406_v43 }
0x1436   :  { %3316 = vmatmul.msk.bf16.vlgmr.msra.gmra.mxu2 %vm152_vm0, %v2406_v43  ;;  %2543 = vmatpush.bf16.msrb.mxu0 %v4915_v30 }
0x1437   :  { %2589 = vmatpush.bf16.msrb.mxu3 %v4918_v21  ;;  %2619 = vmatpush.bf16.msra.mxu2 %v4921_v17 }
0x143a   :  { %v2404_v36 = vpop.f32.mrf.mxu1  ;;  %2544 = vmatpush.bf16.msrb.mxu0 %v4924_v24 }
0x143b   :  { %2590 = vmatpush.bf16.msrb.mxu3 %v4927_v49  ;;  %2620 = vmatpush.bf16.msra.mxu2 %v4930_v1 }
0x1442   :  { %v2507_v10 = vpop.f32.mrf.mxu1 }
0x1445   :  { %3315 = vmatmul.msk.bf16.vlgmr.msra.gmra.mxu0 %vm152_vm0, %v4819_v62  ;;  %3318 = vmatmul.msk.bf16.vlgmr.msra.gmra.mxu3 %vm152_vm0, %v2406_v43 }
0x1446   :  { %2606 = vmatpush.bf16.msra.mxu0 %v4936_v8  ;;  %2647 = vmatpush.bf16.msra.mxu3 %v4939_v14 }
0x144a   :  { %v2509_v42 = vpop.f32.mrf.mxu1  ;;  %2607 = vmatpush.bf16.msra.mxu0 %v4942_v45  ;;  %2648 = vmatpush.bf16.msra.mxu3 %v4945_v4 }
0x1452   :  { %v4948_v62 = vpop.f32.mrf.mxu1 }
0x1455   :  { %3319 = vmatmul.msk.bf16.vlgmr.msrb.gmra.mxu0 %vm152_vm0, %v2343_v38 }
0x1456   :  { %2679 = vmatpush.msrb.mxu0 %v5187_v34 }
0x1458   :  { %2680 = vmatpush.msrb.mxu0 %v5188_v63 }
0x145a   :  { %v2581_v13 = vpop.f32.mrf.mxu1  ;;  %2681 = vmatpush.msrb.mxu0 %v5189_v18  ;;  %v4960_v18 = vld [vmem:[#allocation7] sm:$0xff] }
0x145b   :  { %v4969_v13 = vld [vmem:[#allocation7 + $0x18] sm:$0xff] }
0x145c   :  { %2682 = vmatpush.msrb.mxu0 %v5190_v50 }
0x1462   :  { %v4955_v23 = vpop.f32.mrf.mxu1 }
0x1465   :  { %3323 = vmatmul.msk.bf16.vlgmr.msra.gmra.mxu0 %vm152_vm0, %v2343_v38 }
0x1466   :  { %2733 = vmatpush.bf16.msra.mxu0 %v3638_v11 }
0x146a   :  { %v2639_v2 = vpop.f32.mrf.mxu1  ;;  %2734 = vmatpush.bf16.msra.mxu0 %v3639_v29 }
0x14b2   :  { %v2432_v9 = vpop.f32.mrf.mxu0 }
0x14b3   :  { %v2433_v25 = vadd.f32 %v2432_v9, %v4885_v0 }
0x14b5   :  { %v2436_v50 = vadd.f32 %v4960_v18, %v2433_v25 }
0x14b8   :  { %v2462_v34 = vpop.f32.mrf.mxu3 }
0x14b9   :  { %v2463_v63 = vadd.f32 %v2462_v34, %v4875_v27  ;;  %v2492_v51 = vpop.f32.mrf.mxu2 }
0x14ba   :  { %v2434_v48 = vpop.f32.mrf.mxu0 }
0x14bb   :  { %v2466_v28 = vadd.f32 %v4963_v47, %v2463_v63 }
0x14bd   :  { %3521 = vtanh.f32 %v2466_v28 }
0x14be   :  { %3523 = vtanh.f32 %v2436_v50 }
0x14c0   :  { %v2464_v55 = vpop.f32.mrf.mxu3 }
0x14c1   :  { %v2494_v5 = vpop.f32.mrf.mxu2 }
0x14c2   :  { %v2479_v44 = vpop.f32.mrf.mxu0 }
0x14c3   :  { %v3522_v38 = vpop.eup %3521  ;;  %v2493_v0 = vadd.f32 %v2492_v51, %v2479_v44 }
0x14c4   :  { %v3524_v6 = vpop.eup %3523  ;;  %v2468_v3 = vmul.f32 0.5, %v3522_v38 }
0x14c5   :  { %v2496_v27 = vadd.f32 %v4966_v41, %v2493_v0  ;;  %v2438_v20 = vmul.f32 0.5, %v3524_v6 }
0x14c6   :  { %v2469_v36 = vadd.f32 0.5, %v2468_v3  ;;  %v5010_v3 = vld [vmem:[#allocation11 + $0x10] sm:$0xff] }
0x14c7   :  { %3525 = vtanh.f32 %v2496_v27  ;;  %v2439_v2 = vadd.f32 0.5, %v2438_v20 }
0x14c8   :  { %v2520_v33 = vpop.f32.mrf.mxu3  ;;  %v2528_v9 = vmul.f32 %v2469_v36, %v4816_v32 }
0x14c9   :  { %v2521_v43 = vadd.f32 %v2520_v33, %v2507_v10 }
0x14ca   :  { %v2481_v42 = vpop.f32.mrf.mxu0 }
0x14cb   :  { %v2524_v11 = vadd.f32 %v4969_v13, %v2521_v43  ;;  %v5013_v43 = vld [vmem:[#allocation11 + $0x18] sm:$0xff] }
0x14cd   :  { %v3526_v29 = vpop.eup %3525  ;;  %3527 = vtanh.f32 %v2524_v11 }
0x14ce   :  { %v2529_v25 = vmul.f32 %v3526_v29, %v2439_v2 }
0x14d0   :  { %v4973_v34 = vadd.f32 %v2529_v25, %v2528_v9  ;;  %v2522_v63 = vpop.f32.mrf.mxu3 }
0x14d2   :  { %3529 = vtanh.f32 %v4973_v34  ;;  %v2546_v51 = vpop.f32.mrf.mxu0 }
0x14d3   :  { %v3528_v48 = vpop.eup %3527 }
0x14d4   :  { %v2526_v10 = vmul.f32 0.5, %v3528_v48 }
0x14d6   :  { %v2527_v50 = vadd.f32 0.5, %v2526_v10 }
0x14d8   :  { %v3530_v28 = vpop.eup %3529 }
0x14d9   :  { %v2532_v55 = vmul.f32 %v3530_v28, %v2527_v50 }
0x14da   :  { %v2548_v5 = vpop.f32.mrf.mxu0 }
0x14db   :  { %v4976_v44 = vpack.c.bf16 %v2532_v55, %v2532_v55 }
0x14dd   :  { %3320 = vmatmul.msk.bf16.vlgmr.msrb.gmra.mxu2 %vm152_vm0, %v4976_v44  ;;  %3322 = vmatmul.msk.bf16.vlgmr.msrb.gmra.mxu3 %vm152_vm0, %v4976_v44 }
0x14de   :  { %2766 = vmatpush.bf16.msrb.mxu3 %v4825_v39  ;;  %2713 = vmatpush.bf16.msrb.mxu2 %v4686_v46  ;;  %v3644_v46 = vld [vmem:[#allocation8 + $0x8] sm:$0xff] }
0x14df   :  { %v5003_v39 = vld [vmem:[#allocation11 + $0x8] sm:$0xff] }
0x14e2   :  { %v2609_v32 = vpop.f32.mrf.mxu0  ;;  %2767 = vmatpush.bf16.msrb.mxu3 %v4829_v37  ;;  %2714 = vmatpush.bf16.msrb.mxu2 %v4693_v26  ;;  %v3645_v26 = vld [vmem:[#allocation8] sm:$0xff] }
0x14e6   :  { %2715 = vmatpush.bf16.msrb.mxu2 %v4699_v59 }
0x14ea   :  { %v2611_v38 = vpop.f32.mrf.mxu0  ;;  %2716 = vmatpush.bf16.msrb.mxu2 %v4705_v58 }
0x14eb   :  { %v3650_v38 = vld [vmem:[%s5102_s4 + $0x18] sm:$0xff] }
0x14ed   :  { %3324 = vmatmul.msk.bf16.vlgmr.msra.gmra.mxu2 %vm152_vm0, %v4976_v44  ;;  %3326 = vmatmul.msk.bf16.vlgmr.msra.gmra.mxu3 %vm152_vm0, %v4976_v44 }
0x14ee   :  { %2717 = vmatpush.bf16.msrb.mxu2 %v4715_v12  ;;  %2809 = vmatpush.bf16.msra.mxu3 %v4843_v54  ;;  %v5006_v54 = vld [vmem:[#allocation11] sm:$0xff] }
0x14f2   :  { %2718 = vmatpush.bf16.msrb.mxu2 %v4722_v52  ;;  %2810 = vmatpush.bf16.msra.mxu3 %v4850_v7 }
0x14f6   :  { %2719 = vmatpush.bf16.msrb.mxu2 %v4729_v19 }
0x14fa   :  { %2720 = vmatpush.bf16.msrb.mxu2 %v4735_v53 }
0x14fd   :  { %3333 = vmatmul.msk.bf16.vlgmr.msrb.gmra.mxu3 %vm152_vm0, %v4976_v44 }
0x14fe   :  { %2824 = vmatpush.bf16.msra.mxu2 %v4855_v61  ;;  %2879 = vmatpush.bf16.msrb.mxu3 %v3644_v46  ;;  %v3652_v46 = vld [vmem:[%s5102_s4 + $0x38] sm:$0xff] }
0x1502   :  { %2825 = vmatpush.bf16.msra.mxu2 %v4861_v31  ;;  %2880 = vmatpush.bf16.msrb.mxu3 %v3645_v26  ;;  %v3653_v26 = vld [vmem:[%s5102_s4 + $0x30] sm:$0xff] }
0x1560   :  { %v2562_v59 = vpop.f32.mrf.mxu2  ;;  %v2592_v58 = vpop.f32.mrf.mxu3 }
0x1561   :  { %v2593_v12 = vadd.f32 %v2592_v58, %v4948_v62  ;;  %v2563_v52 = vadd.f32 %v2562_v59, %v2546_v51  ;;  %v5040_v58 = vld [vmem:[%s5101_s3] sm:$0xff]  ;;  %s3849_s3 = smov [#allocation13]  }
0x1563   :  { %v2596_v19 = vadd.f32 %v5003_v39, %v2593_v12  ;;  %v2566_v7 = vadd.f32 %v5006_v54, %v2563_v52 }
0x1565   :  { %3531 = vtanh.f32 %v2596_v19 }
0x1566   :  { %3533 = vtanh.f32 %v2566_v7 }
0x1568   :  { %v2564_v53 = vpop.f32.mrf.mxu2  ;;  %v2594_v37 = vpop.f32.mrf.mxu3 }
0x156b   :  { %v3532_v0 = vpop.eup %3531 }
0x156c   :  { %v3534_v62 = vpop.eup %3533  ;;  %v2598_v33 = vmul.f32 0.5, %v3532_v0 }
0x156d   :  { %v2568_v42 = vmul.f32 0.5, %v3534_v62 }
0x156e   :  { %v2599_v11 = vadd.f32 0.5, %v2598_v33 }
0x156f   :  { %v2569_v9 = vadd.f32 0.5, %v2568_v42 }
0x1570   :  { %v2622_v61 = vpop.f32.mrf.mxu2  ;;  %v2650_v31 = vpop.f32.mrf.mxu3 }
0x1571   :  { %v2623_v6 = vadd.f32 %v2622_v61, %v2609_v32  ;;  %v2651_v27 = vadd.f32 %v2650_v31, %v4955_v23  ;;  %v2658_v23 = vmul.f32 %v2599_v11, %v4872_v22  ;;  %v3651_v22 = vld [vmem:[%s5102_s4 + $0x10] sm:$0xff]  ;;  %s3012_s4 = sshll.u32 %s3849_s3, 4  ;;  %s3013_s4 = int_to_ptr.vmem [resolvable:$true] %s3012_s4 }
0x1573   :  { %v2626_v20 = vadd.f32 %v5010_v3, %v2623_v6  ;;  %v2654_v36 = vadd.f32 %v5013_v43, %v2651_v27 }
0x1575   :  { %3535 = vtanh.f32 %v2626_v20 }
0x1576   :  { %3537 = vtanh.f32 %v2654_v36 }
0x1578   :  { %v2624_v2 = vpop.f32.mrf.mxu2  ;;  %v2652_v29 = vpop.f32.mrf.mxu3 }
0x157b   :  { %v3536_v25 = vpop.eup %3535 }
0x157c   :  { %v2659_v63 = vmul.f32 %v3536_v25, %v2569_v9  ;;  %v3538_v51 = vpop.eup %3537 }
0x157d   :  { %v2656_v50 = vmul.f32 0.5, %v3538_v51 }
0x157e   :  { %v5017_v48 = vadd.f32 %v2659_v63, %v2658_v23 }
0x157f   :  { %v2657_v28 = vadd.f32 0.5, %v2656_v50 }
0x1580   :  { %3539 = vtanh.f32 %v5017_v48  ;;  %v5020_v10 = vpop.f32.mrf.mxu3 }
0x1586   :  { %v3540_v55 = vpop.eup %3539 }
0x1587   :  { %v2662_v5 = vmul.f32 %v3540_v55, %v2657_v28 }
0x1588   :  { %v2771_v32 = vpop.f32.mrf.mxu3 }
0x1589   :  { %3327 = vmatmul.msk.f32.vlgmr.msrb.gmra.mxu0 %vm152_vm0, %v2662_v5 }
0x158a   :  { %2779 = vmatpush.bf16.msrb.mxu0 %v3650_v38 }
0x158e   :  { %2780 = vmatpush.bf16.msrb.mxu0 %v3651_v22 }
0x1591   :  { %3331 = vmatmul.msk.bf16.vlgmr.msra.gmra.mxu0 %vm152_vm0, %v4976_v44 }
0x1592   :  { %2837 = vmatpush.bf16.msra.mxu0 %v3652_v46 }
0x1596   :  { %2838 = vmatpush.bf16.msra.mxu0 %v3653_v26 }
0x1606   :  { %v2684_v59 = vpop.f32.mrf.mxu0 }
0x1607   :  { %v2685_v12 = vadd.f32 %v5040_v58, %v2684_v59 }
0x1609   :  { %vm2688_vm10 = vcmp.lt.s32.totalorder %v2685_v12, 0  ;;  %v2689_v52 = vsub.s32 2147483648, %v2685_v12 }
0x160b   :  { %v2690_v19 = vsel %vm2688_vm10, %v2689_v52, %v2685_v12 }
0x160c   :  { %v2691_v53 = vand.u32 4294967168, %v2690_v19 }
0x160e   :  { %v5043_v37 = vpop.f32.mrf.mxu0  ;;  %v2692_v7 = vor.u32 %v2691_v53, %v5167_v40  ;;  %v2663_v40 = vpack.c.bf16 %v2662_v5, %v2662_v5 }
0x1610   :  { %v2694_v61 = vshra.s32 %v2692_v7, 16  ;;  %v2693_v6 = vand.u32 65535, %v2692_v7 }
0x1612   :  { %v2696_v31 = vcvt.s32.f32 %v2694_v61  ;;  %v2695_v62 = vcvt.s32.f32 %v2693_v6 }
0x1614   :  { %2697 = vmax.xlane.f32.xlu0 %v2696_v31 }
0x1616   :  { %v2738_v0 = vpop.f32.mrf.mxu0 }
0x1687   :  { %v2698_v27 = vpop.xlane.xlu0 %2697 }
0x1688   :  { %vm2699_vm11 = vcmp.eq.f32.partialorder %v2696_v31, %v2698_v27  ;;  %v2704_v33 = vcvt.f32.s32 %v2698_v27 }
0x1689   :  { %v2700_v20 = vsel %vm2699_vm11, %v2695_v62, -inf }
0x168a   :  { %2701 = vmax.xlane.f32.xlu1 %v2700_v20  ;;  %v2705_v42 = vshll.u32 %v2704_v33, 16 }
0x16fd   :  { %v2702_v36 = vpop.xlane.xlu1 %2701 }
0x16fe   :  { %v2703_v11 = vcvt.f32.s32 %v2702_v36 }
0x1700   :  { %v2706_v2 = vadd.s32 %v2705_v42, %v2703_v11 }
0x1702   :  { %v2707_v29 = vand.u32 127, %v2706_v2 }
0x1704   :  { %v2708_v9 = vsub.s32 127, %v2707_v29 }
0x1706   :  { %vm2709_vm12 = vcmp.eq.s32.totalorder %v4141_v57, %v2708_v9 }
0x1707   :  { %vm3329_vm13 = vmpackc.low %vm2709_vm12, %vm2709_vm12 }
0x1708   :  { %3330 = vmatmul.msk.bf16.vlgmr.msrb.gmra.mxu2 %vm3329_vm13, %v5168_v16 }
0x1709   :  { %2896 = vmatpush.bf16.msrb.mxu2 %v4890_v56 }
0x170d   :  { %2897 = vmatpush.bf16.msrb.mxu2 %v4893_v60 }
0x1718   :  { %3337 = vmatmul.msk.bf16.vlgmr.msra.gmra.mxu2 %vm152_vm0, %v4976_v44 }
0x1719   :  { %2954 = vmatpush.bf16.msra.mxu2 %v4898_v15 }
0x171d   :  { %2955 = vmatpush.bf16.msra.mxu2 %v4901_v35  ;;  %v3655_v35 = vld [vmem:[#allocation2 + $0x18] sm:$0xff] }
0x1728   :  { %3341 = vmatmul.msk.bf16.vlgmr.msrb.gmra.mxu2 %vm152_vm0, %v2663_v40 }
0x1738   :  { %3345 = vmatmul.msk.bf16.vlgmr.msra.gmra.mxu2 %vm152_vm0, %v2663_v40 }
0x178b   :  { %v2722_v57 = vpop.f32.mrf.mxu2 }
0x178c   :  { %v2726_v25 = vpack.c.bf16 %v2722_v57, %v2722_v57 }
0x178e   :  { %3332 = vmatmul.msk.bf16.vlgmr.msrb.gmra.mxu1 %vm152_vm0, %v2726_v25  ;;  %3334 = vmatmul.msk.bf16.vlgmr.msrb.gmra.mxu0 %vm152_vm0, %v2726_v25 }
0x178f   :  { %3336 = vmatmul.msk.bf16.vlgmr.msra.gmra.mxu3 %vm152_vm0, %v2726_v25  ;;  %2863 = vmatpush.bf16.msrb.mxu1 %v4915_v30  ;;  %v3656_v30 = vld [vmem:[#allocation2 + $0x10] sm:$0xff] }
0x1790   :  { %2909 = vmatpush.bf16.msrb.mxu0 %v4918_v21  ;;  %2939 = vmatpush.bf16.msra.mxu3 %v4921_v17  ;;  %v3657_v17 = vld [vmem:[#allocation2 + $0x8] sm:$0xff] }
0x1793   :  { %v2724_v16 = vpop.f32.mrf.mxu2  ;;  %2864 = vmatpush.bf16.msrb.mxu1 %v4924_v24  ;;  %v3658_v24 = vld [vmem:[#allocation2] sm:$0xff] }
0x1794   :  { %2910 = vmatpush.bf16.msrb.mxu0 %v4927_v49  ;;  %2940 = vmatpush.bf16.msra.mxu3 %v4930_v1 }
0x179b   :  { %v2827_v56 = vpop.f32.mrf.mxu2 }
0x179e   :  { %3335 = vmatmul.msk.bf16.vlgmr.msra.gmra.mxu1 %vm152_vm0, %v4976_v44  ;;  %3338 = vmatmul.msk.bf16.vlgmr.msra.gmra.mxu0 %vm152_vm0, %v2726_v25 }
0x179f   :  { %2926 = vmatpush.bf16.msra.mxu1 %v4936_v8  ;;  %2967 = vmatpush.bf16.msra.mxu0 %v4939_v14 }
0x17a3   :  { %v2829_v60 = vpop.f32.mrf.mxu2  ;;  %2927 = vmatpush.bf16.msra.mxu1 %v4942_v45  ;;  %2968 = vmatpush.bf16.msra.mxu0 %v4945_v4 }
0x17ab   :  { %v5072_v15 = vpop.f32.mrf.mxu2 }
0x17ae   :  { %3339 = vmatmul.msk.bf16.vlgmr.msrb.gmra.mxu1 %vm152_vm0, %v2663_v40 }
0x17af   :  { %2998 = vmatpush.msrb.mxu1 %v3655_v35 }
0x17b1   :  { %2999 = vmatpush.msrb.mxu1 %v3656_v30 }
0x17b3   :  { %v2901_v21 = vpop.f32.mrf.mxu2  ;;  %3000 = vmatpush.msrb.mxu1 %v3657_v17 }
0x17b5   :  { %3001 = vmatpush.msrb.mxu1 %v3658_v24 }
0x17bb   :  { %v2957_v49 = vpop.f32.mrf.mxu2 }
0x17be   :  { %3343 = vmatmul.msk.bf16.vlgmr.msra.gmra.mxu1 %vm152_vm0, %v2663_v40 }
0x17c3   :  { %v2959_v1 = vpop.f32.mrf.mxu2 }
0x180b   :  { %v2752_v8 = vpop.f32.mrf.mxu1  ;;  %v2782_v14 = vpop.f32.mrf.mxu0 }
0x180c   :  { %v2783_v45 = vadd.f32 %v2782_v14, %v5020_v10  ;;  %v2753_v4 = vadd.f32 %v2752_v8, %v5043_v37 }
0x180e   :  { %v2786_v44 = vadd.f32 %v4963_v47, %v2783_v45  ;;  %v2756_v50 = vadd.f32 %v4960_v18, %v2753_v4 }
0x1810   :  { %3541 = vtanh.f32 %v2786_v44 }
0x1811   :  { %3543 = vtanh.f32 %v2756_v50 }
0x1812   :  { %v2812_v23 = vpop.f32.mrf.mxu3 }
0x1813   :  { %v2754_v63 = vpop.f32.mrf.mxu1  ;;  %v2784_v51 = vpop.f32.mrf.mxu0 }
0x1816   :  { %v3542_v32 = vpop.eup %3541 }
0x1817   :  { %v3544_v46 = vpop.eup %3543  ;;  %v2788_v26 = vmul.f32 0.5, %v3542_v32 }
0x1818   :  { %v2758_v47 = vmul.f32 0.5, %v3544_v46 }
0x1819   :  { %v2789_v12 = vadd.f32 0.5, %v2788_v26 }
0x181a   :  { %v2814_v28 = vpop.f32.mrf.mxu3  ;;  %v2759_v19 = vadd.f32 0.5, %v2758_v47 }
0x181b   :  { %v2799_v55 = vpop.f32.mrf.mxu1  ;;  %v2840_v5 = vpop.f32.mrf.mxu0  ;;  %v2848_v37 = vmul.f32 %v2789_v12, %v4973_v34 }
0x181c   :  { %v2813_v38 = vadd.f32 %v2812_v23, %v2799_v55  ;;  %v2841_v22 = vadd.f32 %v2840_v5, %v2827_v56 }
0x181e   :  { %v2816_v10 = vadd.f32 %v4966_v41, %v2813_v38  ;;  %v2844_v59 = vadd.f32 %v4969_v13, %v2841_v22 }
0x1820   :  { %3545 = vtanh.f32 %v2816_v10 }
0x1821   :  { %3547 = vtanh.f32 %v2844_v59 }
0x1823   :  { %v2801_v52 = vpop.f32.mrf.mxu1  ;;  %v2842_v18 = vpop.f32.mrf.mxu0 }
0x1826   :  { %v3546_v53 = vpop.eup %3545 }
0x1827   :  { %v2849_v7 = vmul.f32 %v3546_v53, %v2759_v19  ;;  %v3548_v61 = vpop.eup %3547 }
0x1828   :  { %v2846_v6 = vmul.f32 0.5, %v3548_v61 }
0x1829   :  { %v2850_v31 = vadd.f32 %v2849_v7, %v2848_v37 }
0x182a   :  { %v2847_v41 = vadd.f32 0.5, %v2846_v6 }
0x182b   :  { %3549 = vtanh.f32 %v2850_v31  ;;  %v2866_v0 = vpop.f32.mrf.mxu1 }
0x1831   :  { %v3550_v27 = vpop.eup %3549 }
0x1832   :  { %v2852_v62 = vmul.f32 %v3550_v27, %v2847_v41 }
0x1833   :  { %v2868_v13 = vpop.f32.mrf.mxu1 }
0x1834   :  { %v2853_v20 = vpack.c.bf16 %v2852_v62, %v2852_v62 }
0x1836   :  { %3340 = vmatmul.msk.bf16.vlgmr.msrb.gmra.mxu3 %vm152_vm0, %v2853_v20  ;;  %3342 = vmatmul.msk.bf16.vlgmr.msrb.gmra.mxu0 %vm152_vm0, %v2853_v20 }
0x183b   :  { %v2929_v33 = vpop.f32.mrf.mxu1 }
0x1843   :  { %v2931_v36 = vpop.f32.mrf.mxu1 }
0x1846   :  { %3344 = vmatmul.msk.bf16.vlgmr.msra.gmra.mxu3 %vm152_vm0, %v2853_v20  ;;  %3346 = vmatmul.msk.bf16.vlgmr.msra.gmra.mxu0 %vm152_vm0, %v2853_v20 }
0x18b3   :  { %v2912_v34 = vpop.f32.mrf.mxu0 }
0x18b4   :  { %v2913_v2 = vadd.f32 %v2912_v34, %v5072_v15 }
0x18b6   :  { %v2916_v9 = vadd.f32 %v5003_v39, %v2913_v2 }
0x18b8   :  { %3551 = vtanh.f32 %v2916_v9 }
0x18b9   :  { %v2882_v42 = vpop.f32.mrf.mxu3 }
0x18ba   :  { %v2883_v29 = vadd.f32 %v2882_v42, %v2866_v0 }
0x18bb   :  { %v2914_v11 = vpop.f32.mrf.mxu0 }
0x18bc   :  { %v2886_v57 = vadd.f32 %v5006_v54, %v2883_v29 }
0x18be   :  { %3553 = vtanh.f32 %v2886_v57  ;;  %v3552_v60 = vpop.eup %3551 }
0x18bf   :  { %v2918_v24 = vmul.f32 0.5, %v3552_v60 }
0x18c1   :  { %v2884_v40 = vpop.f32.mrf.mxu3  ;;  %v2919_v39 = vadd.f32 0.5, %v2918_v24 }
0x18c3   :  { %v2970_v25 = vpop.f32.mrf.mxu0  ;;  %v2978_v45 = vmul.f32 %v2919_v39, %v5017_v48 }
0x18c4   :  { %v2971_v16 = vadd.f32 %v2970_v25, %v2957_v49  ;;  %v3554_v21 = vpop.eup %3553 }
0x18c5   :  { %v2888_v1 = vmul.f32 0.5, %v3554_v21 }
0x18c6   :  { %v2974_v15 = vadd.f32 %v5013_v43, %v2971_v16 }
0x18c7   :  { %v2889_v54 = vadd.f32 0.5, %v2888_v1 }
0x18c9   :  { %v2942_v56 = vpop.f32.mrf.mxu3 }
0x18ca   :  { %v2943_v35 = vadd.f32 %v2942_v56, %v2929_v33 }
0x18cb   :  { %v2972_v30 = vpop.f32.mrf.mxu0 }
0x18cc   :  { %v2946_v17 = vadd.f32 %v5010_v3, %v2943_v35 }
0x18ce   :  { %3555 = vtanh.f32 %v2946_v17 }
0x18cf   :  { %3557 = vtanh.f32 %v2974_v15 }
0x18d1   :  { %v2944_v8 = vpop.f32.mrf.mxu3 }
0x18d4   :  { %v3556_v14 = vpop.eup %3555 }
0x18d5   :  { %v2979_v49 = vmul.f32 %v3556_v14, %v2889_v54  ;;  %v3558_v4 = vpop.eup %3557 }
0x18d6   :  { %v2976_v23 = vmul.f32 0.5, %v3558_v4 }
0x18d7   :  { %v2980_v44 = vadd.f32 %v2979_v49, %v2978_v45 }
0x18d8   :  { %v2977_v63 = vadd.f32 0.5, %v2976_v23 }
0x18d9   :  { %3559 = vtanh.f32 %v2980_v44 }
0x18df   :  { %v3560_v51 = vpop.eup %3559 }
0x18e0   :  { %v2982_v3 = vmul.f32 %v3560_v51, %v2977_v63 }
0x18e2   :  { %3347 = vmatmul.msk.f32.vlgmr.msrb.gmra.mxu1 %vm152_vm0, %v2982_v3 }
0x195f   :  { %v3003_v43 = vpop.f32.mrf.mxu1 }
0x1960   :  { %v3004_v50 = vadd.f32 %v5040_v58, %v3003_v43 }
0x1962   :  { %3006 = vst [vmem:[#allocation13] sm:$0xff] %v3004_v50 }
0x1963   :  { %3017 = dma.vmem_to_hbm [thread:$0]  %s3013_s4, 128, %s3015_s27, [#allocation4]  }
0x1964   :  { %3835 = dma.done.wait [#allocation4], 128  }
0x1965   :  { %3836 = vsyncadd [#allocation4], 4294967168 }
0x1966   :  { %3022 = vsyncpa [#allocation3], 1 }
0x1967   :  { %3023 = vsyncpa [#allocation6], 1 }
0x1968   :  { %3024 = vsyncpa [#allocation9], 1 }
0x1969   :  { %3025 = vsyncpa [#allocation12], 1 }
0x196a   :  { %3026 = vsyncpa [#allocation4], 1 }

</bundles_post_ra>
